<compile_context>
chip_gen: v7x
topology: tpu7x:2x2x1
jax: 0.10.0
libtpu: 0.0.40
codegen_flags: <defaults>
</compile_context>

<pallas_src>
import jax
import jax.numpy as jnp
import numpy as np
from jax import lax
from jax.experimental import pallas as pl
from jax.experimental.pallas import tpu as pltpu


_VMEM = pl.BlockSpec(memory_space=pltpu.MemorySpace.VMEM)


# ----------------------------------------------------------------------------
# Pallas kernels
# ----------------------------------------------------------------------------
def _lstm_cell(gates_x, h, c, whh, H):
    """One LSTM step. gates_x = x_t @ W_ih + b (precomputed), shape (B, 4H).

    Single fused (B,H)x(H,4H) recurrent matmul; gate order along 4H: i,f,g,o.
    """
    g = gates_x + jnp.dot(h, whh, preferred_element_type=jnp.float32)
    i = jax.nn.sigmoid(g[:, 0 * H:1 * H])
    f = jax.nn.sigmoid(g[:, 1 * H:2 * H])
    u = jnp.tanh(g[:, 2 * H:3 * H])
    o = jax.nn.sigmoid(g[:, 3 * H:4 * H])
    c_new = f * c + i * u
    h_new = o * jnp.tanh(c_new)
    return h_new, c_new


def _encoder_kernel(x_ref, wih0_ref, whh0_ref, b0_ref,
                    wih1_ref, whh1_ref, b1_ref,
                    e2d_w_ref, e2d_b_ref,
                    dec_h0_ref):
    """Fused 2-layer encoder LSTM + enc2dec projection.

    x_ref      : (T, B, E)        time-major embedded source
    wih{l}     : (Din_l, 4H)      fused input->gate weights (i,f,g,o)
    whh{l}     : (H, 4H)          fused hidden->gate weights
    b{l}       : (1, 4H)          combined bias
    e2d_w      : (2H, 2Hd), e2d_b : (1, 2Hd)
    dec_h0_ref : (2, B, Hd)       decoder initial hidden state (output)
    """
    T, B, E = x_ref.shape
    H = whh0_ref.shape[0]
    Hd = dec_h0_ref.shape[-1]

    # Hoisted layer-0 input projection: one big MXU matmul, bias folded in.
    gx0 = (jnp.dot(x_ref[...].reshape(T * B, E), wih0_ref[...],
                   preferred_element_type=jnp.float32)
           + b0_ref[...])                                   # (T*B, 4H)

    whh0 = whh0_ref[...]
    wih1 = wih1_ref[...]
    whh1 = whh1_ref[...]
    b1 = jnp.broadcast_to(b1_ref[...], (B, 4 * H))          # hoisted broadcast

    z = jnp.zeros((B, H), jnp.float32)
    h0, c0, h1, c1 = z, z, z, z
    for t in range(T):                                      # static T -> unrolled
        h0, c0 = _lstm_cell(gx0[t * B:(t + 1) * B], h0, c0, whh0, H)
        g1 = jnp.dot(h0, wih1, preferred_element_type=jnp.float32) + b1
        h1, c1 = _lstm_cell(g1, h1, c1, whh1, H)

    # enc2dec:  concat([h_l0, h_l1], -1) @ W + b, done as two matmuls to avoid
    # a lane concatenate; split the result into the two decoder layers.
    w_e2d = e2d_w_ref[...]
    e2d = (jnp.dot(h0, w_e2d[:H], preferred_element_type=jnp.float32)
           + jnp.dot(h1, w_e2d[H:], preferred_element_type=jnp.float32)
           + e2d_b_ref[...])                                # (B, 2*Hd)
    dec_h0_ref[0] = e2d[:, :Hd]
    dec_h0_ref[1] = e2d[:, Hd:]


def _decoder_kernel(y_ref, h_init_ref,
                    wih0_ref, whh0_ref, b0_ref,
                    wih1_ref, whh1_ref, b1_ref,
                    out_w_ref, out_b_ref,
                    logits_ref):
    """Fused 2-layer decoder LSTM + output projection.

    y_ref      : (T, B, E)   time-major embedded target
    h_init_ref : (2, B, H)   initial hidden per layer (cell state starts at 0)
    out_w      : (H, V), out_b : (1, V)
    logits_ref : (T, B, V)
    """
    T, B, E = y_ref.shape
    H = whh0_ref.shape[0]
    V = out_w_ref.shape[-1]

    gx0 = (jnp.dot(y_ref[...].reshape(T * B, E), wih0_ref[...],
                   preferred_element_type=jnp.float32)
           + b0_ref[...])                                   # (T*B, 4H)

    whh0 = whh0_ref[...]
    wih1 = wih1_ref[...]
    whh1 = whh1_ref[...]
    b1 = jnp.broadcast_to(b1_ref[...], (B, 4 * H))
    out_w = out_w_ref[...]
    out_b = jnp.broadcast_to(out_b_ref[...], (B, V))

    z = jnp.zeros((B, H), jnp.float32)
    h0, c0 = h_init_ref[0], z
    h1, c1 = h_init_ref[1], z
    for t in range(T):                                      # static T -> unrolled
        h0, c0 = _lstm_cell(gx0[t * B:(t + 1) * B], h0, c0, whh0, H)
        g1 = jnp.dot(h0, wih1, preferred_element_type=jnp.float32) + b1
        h1, c1 = _lstm_cell(g1, h1, c1, whh1, H)
        # Fused output projection: write logits for this step directly.
        logits_ref[t] = (jnp.dot(h1, out_w,
                                 preferred_element_type=jnp.float32) + out_b)


def encoder_forward(x_emb, enc_l0, enc_l1, e2d_w, e2d_b, h_dec):
    _, B, _ = x_emb.shape
    return pl.pallas_call(
        _encoder_kernel,
        out_shape=jax.ShapeDtypeStruct((2, B, h_dec), jnp.float32),
        in_specs=[_VMEM] * 9,
        out_specs=_VMEM,
    )(x_emb, *enc_l0, *enc_l1, e2d_w, e2d_b)


def decoder_forward(y_emb, dec_h0, dec_l0, dec_l1, out_w, out_b):
    T, B, _ = y_emb.shape
    V = out_w.shape[-1]
    return pl.pallas_call(
        _decoder_kernel,
        out_shape=jax.ShapeDtypeStruct((T, B, V), jnp.float32),
        in_specs=[_VMEM] * 10,
        out_specs=_VMEM,
    )(y_emb, dec_h0, *dec_l0, *dec_l1, out_w, out_b)


# ----------------------------------------------------------------------------
# Parameter initialization (deterministic, synthetic, fused gate layout)
# ----------------------------------------------------------------------------
def init_params(key, vocab, e_enc, e_dec, h_enc, h_dec):
    def uni(k, shape):
        return jax.random.uniform(k, shape, jnp.float32, -0.1, 0.1)

    ks = iter(jax.random.split(key, 24))

    def lstm_layer(din, h):
        return (uni(next(ks), (din, 4 * h)),   # fused W_ih, gate order (i,f,g,o)
                uni(next(ks), (h, 4 * h)),     # fused W_hh
                uni(next(ks), (1, 4 * h)))     # combined bias (b_ih + b_hh)

    return {
        "src_emb": uni(next(ks), (vocab, e_enc)),
        "tgt_emb": uni(next(ks), (vocab, e_dec)),
        "enc_l0": lstm_layer(e_enc, h_enc),
        "enc_l1": lstm_layer(h_enc, h_enc),
        "dec_l0": lstm_layer(e_dec, h_dec),
        "dec_l1": lstm_layer(h_dec, h_dec),
        "e2d_w": uni(next(ks), (2 * h_enc, 2 * h_dec)),
        "e2d_b": uni(next(ks), (1, 2 * h_dec)),
        "out_w": uni(next(ks), (h_dec, vocab)),
        "out_b": uni(next(ks), (1, vocab)),
    }


# ----------------------------------------------------------------------------
# Forward pass (Pallas) — mirrors ReversingLSTM.forward
# ----------------------------------------------------------------------------
def forward(params, X, Y):
    h_dec = params["dec_l0"][1].shape[0]

    # torch.flip(X.T, dims=(1,)): X.T is (T, B), so the module flips the BATCH
    # axis; reproduced faithfully.
    x_tok = jnp.flip(X.T, axis=1)                      # (T_in, B)
    x_emb = params["src_emb"][x_tok]                   # (T_in, B, E_enc)

    dec_h0 = encoder_forward(x_emb, params["enc_l0"], params["enc_l1"],
                             params["e2d_w"], params["e2d_b"], h_dec)

    y_emb = params["tgt_emb"][Y.T]                     # (T_out, B, E_dec)
    logits_tbv = decoder_forward(y_emb, dec_h0,
                                 params["dec_l0"], params["dec_l1"],
                                 params["out_w"], params["out_b"])
    return jnp.transpose(logits_tbv, (1, 0, 2))        # (B, T_out, vocab)


# ----------------------------------------------------------------------------
# Pure-JAX reference (correctness check only)
# ----------------------------------------------------------------------------
def _ref_lstm2(x, h0, c0, l0, l1):
    inp = x
    h_last = []
    for (wih, whh, b), hi, ci in ((l0, h0[0], c0[0]), (l1, h0[1], c0[1])):
        H = whh.shape[0]

        def step(carry, x_t, wih=wih, whh=whh, b=b, H=H):
            h, c = carry
            g = x_t @ wih + h @ whh + b
            i = jax.nn.sigmoid(g[:, :H])
            f = jax.nn.sigmoid(g[:, H:2 * H])
            u = jnp.tanh(g[:, 2 * H:3 * H])
            o = jax.nn.sigmoid(g[:, 3 * H:])
            c = f * c + i * u
            h = o * jnp.tanh(c)
            return (h, c), h

        (hf, _), outs = lax.scan(step, (hi, ci), inp)
        inp = outs
        h_last.append(hf)
    return inp, jnp.stack(h_last)


def reference_forward(params, X, Y):
    B = X.shape[0]
    h_enc = params["enc_l0"][1].shape[0]
    h_dec = params["dec_l0"][1].shape[0]

    x_emb = params["src_emb"][jnp.flip(X.T, axis=1)]
    h0 = jnp.zeros((2, B, h_enc), jnp.float32)
    _, enc_h_last = _ref_lstm2(x_emb, h0, jnp.zeros_like(h0),
                               params["enc_l0"], params["enc_l1"])
    enc_flat = jnp.transpose(enc_h_last, (1, 0, 2)).reshape(B, 2 * h_enc)
    e2d = enc_flat @ params["e2d_w"] + params["e2d_b"]
    dec_h0 = jnp.transpose(e2d.reshape(B, 2, h_dec), (1, 0, 2))

    y_emb = params["tgt_emb"][Y.T]
    dec_out, _ = _ref_lstm2(y_emb, dec_h0, jnp.zeros_like(dec_h0),
                            params["dec_l0"], params["dec_l1"])
    dec_bt = jnp.transpose(dec_out, (1, 0, 2))
    return dec_bt @ params["out_w"] + params["out_b"]


# ----------------------------------------------------------------------------
if __name__ == "__main__":
    VOCAB = 16
    E_ENC = E_DEC = 16
    H_ENC = H_DEC = 32          # fused gate width 4H = 128 lanes
    B, T_IN, T_OUT = 2, 8, 8

    key = jax.random.PRNGKey(0)
    kp, kx, ky = jax.random.split(key, 3)
    params = init_params(kp, VOCAB, E_ENC, E_DEC, H_ENC, H_DEC)

    X = jax.random.randint(kx, (B, T_IN), 0, VOCAB, dtype=jnp.int32)
    Y = jax.random.randint(ky, (B, T_OUT), 0, VOCAB, dtype=jnp.int32)

    out = jax.block_until_ready(jax.jit(forward)(params, X, Y))
    assert out.shape == (B, T_OUT, VOCAB)

    ref = jax.block_until_ready(jax.jit(reference_forward)(params, X, Y))
    np.testing.assert_allclose(np.asarray(out), np.asarray(ref),
                               rtol=1e-4, atol=1e-4)

    print("KERNEL_OK")
</pallas_src>

<mosaic_0001>
module attributes {stable_mosaic.version = 11 : i64} {
  func.func @_encoder_kernel(%arg0: memref<8x2x16xf32, #tpu.memory_space<vmem>>, %arg1: memref<16x128xf32, #tpu.memory_space<vmem>>, %arg2: memref<32x128xf32, #tpu.memory_space<vmem>>, %arg3: memref<1x128xf32, #tpu.memory_space<vmem>>, %arg4: memref<32x128xf32, #tpu.memory_space<vmem>>, %arg5: memref<32x128xf32, #tpu.memory_space<vmem>>, %arg6: memref<1x128xf32, #tpu.memory_space<vmem>>, %arg7: memref<64x64xf32, #tpu.memory_space<vmem>>, %arg8: memref<1x64xf32, #tpu.memory_space<vmem>>, %arg9: memref<2x2x32xf32, #tpu.memory_space<vmem>>) attributes {dimension_semantics = [], scalar_prefetch = 0 : i64, scratch_operands = 0 : i64, tpu.core_type = #tpu.core_type<tc>} {
    %c0 = arith.constant 0 : index
    %c0_0 = arith.constant 0 : index
    %c0_1 = arith.constant 0 : index
    %0 = vector.load %arg0[%c0, %c0_0, %c0_1] : memref<8x2x16xf32, #tpu.memory_space<vmem>>, vector<8x2x16xf32>
    %1 = vector.shape_cast %0 : vector<8x2x16xf32> to vector<16x16xf32>
    %c0_2 = arith.constant 0 : index
    %c0_3 = arith.constant 0 : index
    %2 = vector.load %arg1[%c0_2, %c0_3] : memref<16x128xf32, #tpu.memory_space<vmem>>, vector<16x128xf32>
    %cst = arith.constant dense<0.000000e+00> : vector<16x128xf32>
    %3 = tpu.matmul %1, %2, %cst {dimension_numbers = #tpu.dot_dimension_numbers<[1], [0], [0], [1], [0, 0, 1, 1], [], []>} : vector<16x16xf32>, vector<16x128xf32>, vector<16x128xf32> -> vector<16x128xf32>
    %c0_4 = arith.constant 0 : index
    %c0_5 = arith.constant 0 : index
    %4 = vector.load %arg3[%c0_4, %c0_5] : memref<1x128xf32, #tpu.memory_space<vmem>>, vector<1x128xf32>
    %5 = vector.broadcast %4 : vector<1x128xf32> to vector<16x128xf32>
    %6 = arith.addf %3, %5 : vector<16x128xf32>
    %c0_6 = arith.constant 0 : index
    %c0_7 = arith.constant 0 : index
    %7 = vector.load %arg2[%c0_6, %c0_7] : memref<32x128xf32, #tpu.memory_space<vmem>>, vector<32x128xf32>
    %c0_8 = arith.constant 0 : index
    %c0_9 = arith.constant 0 : index
    %8 = vector.load %arg4[%c0_8, %c0_9] : memref<32x128xf32, #tpu.memory_space<vmem>>, vector<32x128xf32>
    %c0_10 = arith.constant 0 : index
    %c0_11 = arith.constant 0 : index
    %9 = vector.load %arg5[%c0_10, %c0_11] : memref<32x128xf32, #tpu.memory_space<vmem>>, vector<32x128xf32>
    %c0_12 = arith.constant 0 : index
    %c0_13 = arith.constant 0 : index
    %10 = vector.load %arg6[%c0_12, %c0_13] : memref<1x128xf32, #tpu.memory_space<vmem>>, vector<1x128xf32>
    %11 = vector.shape_cast %10 : vector<1x128xf32> to vector<1x128xf32>
    %12 = vector.broadcast %11 : vector<1x128xf32> to vector<2x128xf32>
    %cst_14 = arith.constant 0.000000e+00 : f32
    %13 = vector.broadcast %cst_14 : f32 to vector<2x32xf32>
    %14 = vector.extract_strided_slice %6 {offsets = [0, 0], sizes = [2, 128], strides = [1, 1]} : vector<16x128xf32> to vector<2x128xf32>
    %cst_15 = arith.constant dense<0.000000e+00> : vector<2x128xf32>
    %15 = tpu.matmul %13, %7, %cst_15 {dimension_numbers = #tpu.dot_dimension_numbers<[1], [0], [0], [1], [0, 0, 1, 1], [], []>} : vector<2x32xf32>, vector<32x128xf32>, vector<2x128xf32> -> vector<2x128xf32>
    %16 = arith.addf %14, %15 : vector<2x128xf32>
    %17 = vector.extract_strided_slice %16 {offsets = [0, 0], sizes = [2, 32], strides = [1, 1]} : vector<2x128xf32> to vector<2x32xf32>
    %18 = arith.negf %17 : vector<2x32xf32>
    %19 = math.exp %18 : vector<2x32xf32>
    %cst_16 = arith.constant 1.000000e+00 : f32
    %20 = vector.broadcast %cst_16 : f32 to vector<2x32xf32>
    %21 = arith.addf %20, %19 : vector<2x32xf32>
    %22 = arith.divf %20, %21 : vector<2x32xf32>
    %23 = vector.extract_strided_slice %16 {offsets = [0, 32], sizes = [2, 32], strides = [1, 1]} : vector<2x128xf32> to vector<2x32xf32>
    %24 = arith.negf %23 : vector<2x32xf32>
    %25 = math.exp %24 : vector<2x32xf32>
    %cst_17 = arith.constant 1.000000e+00 : f32
    %26 = vector.broadcast %cst_17 : f32 to vector<2x32xf32>
    %27 = arith.addf %26, %25 : vector<2x32xf32>
    %28 = arith.divf %26, %27 : vector<2x32xf32>
    %29 = vector.extract_strided_slice %16 {offsets = [0, 64], sizes = [2, 32], strides = [1, 1]} : vector<2x128xf32> to vector<2x32xf32>
    %30 = math.tanh %29 : vector<2x32xf32>
    %31 = vector.extract_strided_slice %16 {offsets = [0, 96], sizes = [2, 32], strides = [1, 1]} : vector<2x128xf32> to vector<2x32xf32>
    %32 = arith.negf %31 : vector<2x32xf32>
    %33 = math.exp %32 : vector<2x32xf32>
    %cst_18 = arith.constant 1.000000e+00 : f32
    %34 = vector.broadcast %cst_18 : f32 to vector<2x32xf32>
    %35 = arith.addf %34, %33 : vector<2x32xf32>
    %36 = arith.divf %34, %35 : vector<2x32xf32>
    %37 = arith.mulf %28, %13 : vector<2x32xf32>
    %38 = arith.mulf %22, %30 : vector<2x32xf32>
    %39 = arith.addf %37, %38 : vector<2x32xf32>
    %40 = math.tanh %39 : vector<2x32xf32>
    %41 = arith.mulf %36, %40 : vector<2x32xf32>
    %cst_19 = arith.constant dense<0.000000e+00> : vector<2x128xf32>
    %42 = tpu.matmul %41, %8, %cst_19 {dimension_numbers = #tpu.dot_dimension_numbers<[1], [0], [0], [1], [0, 0, 1, 1], [], []>} : vector<2x32xf32>, vector<32x128xf32>, vector<2x128xf32> -> vector<2x128xf32>
    %43 = arith.addf %42, %12 : vector<2x128xf32>
    %cst_20 = arith.constant dense<0.000000e+00> : vector<2x128xf32>
    %44 = tpu.matmul %13, %9, %cst_20 {dimension_numbers = #tpu.dot_dimension_numbers<[1], [0], [0], [1], [0, 0, 1, 1], [], []>} : vector<2x32xf32>, vector<32x128xf32>, vector<2x128xf32> -> vector<2x128xf32>
    %45 = arith.addf %43, %44 : vector<2x128xf32>
    %46 = vector.extract_strided_slice %45 {offsets = [0, 0], sizes = [2, 32], strides = [1, 1]} : vector<2x128xf32> to vector<2x32xf32>
    %47 = arith.negf %46 : vector<2x32xf32>
    %48 = math.exp %47 : vector<2x32xf32>
    %cst_21 = arith.constant 1.000000e+00 : f32
    %49 = vector.broadcast %cst_21 : f32 to vector<2x32xf32>
    %50 = arith.addf %49, %48 : vector<2x32xf32>
    %51 = arith.divf %49, %50 : vector<2x32xf32>
    %52 = vector.extract_strided_slice %45 {offsets = [0, 32], sizes = [2, 32], strides = [1, 1]} : vector<2x128xf32> to vector<2x32xf32>
    %53 = arith.negf %52 : vector<2x32xf32>
    %54 = math.exp %53 : vector<2x32xf32>
    %cst_22 = arith.constant 1.000000e+00 : f32
    %55 = vector.broadcast %cst_22 : f32 to vector<2x32xf32>
    %56 = arith.addf %55, %54 : vector<2x32xf32>
    %57 = arith.divf %55, %56 : vector<2x32xf32>
    %58 = vector.extract_strided_slice %45 {offsets = [0, 64], sizes = [2, 32], strides = [1, 1]} : vector<2x128xf32> to vector<2x32xf32>
    %59 = math.tanh %58 : vector<2x32xf32>
    %60 = vector.extract_strided_slice %45 {offsets = [0, 96], sizes = [2, 32], strides = [1, 1]} : vector<2x128xf32> to vector<2x32xf32>
    %61 = arith.negf %60 : vector<2x32xf32>
    %62 = math.exp %61 : vector<2x32xf32>
    %cst_23 = arith.constant 1.000000e+00 : f32
    %63 = vector.broadcast %cst_23 : f32 to vector<2x32xf32>
    %64 = arith.addf %63, %62 : vector<2x32xf32>
    %65 = arith.divf %63, %64 : vector<2x32xf32>
    %66 = arith.mulf %57, %13 : vector<2x32xf32>
    %67 = arith.mulf %51, %59 : vector<2x32xf32>
    %68 = arith.addf %66, %67 : vector<2x32xf32>
    %69 = math.tanh %68 : vector<2x32xf32>
    %70 = arith.mulf %65, %69 : vector<2x32xf32>
    %71 = vector.extract_strided_slice %6 {offsets = [2, 0], sizes = [2, 128], strides = [1, 1]} : vector<16x128xf32> to vector<2x128xf32>
    %cst_24 = arith.constant dense<0.000000e+00> : vector<2x128xf32>
    %72 = tpu.matmul %41, %7, %cst_24 {dimension_numbers = #tpu.dot_dimension_numbers<[1], [0], [0], [1], [0, 0, 1, 1], [], []>} : vector<2x32xf32>, vector<32x128xf32>, vector<2x128xf32> -> vector<2x128xf32>
    %73 = arith.addf %71, %72 : vector<2x128xf32>
    %74 = vector.extract_strided_slice %73 {offsets = [0, 0], sizes = [2, 32], strides = [1, 1]} : vector<2x128xf32> to vector<2x32xf32>
    %75 = arith.negf %74 : vector<2x32xf32>
    %76 = math.exp %75 : vector<2x32xf32>
    %cst_25 = arith.constant 1.000000e+00 : f32
    %77 = vector.broadcast %cst_25 : f32 to vector<2x32xf32>
    %78 = arith.addf %77, %76 : vector<2x32xf32>
    %79 = arith.divf %77, %78 : vector<2x32xf32>
    %80 = vector.extract_strided_slice %73 {offsets = [0, 32], sizes = [2, 32], strides = [1, 1]} : vector<2x128xf32> to vector<2x32xf32>
    %81 = arith.negf %80 : vector<2x32xf32>
    %82 = math.exp %81 : vector<2x32xf32>
    %cst_26 = arith.constant 1.000000e+00 : f32
    %83 = vector.broadcast %cst_26 : f32 to vector<2x32xf32>
    %84 = arith.addf %83, %82 : vector<2x32xf32>
    %85 = arith.divf %83, %84 : vector<2x32xf32>
    %86 = vector.extract_strided_slice %73 {offsets = [0, 64], sizes = [2, 32], strides = [1, 1]} : vector<2x128xf32> to vector<2x32xf32>
    %87 = math.tanh %86 : vector<2x32xf32>
    %88 = vector.extract_strided_slice %73 {offsets = [0, 96], sizes = [2, 32], strides = [1, 1]} : vector<2x128xf32> to vector<2x32xf32>
    %89 = arith.negf %88 : vector<2x32xf32>
    %90 = math.exp %89 : vector<2x32xf32>
    %cst_27 = arith.constant 1.000000e+00 : f32
    %91 = vector.broadcast %cst_27 : f32 to vector<2x32xf32>
    %92 = arith.addf %91, %90 : vector<2x32xf32>
    %93 = arith.divf %91, %92 : vector<2x32xf32>
    %94 = arith.mulf %85, %39 : vector<2x32xf32>
    %95 = arith.mulf %79, %87 : vector<2x32xf32>
    %96 = arith.addf %94, %95 : vector<2x32xf32>
    %97 = math.tanh %96 : vector<2x32xf32>
    %98 = arith.mulf %93, %97 : vector<2x32xf32>
    %cst_28 = arith.constant dense<0.000000e+00> : vector<2x128xf32>
    %99 = tpu.matmul %98, %8, %cst_28 {dimension_numbers = #tpu.dot_dimension_numbers<[1], [0], [0], [1], [0, 0, 1, 1], [], []>} : vector<2x32xf32>, vector<32x128xf32>, vector<2x128xf32> -> vector<2x128xf32>
    %100 = arith.addf %99, %12 : vector<2x128xf32>
    %cst_29 = arith.constant dense<0.000000e+00> : vector<2x128xf32>
    %101 = tpu.matmul %70, %9, %cst_29 {dimension_numbers = #tpu.dot_dimension_numbers<[1], [0], [0], [1], [0, 0, 1, 1], [], []>} : vector<2x32xf32>, vector<32x128xf32>, vector<2x128xf32> -> vector<2x128xf32>
    %102 = arith.addf %100, %101 : vector<2x128xf32>
    %103 = vector.extract_strided_slice %102 {offsets = [0, 0], sizes = [2, 32], strides = [1, 1]} : vector<2x128xf32> to vector<2x32xf32>
    %104 = arith.negf %103 : vector<2x32xf32>
    %105 = math.exp %104 : vector<2x32xf32>
    %cst_30 = arith.constant 1.000000e+00 : f32
    %106 = vector.broadcast %cst_30 : f32 to vector<2x32xf32>
    %107 = arith.addf %106, %105 : vector<2x32xf32>
    %108 = arith.divf %106, %107 : vector<2x32xf32>
    %109 = vector.extract_strided_slice %102 {offsets = [0, 32], sizes = [2, 32], strides = [1, 1]} : vector<2x128xf32> to vector<2x32xf32>
    %110 = arith.negf %109 : vector<2x32xf32>
    %111 = math.exp %110 : vector<2x32xf32>
    %cst_31 = arith.constant 1.000000e+00 : f32
    %112 = vector.broadcast %cst_31 : f32 to vector<2x32xf32>
    %113 = arith.addf %112, %111 : vector<2x32xf32>
    %114 = arith.divf %112, %113 : vector<2x32xf32>
    %115 = vector.extract_strided_slice %102 {offsets = [0, 64], sizes = [2, 32], strides = [1, 1]} : vector<2x128xf32> to vector<2x32xf32>
    %116 = math.tanh %115 : vector<2x32xf32>
    %117 = vector.extract_strided_slice %102 {offsets = [0, 96], sizes = [2, 32], strides = [1, 1]} : vector<2x128xf32> to vector<2x32xf32>
    %118 = arith.negf %117 : vector<2x32xf32>
    %119 = math.exp %118 : vector<2x32xf32>
    %cst_32 = arith.constant 1.000000e+00 : f32
    %120 = vector.broadcast %cst_32 : f32 to vector<2x32xf32>
    %121 = arith.addf %120, %119 : vector<2x32xf32>
    %122 = arith.divf %120, %121 : vector<2x32xf32>
    %123 = arith.mulf %114, %68 : vector<2x32xf32>
    %124 = arith.mulf %108, %116 : vector<2x32xf32>
    %125 = arith.addf %123, %124 : vector<2x32xf32>
    %126 = math.tanh %125 : vector<2x32xf32>
    %127 = arith.mulf %122, %126 : vector<2x32xf32>
    %128 = vector.extract_strided_slice %6 {offsets = [4, 0], sizes = [2, 128], strides = [1, 1]} : vector<16x128xf32> to vector<2x128xf32>
    %cst_33 = arith.constant dense<0.000000e+00> : vector<2x128xf32>
    %129 = tpu.matmul %98, %7, %cst_33 {dimension_numbers = #tpu.dot_dimension_numbers<[1], [0], [0], [1], [0, 0, 1, 1], [], []>} : vector<2x32xf32>, vector<32x128xf32>, vector<2x128xf32> -> vector<2x128xf32>
    %130 = arith.addf %128, %129 : vector<2x128xf32>
    %131 = vector.extract_strided_slice %130 {offsets = [0, 0], sizes = [2, 32], strides = [1, 1]} : vector<2x128xf32> to vector<2x32xf32>
    %132 = arith.negf %131 : vector<2x32xf32>
    %133 = math.exp %132 : vector<2x32xf32>
    %cst_34 = arith.constant 1.000000e+00 : f32
    %134 = vector.broadcast %cst_34 : f32 to vector<2x32xf32>
    %135 = arith.addf %134, %133 : vector<2x32xf32>
    %136 = arith.divf %134, %135 : vector<2x32xf32>
    %137 = vector.extract_strided_slice %130 {offsets = [0, 32], sizes = [2, 32], strides = [1, 1]} : vector<2x128xf32> to vector<2x32xf32>
    %138 = arith.negf %137 : vector<2x32xf32>
    %139 = math.exp %138 : vector<2x32xf32>
    %cst_35 = arith.constant 1.000000e+00 : f32
    %140 = vector.broadcast %cst_35 : f32 to vector<2x32xf32>
    %141 = arith.addf %140, %139 : vector<2x32xf32>
    %142 = arith.divf %140, %141 : vector<2x32xf32>
    %143 = vector.extract_strided_slice %130 {offsets = [0, 64], sizes = [2, 32], strides = [1, 1]} : vector<2x128xf32> to vector<2x32xf32>
    %144 = math.tanh %143 : vector<2x32xf32>
    %145 = vector.extract_strided_slice %130 {offsets = [0, 96], sizes = [2, 32], strides = [1, 1]} : vector<2x128xf32> to vector<2x32xf32>
    %146 = arith.negf %145 : vector<2x32xf32>
    %147 = math.exp %146 : vector<2x32xf32>
    %cst_36 = arith.constant 1.000000e+00 : f32
    %148 = vector.broadcast %cst_36 : f32 to vector<2x32xf32>
    %149 = arith.addf %148, %147 : vector<2x32xf32>
    %150 = arith.divf %148, %149 : vector<2x32xf32>
    %151 = arith.mulf %142, %96 : vector<2x32xf32>
    %152 = arith.mulf %136, %144 : vector<2x32xf32>
    %153 = arith.addf %151, %152 : vector<2x32xf32>
    %154 = math.tanh %153 : vector<2x32xf32>
    %155 = arith.mulf %150, %154 : vector<2x32xf32>
    %cst_37 = arith.constant dense<0.000000e+00> : vector<2x128xf32>
    %156 = tpu.matmul %155, %8, %cst_37 {dimension_numbers = #tpu.dot_dimension_numbers<[1], [0], [0], [1], [0, 0, 1, 1], [], []>} : vector<2x32xf32>, vector<32x128xf32>, vector<2x128xf32> -> vector<2x128xf32>
    %157 = arith.addf %156, %12 : vector<2x128xf32>
    %cst_38 = arith.constant dense<0.000000e+00> : vector<2x128xf32>
    %158 = tpu.matmul %127, %9, %cst_38 {dimension_numbers = #tpu.dot_dimension_numbers<[1], [0], [0], [1], [0, 0, 1, 1], [], []>} : vector<2x32xf32>, vector<32x128xf32>, vector<2x128xf32> -> vector<2x128xf32>
    %159 = arith.addf %157, %158 : vector<2x128xf32>
    %160 = vector.extract_strided_slice %159 {offsets = [0, 0], sizes = [2, 32], strides = [1, 1]} : vector<2x128xf32> to vector<2x32xf32>
    %161 = arith.negf %160 : vector<2x32xf32>
    %162 = math.exp %161 : vector<2x32xf32>
    %cst_39 = arith.constant 1.000000e+00 : f32
    %163 = vector.broadcast %cst_39 : f32 to vector<2x32xf32>
    %164 = arith.addf %163, %162 : vector<2x32xf32>
    %165 = arith.divf %163, %164 : vector<2x32xf32>
    %166 = vector.extract_strided_slice %159 {offsets = [0, 32], sizes = [2, 32], strides = [1, 1]} : vector<2x128xf32> to vector<2x32xf32>
    %167 = arith.negf %166 : vector<2x32xf32>
    %168 = math.exp %167 : vector<2x32xf32>
    %cst_40 = arith.constant 1.000000e+00 : f32
    %169 = vector.broadcast %cst_40 : f32 to vector<2x32xf32>
    %170 = arith.addf %169, %168 : vector<2x32xf32>
    %171 = arith.divf %169, %170 : vector<2x32xf32>
    %172 = vector.extract_strided_slice %159 {offsets = [0, 64], sizes = [2, 32], strides = [1, 1]} : vector<2x128xf32> to vector<2x32xf32>
    %173 = math.tanh %172 : vector<2x32xf32>
    %174 = vector.extract_strided_slice %159 {offsets = [0, 96], sizes = [2, 32], strides = [1, 1]} : vector<2x128xf32> to vector<2x32xf32>
    %175 = arith.negf %174 : vector<2x32xf32>
    %176 = math.exp %175 : vector<2x32xf32>
    %cst_41 = arith.constant 1.000000e+00 : f32
    %177 = vector.broadcast %cst_41 : f32 to vector<2x32xf32>
    %178 = arith.addf %177, %176 : vector<2x32xf32>
    %179 = arith.divf %177, %178 : vector<2x32xf32>
    %180 = arith.mulf %171, %125 : vector<2x32xf32>
    %181 = arith.mulf %165, %173 : vector<2x32xf32>
    %182 = arith.addf %180, %181 : vector<2x32xf32>
    %183 = math.tanh %182 : vector<2x32xf32>
    %184 = arith.mulf %179, %183 : vector<2x32xf32>
    %185 = vector.extract_strided_slice %6 {offsets = [6, 0], sizes = [2, 128], strides = [1, 1]} : vector<16x128xf32> to vector<2x128xf32>
    %cst_42 = arith.constant dense<0.000000e+00> : vector<2x128xf32>
    %186 = tpu.matmul %155, %7, %cst_42 {dimension_numbers = #tpu.dot_dimension_numbers<[1], [0], [0], [1], [0, 0, 1, 1], [], []>} : vector<2x32xf32>, vector<32x128xf32>, vector<2x128xf32> -> vector<2x128xf32>
    %187 = arith.addf %185, %186 : vector<2x128xf32>
    %188 = vector.extract_strided_slice %187 {offsets = [0, 0], sizes = [2, 32], strides = [1, 1]} : vector<2x128xf32> to vector<2x32xf32>
    %189 = arith.negf %188 : vector<2x32xf32>
    %190 = math.exp %189 : vector<2x32xf32>
    %cst_43 = arith.constant 1.000000e+00 : f32
    %191 = vector.broadcast %cst_43 : f32 to vector<2x32xf32>
    %192 = arith.addf %191, %190 : vector<2x32xf32>
    %193 = arith.divf %191, %192 : vector<2x32xf32>
    %194 = vector.extract_strided_slice %187 {offsets = [0, 32], sizes = [2, 32], strides = [1, 1]} : vector<2x128xf32> to vector<2x32xf32>
    %195 = arith.negf %194 : vector<2x32xf32>
    %196 = math.exp %195 : vector<2x32xf32>
    %cst_44 = arith.constant 1.000000e+00 : f32
    %197 = vector.broadcast %cst_44 : f32 to vector<2x32xf32>
    %198 = arith.addf %197, %196 : vector<2x32xf32>
    %199 = arith.divf %197, %198 : vector<2x32xf32>
    %200 = vector.extract_strided_slice %187 {offsets = [0, 64], sizes = [2, 32], strides = [1, 1]} : vector<2x128xf32> to vector<2x32xf32>
    %201 = math.tanh %200 : vector<2x32xf32>
    %202 = vector.extract_strided_slice %187 {offsets = [0, 96], sizes = [2, 32], strides = [1, 1]} : vector<2x128xf32> to vector<2x32xf32>
    %203 = arith.negf %202 : vector<2x32xf32>
    %204 = math.exp %203 : vector<2x32xf32>
    %cst_45 = arith.constant 1.000000e+00 : f32
    %205 = vector.broadcast %cst_45 : f32 to vector<2x32xf32>
    %206 = arith.addf %205, %204 : vector<2x32xf32>
    %207 = arith.divf %205, %206 : vector<2x32xf32>
    %208 = arith.mulf %199, %153 : vector<2x32xf32>
    %209 = arith.mulf %193, %201 : vector<2x32xf32>
    %210 = arith.addf %208, %209 : vector<2x32xf32>
    %211 = math.tanh %210 : vector<2x32xf32>
    %212 = arith.mulf %207, %211 : vector<2x32xf32>
    %cst_46 = arith.constant dense<0.000000e+00> : vector<2x128xf32>
    %213 = tpu.matmul %212, %8, %cst_46 {dimension_numbers = #tpu.dot_dimension_numbers<[1], [0], [0], [1], [0, 0, 1, 1], [], []>} : vector<2x32xf32>, vector<32x128xf32>, vector<2x128xf32> -> vector<2x128xf32>
    %214 = arith.addf %213, %12 : vector<2x128xf32>
    %cst_47 = arith.constant dense<0.000000e+00> : vector<2x128xf32>
    %215 = tpu.matmul %184, %9, %cst_47 {dimension_numbers = #tpu.dot_dimension_numbers<[1], [0], [0], [1], [0, 0, 1, 1], [], []>} : vector<2x32xf32>, vector<32x128xf32>, vector<2x128xf32> -> vector<2x128xf32>
    %216 = arith.addf %214, %215 : vector<2x128xf32>
    %217 = vector.extract_strided_slice %216 {offsets = [0, 0], sizes = [2, 32], strides = [1, 1]} : vector<2x128xf32> to vector<2x32xf32>
    %218 = arith.negf %217 : vector<2x32xf32>
    %219 = math.exp %218 : vector<2x32xf32>
    %cst_48 = arith.constant 1.000000e+00 : f32
    %220 = vector.broadcast %cst_48 : f32 to vector<2x32xf32>
    %221 = arith.addf %220, %219 : vector<2x32xf32>
    %222 = arith.divf %220, %221 : vector<2x32xf32>
    %223 = vector.extract_strided_slice %216 {offsets = [0, 32], sizes = [2, 32], strides = [1, 1]} : vector<2x128xf32> to vector<2x32xf32>
    %224 = arith.negf %223 : vector<2x32xf32>
    %225 = math.exp %224 : vector<2x32xf32>
    %cst_49 = arith.constant 1.000000e+00 : f32
    %226 = vector.broadcast %cst_49 : f32 to vector<2x32xf32>
    %227 = arith.addf %226, %225 : vector<2x32xf32>
    %228 = arith.divf %226, %227 : vector<2x32xf32>
    %229 = vector.extract_strided_slice %216 {offsets = [0, 64], sizes = [2, 32], strides = [1, 1]} : vector<2x128xf32> to vector<2x32xf32>
    %230 = math.tanh %229 : vector<2x32xf32>
    %231 = vector.extract_strided_slice %216 {offsets = [0, 96], sizes = [2, 32], strides = [1, 1]} : vector<2x128xf32> to vector<2x32xf32>
    %232 = arith.negf %231 : vector<2x32xf32>
    %233 = math.exp %232 : vector<2x32xf32>
    %cst_50 = arith.constant 1.000000e+00 : f32
    %234 = vector.broadcast %cst_50 : f32 to vector<2x32xf32>
    %235 = arith.addf %234, %233 : vector<2x32xf32>
    %236 = arith.divf %234, %235 : vector<2x32xf32>
    %237 = arith.mulf %228, %182 : vector<2x32xf32>
    %238 = arith.mulf %222, %230 : vector<2x32xf32>
    %239 = arith.addf %237, %238 : vector<2x32xf32>
    %240 = math.tanh %239 : vector<2x32xf32>
    %241 = arith.mulf %236, %240 : vector<2x32xf32>
    %242 = vector.extract_strided_slice %6 {offsets = [8, 0], sizes = [2, 128], strides = [1, 1]} : vector<16x128xf32> to vector<2x128xf32>
    %cst_51 = arith.constant dense<0.000000e+00> : vector<2x128xf32>
    %243 = tpu.matmul %212, %7, %cst_51 {dimension_numbers = #tpu.dot_dimension_numbers<[1], [0], [0], [1], [0, 0, 1, 1], [], []>} : vector<2x32xf32>, vector<32x128xf32>, vector<2x128xf32> -> vector<2x128xf32>
    %244 = arith.addf %242, %243 : vector<2x128xf32>
    %245 = vector.extract_strided_slice %244 {offsets = [0, 0], sizes = [2, 32], strides = [1, 1]} : vector<2x128xf32> to vector<2x32xf32>
    %246 = arith.negf %245 : vector<2x32xf32>
    %247 = math.exp %246 : vector<2x32xf32>
    %cst_52 = arith.constant 1.000000e+00 : f32
    %248 = vector.broadcast %cst_52 : f32 to vector<2x32xf32>
    %249 = arith.addf %248, %247 : vector<2x32xf32>
    %250 = arith.divf %248, %249 : vector<2x32xf32>
    %251 = vector.extract_strided_slice %244 {offsets = [0, 32], sizes = [2, 32], strides = [1, 1]} : vector<2x128xf32> to vector<2x32xf32>
    %252 = arith.negf %251 : vector<2x32xf32>
    %253 = math.exp %252 : vector<2x32xf32>
    %cst_53 = arith.constant 1.000000e+00 : f32
    %254 = vector.broadcast %cst_53 : f32 to vector<2x32xf32>
    %255 = arith.addf %254, %253 : vector<2x32xf32>
    %256 = arith.divf %254, %255 : vector<2x32xf32>
    %257 = vector.extract_strided_slice %244 {offsets = [0, 64], sizes = [2, 32], strides = [1, 1]} : vector<2x128xf32> to vector<2x32xf32>
    %258 = math.tanh %257 : vector<2x32xf32>
    %259 = vector.extract_strided_slice %244 {offsets = [0, 96], sizes = [2, 32], strides = [1, 1]} : vector<2x128xf32> to vector<2x32xf32>
    %260 = arith.negf %259 : vector<2x32xf32>
    %261 = math.exp %260 : vector<2x32xf32>
    %cst_54 = arith.constant 1.000000e+00 : f32
    %262 = vector.broadcast %cst_54 : f32 to vector<2x32xf32>
    %263 = arith.addf %262, %261 : vector<2x32xf32>
    %264 = arith.divf %262, %263 : vector<2x32xf32>
    %265 = arith.mulf %256, %210 : vector<2x32xf32>
    %266 = arith.mulf %250, %258 : vector<2x32xf32>
    %267 = arith.addf %265, %266 : vector<2x32xf32>
    %268 = math.tanh %267 : vector<2x32xf32>
    %269 = arith.mulf %264, %268 : vector<2x32xf32>
    %cst_55 = arith.constant dense<0.000000e+00> : vector<2x128xf32>
    %270 = tpu.matmul %269, %8, %cst_55 {dimension_numbers = #tpu.dot_dimension_numbers<[1], [0], [0], [1], [0, 0, 1, 1], [], []>} : vector<2x32xf32>, vector<32x128xf32>, vector<2x128xf32> -> vector<2x128xf32>
    %271 = arith.addf %270, %12 : vector<2x128xf32>
    %cst_56 = arith.constant dense<0.000000e+00> : vector<2x128xf32>
    %272 = tpu.matmul %241, %9, %cst_56 {dimension_numbers = #tpu.dot_dimension_numbers<[1], [0], [0], [1], [0, 0, 1, 1], [], []>} : vector<2x32xf32>, vector<32x128xf32>, vector<2x128xf32> -> vector<2x128xf32>
    %273 = arith.addf %271, %272 : vector<2x128xf32>
    %274 = vector.extract_strided_slice %273 {offsets = [0, 0], sizes = [2, 32], strides = [1, 1]} : vector<2x128xf32> to vector<2x32xf32>
    %275 = arith.negf %274 : vector<2x32xf32>
    %276 = math.exp %275 : vector<2x32xf32>
    %cst_57 = arith.constant 1.000000e+00 : f32
    %277 = vector.broadcast %cst_57 : f32 to vector<2x32xf32>
    %278 = arith.addf %277, %276 : vector<2x32xf32>
    %279 = arith.divf %277, %278 : vector<2x32xf32>
    %280 = vector.extract_strided_slice %273 {offsets = [0, 32], sizes = [2, 32], strides = [1, 1]} : vector<2x128xf32> to vector<2x32xf32>
    %281 = arith.negf %280 : vector<2x32xf32>
    %282 = math.exp %281 : vector<2x32xf32>
    %cst_58 = arith.constant 1.000000e+00 : f32
    %283 = vector.broadcast %cst_58 : f32 to vector<2x32xf32>
    %284 = arith.addf %283, %282 : vector<2x32xf32>
    %285 = arith.divf %283, %284 : vector<2x32xf32>
    %286 = vector.extract_strided_slice %273 {offsets = [0, 64], sizes = [2, 32], strides = [1, 1]} : vector<2x128xf32> to vector<2x32xf32>
    %287 = math.tanh %286 : vector<2x32xf32>
    %288 = vector.extract_strided_slice %273 {offsets = [0, 96], sizes = [2, 32], strides = [1, 1]} : vector<2x128xf32> to vector<2x32xf32>
    %289 = arith.negf %288 : vector<2x32xf32>
    %290 = math.exp %289 : vector<2x32xf32>
    %cst_59 = arith.constant 1.000000e+00 : f32
    %291 = vector.broadcast %cst_59 : f32 to vector<2x32xf32>
    %292 = arith.addf %291, %290 : vector<2x32xf32>
    %293 = arith.divf %291, %292 : vector<2x32xf32>
    %294 = arith.mulf %285, %239 : vector<2x32xf32>
    %295 = arith.mulf %279, %287 : vector<2x32xf32>
    %296 = arith.addf %294, %295 : vector<2x32xf32>
    %297 = math.tanh %296 : vector<2x32xf32>
    %298 = arith.mulf %293, %297 : vector<2x32xf32>
    %299 = vector.extract_strided_slice %6 {offsets = [10, 0], sizes = [2, 128], strides = [1, 1]} : vector<16x128xf32> to vector<2x128xf32>
    %cst_60 = arith.constant dense<0.000000e+00> : vector<2x128xf32>
    %300 = tpu.matmul %269, %7, %cst_60 {dimension_numbers = #tpu.dot_dimension_numbers<[1], [0], [0], [1], [0, 0, 1, 1], [], []>} : vector<2x32xf32>, vector<32x128xf32>, vector<2x128xf32> -> vector<2x128xf32>
    %301 = arith.addf %299, %300 : vector<2x128xf32>
    %302 = vector.extract_strided_slice %301 {offsets = [0, 0], sizes = [2, 32], strides = [1, 1]} : vector<2x128xf32> to vector<2x32xf32>
    %303 = arith.negf %302 : vector<2x32xf32>
    %304 = math.exp %303 : vector<2x32xf32>
    %cst_61 = arith.constant 1.000000e+00 : f32
    %305 = vector.broadcast %cst_61 : f32 to vector<2x32xf32>
    %306 = arith.addf %305, %304 : vector<2x32xf32>
    %307 = arith.divf %305, %306 : vector<2x32xf32>
    %308 = vector.extract_strided_slice %301 {offsets = [0, 32], sizes = [2, 32], strides = [1, 1]} : vector<2x128xf32> to vector<2x32xf32>
    %309 = arith.negf %308 : vector<2x32xf32>
    %310 = math.exp %309 : vector<2x32xf32>
    %cst_62 = arith.constant 1.000000e+00 : f32
    %311 = vector.broadcast %cst_62 : f32 to vector<2x32xf32>
    %312 = arith.addf %311, %310 : vector<2x32xf32>
    %313 = arith.divf %311, %312 : vector<2x32xf32>
    %314 = vector.extract_strided_slice %301 {offsets = [0, 64], sizes = [2, 32], strides = [1, 1]} : vector<2x128xf32> to vector<2x32xf32>
    %315 = math.tanh %314 : vector<2x32xf32>
    %316 = vector.extract_strided_slice %301 {offsets = [0, 96], sizes = [2, 32], strides = [1, 1]} : vector<2x128xf32> to vector<2x32xf32>
    %317 = arith.negf %316 : vector<2x32xf32>
    %318 = math.exp %317 : vector<2x32xf32>
    %cst_63 = arith.constant 1.000000e+00 : f32
    %319 = vector.broadcast %cst_63 : f32 to vector<2x32xf32>
    %320 = arith.addf %319, %318 : vector<2x32xf32>
    %321 = arith.divf %319, %320 : vector<2x32xf32>
    %322 = arith.mulf %313, %267 : vector<2x32xf32>
    %323 = arith.mulf %307, %315 : vector<2x32xf32>
    %324 = arith.addf %322, %323 : vector<2x32xf32>
    %325 = math.tanh %324 : vector<2x32xf32>
    %326 = arith.mulf %321, %325 : vector<2x32xf32>
    %cst_64 = arith.constant dense<0.000000e+00> : vector<2x128xf32>
    %327 = tpu.matmul %326, %8, %cst_64 {dimension_numbers = #tpu.dot_dimension_numbers<[1], [0], [0], [1], [0, 0, 1, 1], [], []>} : vector<2x32xf32>, vector<32x128xf32>, vector<2x128xf32> -> vector<2x128xf32>
    %328 = arith.addf %327, %12 : vector<2x128xf32>
    %cst_65 = arith.constant dense<0.000000e+00> : vector<2x128xf32>
    %329 = tpu.matmul %298, %9, %cst_65 {dimension_numbers = #tpu.dot_dimension_numbers<[1], [0], [0], [1], [0, 0, 1, 1], [], []>} : vector<2x32xf32>, vector<32x128xf32>, vector<2x128xf32> -> vector<2x128xf32>
    %330 = arith.addf %328, %329 : vector<2x128xf32>
    %331 = vector.extract_strided_slice %330 {offsets = [0, 0], sizes = [2, 32], strides = [1, 1]} : vector<2x128xf32> to vector<2x32xf32>
    %332 = arith.negf %331 : vector<2x32xf32>
    %333 = math.exp %332 : vector<2x32xf32>
    %cst_66 = arith.constant 1.000000e+00 : f32
    %334 = vector.broadcast %cst_66 : f32 to vector<2x32xf32>
    %335 = arith.addf %334, %333 : vector<2x32xf32>
    %336 = arith.divf %334, %335 : vector<2x32xf32>
    %337 = vector.extract_strided_slice %330 {offsets = [0, 32], sizes = [2, 32], strides = [1, 1]} : vector<2x128xf32> to vector<2x32xf32>
    %338 = arith.negf %337 : vector<2x32xf32>
    %339 = math.exp %338 : vector<2x32xf32>
    %cst_67 = arith.constant 1.000000e+00 : f32
    %340 = vector.broadcast %cst_67 : f32 to vector<2x32xf32>
    %341 = arith.addf %340, %339 : vector<2x32xf32>
    %342 = arith.divf %340, %341 : vector<2x32xf32>
    %343 = vector.extract_strided_slice %330 {offsets = [0, 64], sizes = [2, 32], strides = [1, 1]} : vector<2x128xf32> to vector<2x32xf32>
    %344 = math.tanh %343 : vector<2x32xf32>
    %345 = vector.extract_strided_slice %330 {offsets = [0, 96], sizes = [2, 32], strides = [1, 1]} : vector<2x128xf32> to vector<2x32xf32>
    %346 = arith.negf %345 : vector<2x32xf32>
    %347 = math.exp %346 : vector<2x32xf32>
    %cst_68 = arith.constant 1.000000e+00 : f32
    %348 = vector.broadcast %cst_68 : f32 to vector<2x32xf32>
    %349 = arith.addf %348, %347 : vector<2x32xf32>
    %350 = arith.divf %348, %349 : vector<2x32xf32>
    %351 = arith.mulf %342, %296 : vector<2x32xf32>
    %352 = arith.mulf %336, %344 : vector<2x32xf32>
    %353 = arith.addf %351, %352 : vector<2x32xf32>
    %354 = math.tanh %353 : vector<2x32xf32>
    %355 = arith.mulf %350, %354 : vector<2x32xf32>
    %356 = vector.extract_strided_slice %6 {offsets = [12, 0], sizes = [2, 128], strides = [1, 1]} : vector<16x128xf32> to vector<2x128xf32>
    %cst_69 = arith.constant dense<0.000000e+00> : vector<2x128xf32>
    %357 = tpu.matmul %326, %7, %cst_69 {dimension_numbers = #tpu.dot_dimension_numbers<[1], [0], [0], [1], [0, 0, 1, 1], [], []>} : vector<2x32xf32>, vector<32x128xf32>, vector<2x128xf32> -> vector<2x128xf32>
    %358 = arith.addf %356, %357 : vector<2x128xf32>
    %359 = vector.extract_strided_slice %358 {offsets = [0, 0], sizes = [2, 32], strides = [1, 1]} : vector<2x128xf32> to vector<2x32xf32>
    %360 = arith.negf %359 : vector<2x32xf32>
    %361 = math.exp %360 : vector<2x32xf32>
    %cst_70 = arith.constant 1.000000e+00 : f32
    %362 = vector.broadcast %cst_70 : f32 to vector<2x32xf32>
    %363 = arith.addf %362, %361 : vector<2x32xf32>
    %364 = arith.divf %362, %363 : vector<2x32xf32>
    %365 = vector.extract_strided_slice %358 {offsets = [0, 32], sizes = [2, 32], strides = [1, 1]} : vector<2x128xf32> to vector<2x32xf32>
    %366 = arith.negf %365 : vector<2x32xf32>
    %367 = math.exp %366 : vector<2x32xf32>
    %cst_71 = arith.constant 1.000000e+00 : f32
    %368 = vector.broadcast %cst_71 : f32 to vector<2x32xf32>
    %369 = arith.addf %368, %367 : vector<2x32xf32>
    %370 = arith.divf %368, %369 : vector<2x32xf32>
    %371 = vector.extract_strided_slice %358 {offsets = [0, 64], sizes = [2, 32], strides = [1, 1]} : vector<2x128xf32> to vector<2x32xf32>
    %372 = math.tanh %371 : vector<2x32xf32>
    %373 = vector.extract_strided_slice %358 {offsets = [0, 96], sizes = [2, 32], strides = [1, 1]} : vector<2x128xf32> to vector<2x32xf32>
    %374 = arith.negf %373 : vector<2x32xf32>
    %375 = math.exp %374 : vector<2x32xf32>
    %cst_72 = arith.constant 1.000000e+00 : f32
    %376 = vector.broadcast %cst_72 : f32 to vector<2x32xf32>
    %377 = arith.addf %376, %375 : vector<2x32xf32>
    %378 = arith.divf %376, %377 : vector<2x32xf32>
    %379 = arith.mulf %370, %324 : vector<2x32xf32>
    %380 = arith.mulf %364, %372 : vector<2x32xf32>
    %381 = arith.addf %379, %380 : vector<2x32xf32>
    %382 = math.tanh %381 : vector<2x32xf32>
    %383 = arith.mulf %378, %382 : vector<2x32xf32>
    %cst_73 = arith.constant dense<0.000000e+00> : vector<2x128xf32>
    %384 = tpu.matmul %383, %8, %cst_73 {dimension_numbers = #tpu.dot_dimension_numbers<[1], [0], [0], [1], [0, 0, 1, 1], [], []>} : vector<2x32xf32>, vector<32x128xf32>, vector<2x128xf32> -> vector<2x128xf32>
    %385 = arith.addf %384, %12 : vector<2x128xf32>
    %cst_74 = arith.constant dense<0.000000e+00> : vector<2x128xf32>
    %386 = tpu.matmul %355, %9, %cst_74 {dimension_numbers = #tpu.dot_dimension_numbers<[1], [0], [0], [1], [0, 0, 1, 1], [], []>} : vector<2x32xf32>, vector<32x128xf32>, vector<2x128xf32> -> vector<2x128xf32>
    %387 = arith.addf %385, %386 : vector<2x128xf32>
    %388 = vector.extract_strided_slice %387 {offsets = [0, 0], sizes = [2, 32], strides = [1, 1]} : vector<2x128xf32> to vector<2x32xf32>
    %389 = arith.negf %388 : vector<2x32xf32>
    %390 = math.exp %389 : vector<2x32xf32>
    %cst_75 = arith.constant 1.000000e+00 : f32
    %391 = vector.broadcast %cst_75 : f32 to vector<2x32xf32>
    %392 = arith.addf %391, %390 : vector<2x32xf32>
    %393 = arith.divf %391, %392 : vector<2x32xf32>
    %394 = vector.extract_strided_slice %387 {offsets = [0, 32], sizes = [2, 32], strides = [1, 1]} : vector<2x128xf32> to vector<2x32xf32>
    %395 = arith.negf %394 : vector<2x32xf32>
    %396 = math.exp %395 : vector<2x32xf32>
    %cst_76 = arith.constant 1.000000e+00 : f32
    %397 = vector.broadcast %cst_76 : f32 to vector<2x32xf32>
    %398 = arith.addf %397, %396 : vector<2x32xf32>
    %399 = arith.divf %397, %398 : vector<2x32xf32>
    %400 = vector.extract_strided_slice %387 {offsets = [0, 64], sizes = [2, 32], strides = [1, 1]} : vector<2x128xf32> to vector<2x32xf32>
    %401 = math.tanh %400 : vector<2x32xf32>
    %402 = vector.extract_strided_slice %387 {offsets = [0, 96], sizes = [2, 32], strides = [1, 1]} : vector<2x128xf32> to vector<2x32xf32>
    %403 = arith.negf %402 : vector<2x32xf32>
    %404 = math.exp %403 : vector<2x32xf32>
    %cst_77 = arith.constant 1.000000e+00 : f32
    %405 = vector.broadcast %cst_77 : f32 to vector<2x32xf32>
    %406 = arith.addf %405, %404 : vector<2x32xf32>
    %407 = arith.divf %405, %406 : vector<2x32xf32>
    %408 = arith.mulf %399, %353 : vector<2x32xf32>
    %409 = arith.mulf %393, %401 : vector<2x32xf32>
    %410 = arith.addf %408, %409 : vector<2x32xf32>
    %411 = math.tanh %410 : vector<2x32xf32>
    %412 = arith.mulf %407, %411 : vector<2x32xf32>
    %413 = vector.extract_strided_slice %6 {offsets = [14, 0], sizes = [2, 128], strides = [1, 1]} : vector<16x128xf32> to vector<2x128xf32>
    %cst_78 = arith.constant dense<0.000000e+00> : vector<2x128xf32>
    %414 = tpu.matmul %383, %7, %cst_78 {dimension_numbers = #tpu.dot_dimension_numbers<[1], [0], [0], [1], [0, 0, 1, 1], [], []>} : vector<2x32xf32>, vector<32x128xf32>, vector<2x128xf32> -> vector<2x128xf32>
    %415 = arith.addf %413, %414 : vector<2x128xf32>
    %416 = vector.extract_strided_slice %415 {offsets = [0, 0], sizes = [2, 32], strides = [1, 1]} : vector<2x128xf32> to vector<2x32xf32>
    %417 = arith.negf %416 : vector<2x32xf32>
    %418 = math.exp %417 : vector<2x32xf32>
    %cst_79 = arith.constant 1.000000e+00 : f32
    %419 = vector.broadcast %cst_79 : f32 to vector<2x32xf32>
    %420 = arith.addf %419, %418 : vector<2x32xf32>
    %421 = arith.divf %419, %420 : vector<2x32xf32>
    %422 = vector.extract_strided_slice %415 {offsets = [0, 32], sizes = [2, 32], strides = [1, 1]} : vector<2x128xf32> to vector<2x32xf32>
    %423 = arith.negf %422 : vector<2x32xf32>
    %424 = math.exp %423 : vector<2x32xf32>
    %cst_80 = arith.constant 1.000000e+00 : f32
    %425 = vector.broadcast %cst_80 : f32 to vector<2x32xf32>
    %426 = arith.addf %425, %424 : vector<2x32xf32>
    %427 = arith.divf %425, %426 : vector<2x32xf32>
    %428 = vector.extract_strided_slice %415 {offsets = [0, 64], sizes = [2, 32], strides = [1, 1]} : vector<2x128xf32> to vector<2x32xf32>
    %429 = math.tanh %428 : vector<2x32xf32>
    %430 = vector.extract_strided_slice %415 {offsets = [0, 96], sizes = [2, 32], strides = [1, 1]} : vector<2x128xf32> to vector<2x32xf32>
    %431 = arith.negf %430 : vector<2x32xf32>
    %432 = math.exp %431 : vector<2x32xf32>
    %cst_81 = arith.constant 1.000000e+00 : f32
    %433 = vector.broadcast %cst_81 : f32 to vector<2x32xf32>
    %434 = arith.addf %433, %432 : vector<2x32xf32>
    %435 = arith.divf %433, %434 : vector<2x32xf32>
    %436 = arith.mulf %427, %381 : vector<2x32xf32>
    %437 = arith.mulf %421, %429 : vector<2x32xf32>
    %438 = arith.addf %436, %437 : vector<2x32xf32>
    %439 = math.tanh %438 : vector<2x32xf32>
    %440 = arith.mulf %435, %439 : vector<2x32xf32>
    %cst_82 = arith.constant dense<0.000000e+00> : vector<2x128xf32>
    %441 = tpu.matmul %440, %8, %cst_82 {dimension_numbers = #tpu.dot_dimension_numbers<[1], [0], [0], [1], [0, 0, 1, 1], [], []>} : vector<2x32xf32>, vector<32x128xf32>, vector<2x128xf32> -> vector<2x128xf32>
    %442 = arith.addf %441, %12 : vector<2x128xf32>
    %cst_83 = arith.constant dense<0.000000e+00> : vector<2x128xf32>
    %443 = tpu.matmul %412, %9, %cst_83 {dimension_numbers = #tpu.dot_dimension_numbers<[1], [0], [0], [1], [0, 0, 1, 1], [], []>} : vector<2x32xf32>, vector<32x128xf32>, vector<2x128xf32> -> vector<2x128xf32>
    %444 = arith.addf %442, %443 : vector<2x128xf32>
    %445 = vector.extract_strided_slice %444 {offsets = [0, 0], sizes = [2, 32], strides = [1, 1]} : vector<2x128xf32> to vector<2x32xf32>
    %446 = arith.negf %445 : vector<2x32xf32>
    %447 = math.exp %446 : vector<2x32xf32>
    %cst_84 = arith.constant 1.000000e+00 : f32
    %448 = vector.broadcast %cst_84 : f32 to vector<2x32xf32>
    %449 = arith.addf %448, %447 : vector<2x32xf32>
    %450 = arith.divf %448, %449 : vector<2x32xf32>
    %451 = vector.extract_strided_slice %444 {offsets = [0, 32], sizes = [2, 32], strides = [1, 1]} : vector<2x128xf32> to vector<2x32xf32>
    %452 = arith.negf %451 : vector<2x32xf32>
    %453 = math.exp %452 : vector<2x32xf32>
    %cst_85 = arith.constant 1.000000e+00 : f32
    %454 = vector.broadcast %cst_85 : f32 to vector<2x32xf32>
    %455 = arith.addf %454, %453 : vector<2x32xf32>
    %456 = arith.divf %454, %455 : vector<2x32xf32>
    %457 = vector.extract_strided_slice %444 {offsets = [0, 64], sizes = [2, 32], strides = [1, 1]} : vector<2x128xf32> to vector<2x32xf32>
    %458 = math.tanh %457 : vector<2x32xf32>
    %459 = vector.extract_strided_slice %444 {offsets = [0, 96], sizes = [2, 32], strides = [1, 1]} : vector<2x128xf32> to vector<2x32xf32>
    %460 = arith.negf %459 : vector<2x32xf32>
    %461 = math.exp %460 : vector<2x32xf32>
    %cst_86 = arith.constant 1.000000e+00 : f32
    %462 = vector.broadcast %cst_86 : f32 to vector<2x32xf32>
    %463 = arith.addf %462, %461 : vector<2x32xf32>
    %464 = arith.divf %462, %463 : vector<2x32xf32>
    %465 = arith.mulf %456, %410 : vector<2x32xf32>
    %466 = arith.mulf %450, %458 : vector<2x32xf32>
    %467 = arith.addf %465, %466 : vector<2x32xf32>
    %468 = math.tanh %467 : vector<2x32xf32>
    %469 = arith.mulf %464, %468 : vector<2x32xf32>
    %c0_87 = arith.constant 0 : index
    %c0_88 = arith.constant 0 : index
    %470 = vector.load %arg7[%c0_87, %c0_88] : memref<64x64xf32, #tpu.memory_space<vmem>>, vector<64x64xf32>
    %471 = vector.extract_strided_slice %470 {offsets = [0, 0], sizes = [32, 64], strides = [1, 1]} : vector<64x64xf32> to vector<32x64xf32>
    %cst_89 = arith.constant dense<0.000000e+00> : vector<2x64xf32>
    %472 = tpu.matmul %440, %471, %cst_89 {dimension_numbers = #tpu.dot_dimension_numbers<[1], [0], [0], [1], [0, 0, 1, 1], [], []>} : vector<2x32xf32>, vector<32x64xf32>, vector<2x64xf32> -> vector<2x64xf32>
    %473 = vector.extract_strided_slice %470 {offsets = [32, 0], sizes = [32, 64], strides = [1, 1]} : vector<64x64xf32> to vector<32x64xf32>
    %cst_90 = arith.constant dense<0.000000e+00> : vector<2x64xf32>
    %474 = tpu.matmul %469, %473, %cst_90 {dimension_numbers = #tpu.dot_dimension_numbers<[1], [0], [0], [1], [0, 0, 1, 1], [], []>} : vector<2x32xf32>, vector<32x64xf32>, vector<2x64xf32> -> vector<2x64xf32>
    %475 = arith.addf %472, %474 : vector<2x64xf32>
    %c0_91 = arith.constant 0 : index
    %c0_92 = arith.constant 0 : index
    %476 = vector.load %arg8[%c0_91, %c0_92] : memref<1x64xf32, #tpu.memory_space<vmem>>, vector<1x64xf32>
    %477 = vector.broadcast %476 : vector<1x64xf32> to vector<2x64xf32>
    %478 = arith.addf %475, %477 : vector<2x64xf32>
    %479 = vector.extract_strided_slice %478 {offsets = [0, 0], sizes = [2, 32], strides = [1, 1]} : vector<2x64xf32> to vector<2x32xf32>
    %c0_93 = arith.constant 0 : index
    %c0_94 = arith.constant 0 : index
    %c0_95 = arith.constant 0 : index
    %480 = vector.load %arg9[%c0_93, %c0_94, %c0_95] : memref<2x2x32xf32, #tpu.memory_space<vmem>>, vector<1x2x32xf32>
    %481 = vector.shape_cast %480 : vector<1x2x32xf32> to vector<2x32xf32>
    %482 = vector.shape_cast %479 : vector<2x32xf32> to vector<1x2x32xf32>
    tpu.vector_store %arg9[%c0_93, %c0_94, %c0_95], %482 {strides = array<i32>} : memref<2x2x32xf32, #tpu.memory_space<vmem>>, vector<1x2x32xf32>,
    %483 = vector.extract_strided_slice %478 {offsets = [0, 32], sizes = [2, 32], strides = [1, 1]} : vector<2x64xf32> to vector<2x32xf32>
    %c1 = arith.constant 1 : index
    %c0_96 = arith.constant 0 : index
    %c0_97 = arith.constant 0 : index
    %484 = vector.load %arg9[%c1, %c0_96, %c0_97] : memref<2x2x32xf32, #tpu.memory_space<vmem>>, vector<1x2x32xf32>
    %485 = vector.shape_cast %484 : vector<1x2x32xf32> to vector<2x32xf32>
    %486 = vector.shape_cast %483 : vector<2x32xf32> to vector<1x2x32xf32>
    tpu.vector_store %arg9[%c1, %c0_96, %c0_97], %486 {strides = array<i32>} : memref<2x2x32xf32, #tpu.memory_space<vmem>>, vector<1x2x32xf32>,
    return
  }
}

module attributes {stable_mosaic.version = 11 : i64} {
  func.func @_decoder_kernel(%arg0: memref<8x2x16xf32, #tpu.memory_space<vmem>>, %arg1: memref<2x2x32xf32, #tpu.memory_space<vmem>>, %arg2: memref<16x128xf32, #tpu.memory_space<vmem>>, %arg3: memref<32x128xf32, #tpu.memory_space<vmem>>, %arg4: memref<1x128xf32, #tpu.memory_space<vmem>>, %arg5: memref<32x128xf32, #tpu.memory_space<vmem>>, %arg6: memref<32x128xf32, #tpu.memory_space<vmem>>, %arg7: memref<1x128xf32, #tpu.memory_space<vmem>>, %arg8: memref<32x16xf32, #tpu.memory_space<vmem>>, %arg9: memref<1x16xf32, #tpu.memory_space<vmem>>, %arg10: memref<8x2x16xf32, #tpu.memory_space<vmem>>) attributes {dimension_semantics = [], scalar_prefetch = 0 : i64, scratch_operands = 0 : i64, tpu.core_type = #tpu.core_type<tc>} {
    %c0 = arith.constant 0 : index
    %c0_0 = arith.constant 0 : index
    %c0_1 = arith.constant 0 : index
    %0 = vector.load %arg0[%c0, %c0_0, %c0_1] : memref<8x2x16xf32, #tpu.memory_space<vmem>>, vector<8x2x16xf32>
    %1 = vector.shape_cast %0 : vector<8x2x16xf32> to vector<16x16xf32>
    %c0_2 = arith.constant 0 : index
    %c0_3 = arith.constant 0 : index
    %2 = vector.load %arg2[%c0_2, %c0_3] : memref<16x128xf32, #tpu.memory_space<vmem>>, vector<16x128xf32>
    %cst = arith.constant dense<0.000000e+00> : vector<16x128xf32>
    %3 = tpu.matmul %1, %2, %cst {dimension_numbers = #tpu.dot_dimension_numbers<[1], [0], [0], [1], [0, 0, 1, 1], [], []>} : vector<16x16xf32>, vector<16x128xf32>, vector<16x128xf32> -> vector<16x128xf32>
    %c0_4 = arith.constant 0 : index
    %c0_5 = arith.constant 0 : index
    %4 = vector.load %arg4[%c0_4, %c0_5] : memref<1x128xf32, #tpu.memory_space<vmem>>, vector<1x128xf32>
    %5 = vector.broadcast %4 : vector<1x128xf32> to vector<16x128xf32>
    %6 = arith.addf %3, %5 : vector<16x128xf32>
    %c0_6 = arith.constant 0 : index
    %c0_7 = arith.constant 0 : index
    %7 = vector.load %arg3[%c0_6, %c0_7] : memref<32x128xf32, #tpu.memory_space<vmem>>, vector<32x128xf32>
    %c0_8 = arith.constant 0 : index
    %c0_9 = arith.constant 0 : index
    %8 = vector.load %arg5[%c0_8, %c0_9] : memref<32x128xf32, #tpu.memory_space<vmem>>, vector<32x128xf32>
    %c0_10 = arith.constant 0 : index
    %c0_11 = arith.constant 0 : index
    %9 = vector.load %arg6[%c0_10, %c0_11] : memref<32x128xf32, #tpu.memory_space<vmem>>, vector<32x128xf32>
    %c0_12 = arith.constant 0 : index
    %c0_13 = arith.constant 0 : index
    %10 = vector.load %arg7[%c0_12, %c0_13] : memref<1x128xf32, #tpu.memory_space<vmem>>, vector<1x128xf32>
    %11 = vector.shape_cast %10 : vector<1x128xf32> to vector<1x128xf32>
    %12 = vector.broadcast %11 : vector<1x128xf32> to vector<2x128xf32>
    %c0_14 = arith.constant 0 : index
    %c0_15 = arith.constant 0 : index
    %13 = vector.load %arg8[%c0_14, %c0_15] : memref<32x16xf32, #tpu.memory_space<vmem>>, vector<32x16xf32>
    %c0_16 = arith.constant 0 : index
    %c0_17 = arith.constant 0 : index
    %14 = vector.load %arg9[%c0_16, %c0_17] : memref<1x16xf32, #tpu.memory_space<vmem>>, vector<1x16xf32>
    %15 = vector.shape_cast %14 : vector<1x16xf32> to vector<1x16xf32>
    %16 = vector.broadcast %15 : vector<1x16xf32> to vector<2x16xf32>
    %cst_18 = arith.constant 0.000000e+00 : f32
    %17 = vector.broadcast %cst_18 : f32 to vector<2x32xf32>
    %c0_19 = arith.constant 0 : index
    %c0_20 = arith.constant 0 : index
    %c0_21 = arith.constant 0 : index
    %18 = vector.load %arg1[%c0_19, %c0_20, %c0_21] : memref<2x2x32xf32, #tpu.memory_space<vmem>>, vector<1x2x32xf32>
    %19 = vector.shape_cast %18 : vector<1x2x32xf32> to vector<2x32xf32>
    %c1 = arith.constant 1 : index
    %c0_22 = arith.constant 0 : index
    %c0_23 = arith.constant 0 : index
    %20 = vector.load %arg1[%c1, %c0_22, %c0_23] : memref<2x2x32xf32, #tpu.memory_space<vmem>>, vector<1x2x32xf32>
    %21 = vector.shape_cast %20 : vector<1x2x32xf32> to vector<2x32xf32>
    %22 = vector.extract_strided_slice %6 {offsets = [0, 0], sizes = [2, 128], strides = [1, 1]} : vector<16x128xf32> to vector<2x128xf32>
    %cst_24 = arith.constant dense<0.000000e+00> : vector<2x128xf32>
    %23 = tpu.matmul %19, %7, %cst_24 {dimension_numbers = #tpu.dot_dimension_numbers<[1], [0], [0], [1], [0, 0, 1, 1], [], []>} : vector<2x32xf32>, vector<32x128xf32>, vector<2x128xf32> -> vector<2x128xf32>
    %24 = arith.addf %22, %23 : vector<2x128xf32>
    %25 = vector.extract_strided_slice %24 {offsets = [0, 0], sizes = [2, 32], strides = [1, 1]} : vector<2x128xf32> to vector<2x32xf32>
    %26 = arith.negf %25 : vector<2x32xf32>
    %27 = math.exp %26 : vector<2x32xf32>
    %cst_25 = arith.constant 1.000000e+00 : f32
    %28 = vector.broadcast %cst_25 : f32 to vector<2x32xf32>
    %29 = arith.addf %28, %27 : vector<2x32xf32>
    %30 = arith.divf %28, %29 : vector<2x32xf32>
    %31 = vector.extract_strided_slice %24 {offsets = [0, 32], sizes = [2, 32], strides = [1, 1]} : vector<2x128xf32> to vector<2x32xf32>
    %32 = arith.negf %31 : vector<2x32xf32>
    %33 = math.exp %32 : vector<2x32xf32>
    %cst_26 = arith.constant 1.000000e+00 : f32
    %34 = vector.broadcast %cst_26 : f32 to vector<2x32xf32>
    %35 = arith.addf %34, %33 : vector<2x32xf32>
    %36 = arith.divf %34, %35 : vector<2x32xf32>
    %37 = vector.extract_strided_slice %24 {offsets = [0, 64], sizes = [2, 32], strides = [1, 1]} : vector<2x128xf32> to vector<2x32xf32>
    %38 = math.tanh %37 : vector<2x32xf32>
    %39 = vector.extract_strided_slice %24 {offsets = [0, 96], sizes = [2, 32], strides = [1, 1]} : vector<2x128xf32> to vector<2x32xf32>
    %40 = arith.negf %39 : vector<2x32xf32>
    %41 = math.exp %40 : vector<2x32xf32>
    %cst_27 = arith.constant 1.000000e+00 : f32
    %42 = vector.broadcast %cst_27 : f32 to vector<2x32xf32>
    %43 = arith.addf %42, %41 : vector<2x32xf32>
    %44 = arith.divf %42, %43 : vector<2x32xf32>
    %45 = arith.mulf %36, %17 : vector<2x32xf32>
    %46 = arith.mulf %30, %38 : vector<2x32xf32>
    %47 = arith.addf %45, %46 : vector<2x32xf32>
    %48 = math.tanh %47 : vector<2x32xf32>
    %49 = arith.mulf %44, %48 : vector<2x32xf32>
    %cst_28 = arith.constant dense<0.000000e+00> : vector<2x128xf32>
    %50 = tpu.matmul %49, %8, %cst_28 {dimension_numbers = #tpu.dot_dimension_numbers<[1], [0], [0], [1], [0, 0, 1, 1], [], []>} : vector<2x32xf32>, vector<32x128xf32>, vector<2x128xf32> -> vector<2x128xf32>
    %51 = arith.addf %50, %12 : vector<2x128xf32>
    %cst_29 = arith.constant dense<0.000000e+00> : vector<2x128xf32>
    %52 = tpu.matmul %21, %9, %cst_29 {dimension_numbers = #tpu.dot_dimension_numbers<[1], [0], [0], [1], [0, 0, 1, 1], [], []>} : vector<2x32xf32>, vector<32x128xf32>, vector<2x128xf32> -> vector<2x128xf32>
    %53 = arith.addf %51, %52 : vector<2x128xf32>
    %54 = vector.extract_strided_slice %53 {offsets = [0, 0], sizes = [2, 32], strides = [1, 1]} : vector<2x128xf32> to vector<2x32xf32>
    %55 = arith.negf %54 : vector<2x32xf32>
    %56 = math.exp %55 : vector<2x32xf32>
    %cst_30 = arith.constant 1.000000e+00 : f32
    %57 = vector.broadcast %cst_30 : f32 to vector<2x32xf32>
    %58 = arith.addf %57, %56 : vector<2x32xf32>
    %59 = arith.divf %57, %58 : vector<2x32xf32>
    %60 = vector.extract_strided_slice %53 {offsets = [0, 32], sizes = [2, 32], strides = [1, 1]} : vector<2x128xf32> to vector<2x32xf32>
    %61 = arith.negf %60 : vector<2x32xf32>
    %62 = math.exp %61 : vector<2x32xf32>
    %cst_31 = arith.constant 1.000000e+00 : f32
    %63 = vector.broadcast %cst_31 : f32 to vector<2x32xf32>
    %64 = arith.addf %63, %62 : vector<2x32xf32>
    %65 = arith.divf %63, %64 : vector<2x32xf32>
    %66 = vector.extract_strided_slice %53 {offsets = [0, 64], sizes = [2, 32], strides = [1, 1]} : vector<2x128xf32> to vector<2x32xf32>
    %67 = math.tanh %66 : vector<2x32xf32>
    %68 = vector.extract_strided_slice %53 {offsets = [0, 96], sizes = [2, 32], strides = [1, 1]} : vector<2x128xf32> to vector<2x32xf32>
    %69 = arith.negf %68 : vector<2x32xf32>
    %70 = math.exp %69 : vector<2x32xf32>
    %cst_32 = arith.constant 1.000000e+00 : f32
    %71 = vector.broadcast %cst_32 : f32 to vector<2x32xf32>
    %72 = arith.addf %71, %70 : vector<2x32xf32>
    %73 = arith.divf %71, %72 : vector<2x32xf32>
    %74 = arith.mulf %65, %17 : vector<2x32xf32>
    %75 = arith.mulf %59, %67 : vector<2x32xf32>
    %76 = arith.addf %74, %75 : vector<2x32xf32>
    %77 = math.tanh %76 : vector<2x32xf32>
    %78 = arith.mulf %73, %77 : vector<2x32xf32>
    %cst_33 = arith.constant dense<0.000000e+00> : vector<2x16xf32>
    %79 = tpu.matmul %78, %13, %cst_33 {dimension_numbers = #tpu.dot_dimension_numbers<[1], [0], [0], [1], [0, 0, 1, 1], [], []>} : vector<2x32xf32>, vector<32x16xf32>, vector<2x16xf32> -> vector<2x16xf32>
    %80 = arith.addf %79, %16 : vector<2x16xf32>
    %c0_34 = arith.constant 0 : index
    %c0_35 = arith.constant 0 : index
    %c0_36 = arith.constant 0 : index
    %81 = vector.load %arg10[%c0_34, %c0_35, %c0_36] : memref<8x2x16xf32, #tpu.memory_space<vmem>>, vector<1x2x16xf32>
    %82 = vector.shape_cast %81 : vector<1x2x16xf32> to vector<2x16xf32>
    %83 = vector.shape_cast %80 : vector<2x16xf32> to vector<1x2x16xf32>
    tpu.vector_store %arg10[%c0_34, %c0_35, %c0_36], %83 {strides = array<i32>} : memref<8x2x16xf32, #tpu.memory_space<vmem>>, vector<1x2x16xf32>,
    %84 = vector.extract_strided_slice %6 {offsets = [2, 0], sizes = [2, 128], strides = [1, 1]} : vector<16x128xf32> to vector<2x128xf32>
    %cst_37 = arith.constant dense<0.000000e+00> : vector<2x128xf32>
    %85 = tpu.matmul %49, %7, %cst_37 {dimension_numbers = #tpu.dot_dimension_numbers<[1], [0], [0], [1], [0, 0, 1, 1], [], []>} : vector<2x32xf32>, vector<32x128xf32>, vector<2x128xf32> -> vector<2x128xf32>
    %86 = arith.addf %84, %85 : vector<2x128xf32>
    %87 = vector.extract_strided_slice %86 {offsets = [0, 0], sizes = [2, 32], strides = [1, 1]} : vector<2x128xf32> to vector<2x32xf32>
    %88 = arith.negf %87 : vector<2x32xf32>
    %89 = math.exp %88 : vector<2x32xf32>
    %cst_38 = arith.constant 1.000000e+00 : f32
    %90 = vector.broadcast %cst_38 : f32 to vector<2x32xf32>
    %91 = arith.addf %90, %89 : vector<2x32xf32>
    %92 = arith.divf %90, %91 : vector<2x32xf32>
    %93 = vector.extract_strided_slice %86 {offsets = [0, 32], sizes = [2, 32], strides = [1, 1]} : vector<2x128xf32> to vector<2x32xf32>
    %94 = arith.negf %93 : vector<2x32xf32>
    %95 = math.exp %94 : vector<2x32xf32>
    %cst_39 = arith.constant 1.000000e+00 : f32
    %96 = vector.broadcast %cst_39 : f32 to vector<2x32xf32>
    %97 = arith.addf %96, %95 : vector<2x32xf32>
    %98 = arith.divf %96, %97 : vector<2x32xf32>
    %99 = vector.extract_strided_slice %86 {offsets = [0, 64], sizes = [2, 32], strides = [1, 1]} : vector<2x128xf32> to vector<2x32xf32>
    %100 = math.tanh %99 : vector<2x32xf32>
    %101 = vector.extract_strided_slice %86 {offsets = [0, 96], sizes = [2, 32], strides = [1, 1]} : vector<2x128xf32> to vector<2x32xf32>
    %102 = arith.negf %101 : vector<2x32xf32>
    %103 = math.exp %102 : vector<2x32xf32>
    %cst_40 = arith.constant 1.000000e+00 : f32
    %104 = vector.broadcast %cst_40 : f32 to vector<2x32xf32>
    %105 = arith.addf %104, %103 : vector<2x32xf32>
    %106 = arith.divf %104, %105 : vector<2x32xf32>
    %107 = arith.mulf %98, %47 : vector<2x32xf32>
    %108 = arith.mulf %92, %100 : vector<2x32xf32>
    %109 = arith.addf %107, %108 : vector<2x32xf32>
    %110 = math.tanh %109 : vector<2x32xf32>
    %111 = arith.mulf %106, %110 : vector<2x32xf32>
    %cst_41 = arith.constant dense<0.000000e+00> : vector<2x128xf32>
    %112 = tpu.matmul %111, %8, %cst_41 {dimension_numbers = #tpu.dot_dimension_numbers<[1], [0], [0], [1], [0, 0, 1, 1], [], []>} : vector<2x32xf32>, vector<32x128xf32>, vector<2x128xf32> -> vector<2x128xf32>
    %113 = arith.addf %112, %12 : vector<2x128xf32>
    %cst_42 = arith.constant dense<0.000000e+00> : vector<2x128xf32>
    %114 = tpu.matmul %78, %9, %cst_42 {dimension_numbers = #tpu.dot_dimension_numbers<[1], [0], [0], [1], [0, 0, 1, 1], [], []>} : vector<2x32xf32>, vector<32x128xf32>, vector<2x128xf32> -> vector<2x128xf32>
    %115 = arith.addf %113, %114 : vector<2x128xf32>
    %116 = vector.extract_strided_slice %115 {offsets = [0, 0], sizes = [2, 32], strides = [1, 1]} : vector<2x128xf32> to vector<2x32xf32>
    %117 = arith.negf %116 : vector<2x32xf32>
    %118 = math.exp %117 : vector<2x32xf32>
    %cst_43 = arith.constant 1.000000e+00 : f32
    %119 = vector.broadcast %cst_43 : f32 to vector<2x32xf32>
    %120 = arith.addf %119, %118 : vector<2x32xf32>
    %121 = arith.divf %119, %120 : vector<2x32xf32>
    %122 = vector.extract_strided_slice %115 {offsets = [0, 32], sizes = [2, 32], strides = [1, 1]} : vector<2x128xf32> to vector<2x32xf32>
    %123 = arith.negf %122 : vector<2x32xf32>
    %124 = math.exp %123 : vector<2x32xf32>
    %cst_44 = arith.constant 1.000000e+00 : f32
    %125 = vector.broadcast %cst_44 : f32 to vector<2x32xf32>
    %126 = arith.addf %125, %124 : vector<2x32xf32>
    %127 = arith.divf %125, %126 : vector<2x32xf32>
    %128 = vector.extract_strided_slice %115 {offsets = [0, 64], sizes = [2, 32], strides = [1, 1]} : vector<2x128xf32> to vector<2x32xf32>
    %129 = math.tanh %128 : vector<2x32xf32>
    %130 = vector.extract_strided_slice %115 {offsets = [0, 96], sizes = [2, 32], strides = [1, 1]} : vector<2x128xf32> to vector<2x32xf32>
    %131 = arith.negf %130 : vector<2x32xf32>
    %132 = math.exp %131 : vector<2x32xf32>
    %cst_45 = arith.constant 1.000000e+00 : f32
    %133 = vector.broadcast %cst_45 : f32 to vector<2x32xf32>
    %134 = arith.addf %133, %132 : vector<2x32xf32>
    %135 = arith.divf %133, %134 : vector<2x32xf32>
    %136 = arith.mulf %127, %76 : vector<2x32xf32>
    %137 = arith.mulf %121, %129 : vector<2x32xf32>
    %138 = arith.addf %136, %137 : vector<2x32xf32>
    %139 = math.tanh %138 : vector<2x32xf32>
    %140 = arith.mulf %135, %139 : vector<2x32xf32>
    %cst_46 = arith.constant dense<0.000000e+00> : vector<2x16xf32>
    %141 = tpu.matmul %140, %13, %cst_46 {dimension_numbers = #tpu.dot_dimension_numbers<[1], [0], [0], [1], [0, 0, 1, 1], [], []>} : vector<2x32xf32>, vector<32x16xf32>, vector<2x16xf32> -> vector<2x16xf32>
    %142 = arith.addf %141, %16 : vector<2x16xf32>
    %c1_47 = arith.constant 1 : index
    %c0_48 = arith.constant 0 : index
    %c0_49 = arith.constant 0 : index
    %143 = vector.load %arg10[%c1_47, %c0_48, %c0_49] : memref<8x2x16xf32, #tpu.memory_space<vmem>>, vector<1x2x16xf32>
    %144 = vector.shape_cast %143 : vector<1x2x16xf32> to vector<2x16xf32>
    %145 = vector.shape_cast %142 : vector<2x16xf32> to vector<1x2x16xf32>
    tpu.vector_store %arg10[%c1_47, %c0_48, %c0_49], %145 {strides = array<i32>} : memref<8x2x16xf32, #tpu.memory_space<vmem>>, vector<1x2x16xf32>,
    %146 = vector.extract_strided_slice %6 {offsets = [4, 0], sizes = [2, 128], strides = [1, 1]} : vector<16x128xf32> to vector<2x128xf32>
    %cst_50 = arith.constant dense<0.000000e+00> : vector<2x128xf32>
    %147 = tpu.matmul %111, %7, %cst_50 {dimension_numbers = #tpu.dot_dimension_numbers<[1], [0], [0], [1], [0, 0, 1, 1], [], []>} : vector<2x32xf32>, vector<32x128xf32>, vector<2x128xf32> -> vector<2x128xf32>
    %148 = arith.addf %146, %147 : vector<2x128xf32>
    %149 = vector.extract_strided_slice %148 {offsets = [0, 0], sizes = [2, 32], strides = [1, 1]} : vector<2x128xf32> to vector<2x32xf32>
    %150 = arith.negf %149 : vector<2x32xf32>
    %151 = math.exp %150 : vector<2x32xf32>
    %cst_51 = arith.constant 1.000000e+00 : f32
    %152 = vector.broadcast %cst_51 : f32 to vector<2x32xf32>
    %153 = arith.addf %152, %151 : vector<2x32xf32>
    %154 = arith.divf %152, %153 : vector<2x32xf32>
    %155 = vector.extract_strided_slice %148 {offsets = [0, 32], sizes = [2, 32], strides = [1, 1]} : vector<2x128xf32> to vector<2x32xf32>
    %156 = arith.negf %155 : vector<2x32xf32>
    %157 = math.exp %156 : vector<2x32xf32>
    %cst_52 = arith.constant 1.000000e+00 : f32
    %158 = vector.broadcast %cst_52 : f32 to vector<2x32xf32>
    %159 = arith.addf %158, %157 : vector<2x32xf32>
    %160 = arith.divf %158, %159 : vector<2x32xf32>
    %161 = vector.extract_strided_slice %148 {offsets = [0, 64], sizes = [2, 32], strides = [1, 1]} : vector<2x128xf32> to vector<2x32xf32>
    %162 = math.tanh %161 : vector<2x32xf32>
    %163 = vector.extract_strided_slice %148 {offsets = [0, 96], sizes = [2, 32], strides = [1, 1]} : vector<2x128xf32> to vector<2x32xf32>
    %164 = arith.negf %163 : vector<2x32xf32>
    %165 = math.exp %164 : vector<2x32xf32>
    %cst_53 = arith.constant 1.000000e+00 : f32
    %166 = vector.broadcast %cst_53 : f32 to vector<2x32xf32>
    %167 = arith.addf %166, %165 : vector<2x32xf32>
    %168 = arith.divf %166, %167 : vector<2x32xf32>
    %169 = arith.mulf %160, %109 : vector<2x32xf32>
    %170 = arith.mulf %154, %162 : vector<2x32xf32>
    %171 = arith.addf %169, %170 : vector<2x32xf32>
    %172 = math.tanh %171 : vector<2x32xf32>
    %173 = arith.mulf %168, %172 : vector<2x32xf32>
    %cst_54 = arith.constant dense<0.000000e+00> : vector<2x128xf32>
    %174 = tpu.matmul %173, %8, %cst_54 {dimension_numbers = #tpu.dot_dimension_numbers<[1], [0], [0], [1], [0, 0, 1, 1], [], []>} : vector<2x32xf32>, vector<32x128xf32>, vector<2x128xf32> -> vector<2x128xf32>
    %175 = arith.addf %174, %12 : vector<2x128xf32>
    %cst_55 = arith.constant dense<0.000000e+00> : vector<2x128xf32>
    %176 = tpu.matmul %140, %9, %cst_55 {dimension_numbers = #tpu.dot_dimension_numbers<[1], [0], [0], [1], [0, 0, 1, 1], [], []>} : vector<2x32xf32>, vector<32x128xf32>, vector<2x128xf32> -> vector<2x128xf32>
    %177 = arith.addf %175, %176 : vector<2x128xf32>
    %178 = vector.extract_strided_slice %177 {offsets = [0, 0], sizes = [2, 32], strides = [1, 1]} : vector<2x128xf32> to vector<2x32xf32>
    %179 = arith.negf %178 : vector<2x32xf32>
    %180 = math.exp %179 : vector<2x32xf32>
    %cst_56 = arith.constant 1.000000e+00 : f32
    %181 = vector.broadcast %cst_56 : f32 to vector<2x32xf32>
    %182 = arith.addf %181, %180 : vector<2x32xf32>
    %183 = arith.divf %181, %182 : vector<2x32xf32>
    %184 = vector.extract_strided_slice %177 {offsets = [0, 32], sizes = [2, 32], strides = [1, 1]} : vector<2x128xf32> to vector<2x32xf32>
    %185 = arith.negf %184 : vector<2x32xf32>
    %186 = math.exp %185 : vector<2x32xf32>
    %cst_57 = arith.constant 1.000000e+00 : f32
    %187 = vector.broadcast %cst_57 : f32 to vector<2x32xf32>
    %188 = arith.addf %187, %186 : vector<2x32xf32>
    %189 = arith.divf %187, %188 : vector<2x32xf32>
    %190 = vector.extract_strided_slice %177 {offsets = [0, 64], sizes = [2, 32], strides = [1, 1]} : vector<2x128xf32> to vector<2x32xf32>
    %191 = math.tanh %190 : vector<2x32xf32>
    %192 = vector.extract_strided_slice %177 {offsets = [0, 96], sizes = [2, 32], strides = [1, 1]} : vector<2x128xf32> to vector<2x32xf32>
    %193 = arith.negf %192 : vector<2x32xf32>
    %194 = math.exp %193 : vector<2x32xf32>
    %cst_58 = arith.constant 1.000000e+00 : f32
    %195 = vector.broadcast %cst_58 : f32 to vector<2x32xf32>
    %196 = arith.addf %195, %194 : vector<2x32xf32>
    %197 = arith.divf %195, %196 : vector<2x32xf32>
    %198 = arith.mulf %189, %138 : vector<2x32xf32>
    %199 = arith.mulf %183, %191 : vector<2x32xf32>
    %200 = arith.addf %198, %199 : vector<2x32xf32>
    %201 = math.tanh %200 : vector<2x32xf32>
    %202 = arith.mulf %197, %201 : vector<2x32xf32>
    %cst_59 = arith.constant dense<0.000000e+00> : vector<2x16xf32>
    %203 = tpu.matmul %202, %13, %cst_59 {dimension_numbers = #tpu.dot_dimension_numbers<[1], [0], [0], [1], [0, 0, 1, 1], [], []>} : vector<2x32xf32>, vector<32x16xf32>, vector<2x16xf32> -> vector<2x16xf32>
    %204 = arith.addf %203, %16 : vector<2x16xf32>
    %c2 = arith.constant 2 : index
    %c0_60 = arith.constant 0 : index
    %c0_61 = arith.constant 0 : index
    %205 = vector.load %arg10[%c2, %c0_60, %c0_61] : memref<8x2x16xf32, #tpu.memory_space<vmem>>, vector<1x2x16xf32>
    %206 = vector.shape_cast %205 : vector<1x2x16xf32> to vector<2x16xf32>
    %207 = vector.shape_cast %204 : vector<2x16xf32> to vector<1x2x16xf32>
    tpu.vector_store %arg10[%c2, %c0_60, %c0_61], %207 {strides = array<i32>} : memref<8x2x16xf32, #tpu.memory_space<vmem>>, vector<1x2x16xf32>,
    %208 = vector.extract_strided_slice %6 {offsets = [6, 0], sizes = [2, 128], strides = [1, 1]} : vector<16x128xf32> to vector<2x128xf32>
    %cst_62 = arith.constant dense<0.000000e+00> : vector<2x128xf32>
    %209 = tpu.matmul %173, %7, %cst_62 {dimension_numbers = #tpu.dot_dimension_numbers<[1], [0], [0], [1], [0, 0, 1, 1], [], []>} : vector<2x32xf32>, vector<32x128xf32>, vector<2x128xf32> -> vector<2x128xf32>
    %210 = arith.addf %208, %209 : vector<2x128xf32>
    %211 = vector.extract_strided_slice %210 {offsets = [0, 0], sizes = [2, 32], strides = [1, 1]} : vector<2x128xf32> to vector<2x32xf32>
    %212 = arith.negf %211 : vector<2x32xf32>
    %213 = math.exp %212 : vector<2x32xf32>
    %cst_63 = arith.constant 1.000000e+00 : f32
    %214 = vector.broadcast %cst_63 : f32 to vector<2x32xf32>
    %215 = arith.addf %214, %213 : vector<2x32xf32>
    %216 = arith.divf %214, %215 : vector<2x32xf32>
    %217 = vector.extract_strided_slice %210 {offsets = [0, 32], sizes = [2, 32], strides = [1, 1]} : vector<2x128xf32> to vector<2x32xf32>
    %218 = arith.negf %217 : vector<2x32xf32>
    %219 = math.exp %218 : vector<2x32xf32>
    %cst_64 = arith.constant 1.000000e+00 : f32
    %220 = vector.broadcast %cst_64 : f32 to vector<2x32xf32>
    %221 = arith.addf %220, %219 : vector<2x32xf32>
    %222 = arith.divf %220, %221 : vector<2x32xf32>
    %223 = vector.extract_strided_slice %210 {offsets = [0, 64], sizes = [2, 32], strides = [1, 1]} : vector<2x128xf32> to vector<2x32xf32>
    %224 = math.tanh %223 : vector<2x32xf32>
    %225 = vector.extract_strided_slice %210 {offsets = [0, 96], sizes = [2, 32], strides = [1, 1]} : vector<2x128xf32> to vector<2x32xf32>
    %226 = arith.negf %225 : vector<2x32xf32>
    %227 = math.exp %226 : vector<2x32xf32>
    %cst_65 = arith.constant 1.000000e+00 : f32
    %228 = vector.broadcast %cst_65 : f32 to vector<2x32xf32>
    %229 = arith.addf %228, %227 : vector<2x32xf32>
    %230 = arith.divf %228, %229 : vector<2x32xf32>
    %231 = arith.mulf %222, %171 : vector<2x32xf32>
    %232 = arith.mulf %216, %224 : vector<2x32xf32>
    %233 = arith.addf %231, %232 : vector<2x32xf32>
    %234 = math.tanh %233 : vector<2x32xf32>
    %235 = arith.mulf %230, %234 : vector<2x32xf32>
    %cst_66 = arith.constant dense<0.000000e+00> : vector<2x128xf32>
    %236 = tpu.matmul %235, %8, %cst_66 {dimension_numbers = #tpu.dot_dimension_numbers<[1], [0], [0], [1], [0, 0, 1, 1], [], []>} : vector<2x32xf32>, vector<32x128xf32>, vector<2x128xf32> -> vector<2x128xf32>
    %237 = arith.addf %236, %12 : vector<2x128xf32>
    %cst_67 = arith.constant dense<0.000000e+00> : vector<2x128xf32>
    %238 = tpu.matmul %202, %9, %cst_67 {dimension_numbers = #tpu.dot_dimension_numbers<[1], [0], [0], [1], [0, 0, 1, 1], [], []>} : vector<2x32xf32>, vector<32x128xf32>, vector<2x128xf32> -> vector<2x128xf32>
    %239 = arith.addf %237, %238 : vector<2x128xf32>
    %240 = vector.extract_strided_slice %239 {offsets = [0, 0], sizes = [2, 32], strides = [1, 1]} : vector<2x128xf32> to vector<2x32xf32>
    %241 = arith.negf %240 : vector<2x32xf32>
    %242 = math.exp %241 : vector<2x32xf32>
    %cst_68 = arith.constant 1.000000e+00 : f32
    %243 = vector.broadcast %cst_68 : f32 to vector<2x32xf32>
    %244 = arith.addf %243, %242 : vector<2x32xf32>
    %245 = arith.divf %243, %244 : vector<2x32xf32>
    %246 = vector.extract_strided_slice %239 {offsets = [0, 32], sizes = [2, 32], strides = [1, 1]} : vector<2x128xf32> to vector<2x32xf32>
    %247 = arith.negf %246 : vector<2x32xf32>
    %248 = math.exp %247 : vector<2x32xf32>
    %cst_69 = arith.constant 1.000000e+00 : f32
    %249 = vector.broadcast %cst_69 : f32 to vector<2x32xf32>
    %250 = arith.addf %249, %248 : vector<2x32xf32>
    %251 = arith.divf %249, %250 : vector<2x32xf32>
    %252 = vector.extract_strided_slice %239 {offsets = [0, 64], sizes = [2, 32], strides = [1, 1]} : vector<2x128xf32> to vector<2x32xf32>
    %253 = math.tanh %252 : vector<2x32xf32>
    %254 = vector.extract_strided_slice %239 {offsets = [0, 96], sizes = [2, 32], strides = [1, 1]} : vector<2x128xf32> to vector<2x32xf32>
    %255 = arith.negf %254 : vector<2x32xf32>
    %256 = math.exp %255 : vector<2x32xf32>
    %cst_70 = arith.constant 1.000000e+00 : f32
    %257 = vector.broadcast %cst_70 : f32 to vector<2x32xf32>
    %258 = arith.addf %257, %256 : vector<2x32xf32>
    %259 = arith.divf %257, %258 : vector<2x32xf32>
    %260 = arith.mulf %251, %200 : vector<2x32xf32>
    %261 = arith.mulf %245, %253 : vector<2x32xf32>
    %262 = arith.addf %260, %261 : vector<2x32xf32>
    %263 = math.tanh %262 : vector<2x32xf32>
    %264 = arith.mulf %259, %263 : vector<2x32xf32>
    %cst_71 = arith.constant dense<0.000000e+00> : vector<2x16xf32>
    %265 = tpu.matmul %264, %13, %cst_71 {dimension_numbers = #tpu.dot_dimension_numbers<[1], [0], [0], [1], [0, 0, 1, 1], [], []>} : vector<2x32xf32>, vector<32x16xf32>, vector<2x16xf32> -> vector<2x16xf32>
    %266 = arith.addf %265, %16 : vector<2x16xf32>
    %c3 = arith.constant 3 : index
    %c0_72 = arith.constant 0 : index
    %c0_73 = arith.constant 0 : index
    %267 = vector.load %arg10[%c3, %c0_72, %c0_73] : memref<8x2x16xf32, #tpu.memory_space<vmem>>, vector<1x2x16xf32>
    %268 = vector.shape_cast %267 : vector<1x2x16xf32> to vector<2x16xf32>
    %269 = vector.shape_cast %266 : vector<2x16xf32> to vector<1x2x16xf32>
    tpu.vector_store %arg10[%c3, %c0_72, %c0_73], %269 {strides = array<i32>} : memref<8x2x16xf32, #tpu.memory_space<vmem>>, vector<1x2x16xf32>,
    %270 = vector.extract_strided_slice %6 {offsets = [8, 0], sizes = [2, 128], strides = [1, 1]} : vector<16x128xf32> to vector<2x128xf32>
    %cst_74 = arith.constant dense<0.000000e+00> : vector<2x128xf32>
    %271 = tpu.matmul %235, %7, %cst_74 {dimension_numbers = #tpu.dot_dimension_numbers<[1], [0], [0], [1], [0, 0, 1, 1], [], []>} : vector<2x32xf32>, vector<32x128xf32>, vector<2x128xf32> -> vector<2x128xf32>
    %272 = arith.addf %270, %271 : vector<2x128xf32>
    %273 = vector.extract_strided_slice %272 {offsets = [0, 0], sizes = [2, 32], strides = [1, 1]} : vector<2x128xf32> to vector<2x32xf32>
    %274 = arith.negf %273 : vector<2x32xf32>
    %275 = math.exp %274 : vector<2x32xf32>
    %cst_75 = arith.constant 1.000000e+00 : f32
    %276 = vector.broadcast %cst_75 : f32 to vector<2x32xf32>
    %277 = arith.addf %276, %275 : vector<2x32xf32>
    %278 = arith.divf %276, %277 : vector<2x32xf32>
    %279 = vector.extract_strided_slice %272 {offsets = [0, 32], sizes = [2, 32], strides = [1, 1]} : vector<2x128xf32> to vector<2x32xf32>
    %280 = arith.negf %279 : vector<2x32xf32>
    %281 = math.exp %280 : vector<2x32xf32>
    %cst_76 = arith.constant 1.000000e+00 : f32
    %282 = vector.broadcast %cst_76 : f32 to vector<2x32xf32>
    %283 = arith.addf %282, %281 : vector<2x32xf32>
    %284 = arith.divf %282, %283 : vector<2x32xf32>
    %285 = vector.extract_strided_slice %272 {offsets = [0, 64], sizes = [2, 32], strides = [1, 1]} : vector<2x128xf32> to vector<2x32xf32>
    %286 = math.tanh %285 : vector<2x32xf32>
    %287 = vector.extract_strided_slice %272 {offsets = [0, 96], sizes = [2, 32], strides = [1, 1]} : vector<2x128xf32> to vector<2x32xf32>
    %288 = arith.negf %287 : vector<2x32xf32>
    %289 = math.exp %288 : vector<2x32xf32>
    %cst_77 = arith.constant 1.000000e+00 : f32
    %290 = vector.broadcast %cst_77 : f32 to vector<2x32xf32>
    %291 = arith.addf %290, %289 : vector<2x32xf32>
    %292 = arith.divf %290, %291 : vector<2x32xf32>
    %293 = arith.mulf %284, %233 : vector<2x32xf32>
    %294 = arith.mulf %278, %286 : vector<2x32xf32>
    %295 = arith.addf %293, %294 : vector<2x32xf32>
    %296 = math.tanh %295 : vector<2x32xf32>
    %297 = arith.mulf %292, %296 : vector<2x32xf32>
    %cst_78 = arith.constant dense<0.000000e+00> : vector<2x128xf32>
    %298 = tpu.matmul %297, %8, %cst_78 {dimension_numbers = #tpu.dot_dimension_numbers<[1], [0], [0], [1], [0, 0, 1, 1], [], []>} : vector<2x32xf32>, vector<32x128xf32>, vector<2x128xf32> -> vector<2x128xf32>
    %299 = arith.addf %298, %12 : vector<2x128xf32>
    %cst_79 = arith.constant dense<0.000000e+00> : vector<2x128xf32>
    %300 = tpu.matmul %264, %9, %cst_79 {dimension_numbers = #tpu.dot_dimension_numbers<[1], [0], [0], [1], [0, 0, 1, 1], [], []>} : vector<2x32xf32>, vector<32x128xf32>, vector<2x128xf32> -> vector<2x128xf32>
    %301 = arith.addf %299, %300 : vector<2x128xf32>
    %302 = vector.extract_strided_slice %301 {offsets = [0, 0], sizes = [2, 32], strides = [1, 1]} : vector<2x128xf32> to vector<2x32xf32>
    %303 = arith.negf %302 : vector<2x32xf32>
    %304 = math.exp %303 : vector<2x32xf32>
    %cst_80 = arith.constant 1.000000e+00 : f32
    %305 = vector.broadcast %cst_80 : f32 to vector<2x32xf32>
    %306 = arith.addf %305, %304 : vector<2x32xf32>
    %307 = arith.divf %305, %306 : vector<2x32xf32>
    %308 = vector.extract_strided_slice %301 {offsets = [0, 32], sizes = [2, 32], strides = [1, 1]} : vector<2x128xf32> to vector<2x32xf32>
    %309 = arith.negf %308 : vector<2x32xf32>
    %310 = math.exp %309 : vector<2x32xf32>
    %cst_81 = arith.constant 1.000000e+00 : f32
    %311 = vector.broadcast %cst_81 : f32 to vector<2x32xf32>
    %312 = arith.addf %311, %310 : vector<2x32xf32>
    %313 = arith.divf %311, %312 : vector<2x32xf32>
    %314 = vector.extract_strided_slice %301 {offsets = [0, 64], sizes = [2, 32], strides = [1, 1]} : vector<2x128xf32> to vector<2x32xf32>
    %315 = math.tanh %314 : vector<2x32xf32>
    %316 = vector.extract_strided_slice %301 {offsets = [0, 96], sizes = [2, 32], strides = [1, 1]} : vector<2x128xf32> to vector<2x32xf32>
    %317 = arith.negf %316 : vector<2x32xf32>
    %318 = math.exp %317 : vector<2x32xf32>
    %cst_82 = arith.constant 1.000000e+00 : f32
    %319 = vector.broadcast %cst_82 : f32 to vector<2x32xf32>
    %320 = arith.addf %319, %318 : vector<2x32xf32>
    %321 = arith.divf %319, %320 : vector<2x32xf32>
    %322 = arith.mulf %313, %262 : vector<2x32xf32>
    %323 = arith.mulf %307, %315 : vector<2x32xf32>
    %324 = arith.addf %322, %323 : vector<2x32xf32>
    %325 = math.tanh %324 : vector<2x32xf32>
    %326 = arith.mulf %321, %325 : vector<2x32xf32>
    %cst_83 = arith.constant dense<0.000000e+00> : vector<2x16xf32>
    %327 = tpu.matmul %326, %13, %cst_83 {dimension_numbers = #tpu.dot_dimension_numbers<[1], [0], [0], [1], [0, 0, 1, 1], [], []>} : vector<2x32xf32>, vector<32x16xf32>, vector<2x16xf32> -> vector<2x16xf32>
    %328 = arith.addf %327, %16 : vector<2x16xf32>
    %c4 = arith.constant 4 : index
    %c0_84 = arith.constant 0 : index
    %c0_85 = arith.constant 0 : index
    %329 = vector.load %arg10[%c4, %c0_84, %c0_85] : memref<8x2x16xf32, #tpu.memory_space<vmem>>, vector<1x2x16xf32>
    %330 = vector.shape_cast %329 : vector<1x2x16xf32> to vector<2x16xf32>
    %331 = vector.shape_cast %328 : vector<2x16xf32> to vector<1x2x16xf32>
    tpu.vector_store %arg10[%c4, %c0_84, %c0_85], %331 {strides = array<i32>} : memref<8x2x16xf32, #tpu.memory_space<vmem>>, vector<1x2x16xf32>,
    %332 = vector.extract_strided_slice %6 {offsets = [10, 0], sizes = [2, 128], strides = [1, 1]} : vector<16x128xf32> to vector<2x128xf32>
    %cst_86 = arith.constant dense<0.000000e+00> : vector<2x128xf32>
    %333 = tpu.matmul %297, %7, %cst_86 {dimension_numbers = #tpu.dot_dimension_numbers<[1], [0], [0], [1], [0, 0, 1, 1], [], []>} : vector<2x32xf32>, vector<32x128xf32>, vector<2x128xf32> -> vector<2x128xf32>
    %334 = arith.addf %332, %333 : vector<2x128xf32>
    %335 = vector.extract_strided_slice %334 {offsets = [0, 0], sizes = [2, 32], strides = [1, 1]} : vector<2x128xf32> to vector<2x32xf32>
    %336 = arith.negf %335 : vector<2x32xf32>
    %337 = math.exp %336 : vector<2x32xf32>
    %cst_87 = arith.constant 1.000000e+00 : f32
    %338 = vector.broadcast %cst_87 : f32 to vector<2x32xf32>
    %339 = arith.addf %338, %337 : vector<2x32xf32>
    %340 = arith.divf %338, %339 : vector<2x32xf32>
    %341 = vector.extract_strided_slice %334 {offsets = [0, 32], sizes = [2, 32], strides = [1, 1]} : vector<2x128xf32> to vector<2x32xf32>
    %342 = arith.negf %341 : vector<2x32xf32>
    %343 = math.exp %342 : vector<2x32xf32>
    %cst_88 = arith.constant 1.000000e+00 : f32
    %344 = vector.broadcast %cst_88 : f32 to vector<2x32xf32>
    %345 = arith.addf %344, %343 : vector<2x32xf32>
    %346 = arith.divf %344, %345 : vector<2x32xf32>
    %347 = vector.extract_strided_slice %334 {offsets = [0, 64], sizes = [2, 32], strides = [1, 1]} : vector<2x128xf32> to vector<2x32xf32>
    %348 = math.tanh %347 : vector<2x32xf32>
    %349 = vector.extract_strided_slice %334 {offsets = [0, 96], sizes = [2, 32], strides = [1, 1]} : vector<2x128xf32> to vector<2x32xf32>
    %350 = arith.negf %349 : vector<2x32xf32>
    %351 = math.exp %350 : vector<2x32xf32>
    %cst_89 = arith.constant 1.000000e+00 : f32
    %352 = vector.broadcast %cst_89 : f32 to vector<2x32xf32>
    %353 = arith.addf %352, %351 : vector<2x32xf32>
    %354 = arith.divf %352, %353 : vector<2x32xf32>
    %355 = arith.mulf %346, %295 : vector<2x32xf32>
    %356 = arith.mulf %340, %348 : vector<2x32xf32>
    %357 = arith.addf %355, %356 : vector<2x32xf32>
    %358 = math.tanh %357 : vector<2x32xf32>
    %359 = arith.mulf %354, %358 : vector<2x32xf32>
    %cst_90 = arith.constant dense<0.000000e+00> : vector<2x128xf32>
    %360 = tpu.matmul %359, %8, %cst_90 {dimension_numbers = #tpu.dot_dimension_numbers<[1], [0], [0], [1], [0, 0, 1, 1], [], []>} : vector<2x32xf32>, vector<32x128xf32>, vector<2x128xf32> -> vector<2x128xf32>
    %361 = arith.addf %360, %12 : vector<2x128xf32>
    %cst_91 = arith.constant dense<0.000000e+00> : vector<2x128xf32>
    %362 = tpu.matmul %326, %9, %cst_91 {dimension_numbers = #tpu.dot_dimension_numbers<[1], [0], [0], [1], [0, 0, 1, 1], [], []>} : vector<2x32xf32>, vector<32x128xf32>, vector<2x128xf32> -> vector<2x128xf32>
    %363 = arith.addf %361, %362 : vector<2x128xf32>
    %364 = vector.extract_strided_slice %363 {offsets = [0, 0], sizes = [2, 32], strides = [1, 1]} : vector<2x128xf32> to vector<2x32xf32>
    %365 = arith.negf %364 : vector<2x32xf32>
    %366 = math.exp %365 : vector<2x32xf32>
    %cst_92 = arith.constant 1.000000e+00 : f32
    %367 = vector.broadcast %cst_92 : f32 to vector<2x32xf32>
    %368 = arith.addf %367, %366 : vector<2x32xf32>
    %369 = arith.divf %367, %368 : vector<2x32xf32>
    %370 = vector.extract_strided_slice %363 {offsets = [0, 32], sizes = [2, 32], strides = [1, 1]} : vector<2x128xf32> to vector<2x32xf32>
    %371 = arith.negf %370 : vector<2x32xf32>
    %372 = math.exp %371 : vector<2x32xf32>
    %cst_93 = arith.constant 1.000000e+00 : f32
    %373 = vector.broadcast %cst_93 : f32 to vector<2x32xf32>
    %374 = arith.addf %373, %372 : vector<2x32xf32>
    %375 = arith.divf %373, %374 : vector<2x32xf32>
    %376 = vector.extract_strided_slice %363 {offsets = [0, 64], sizes = [2, 32], strides = [1, 1]} : vector<2x128xf32> to vector<2x32xf32>
    %377 = math.tanh %376 : vector<2x32xf32>
    %378 = vector.extract_strided_slice %363 {offsets = [0, 96], sizes = [2, 32], strides = [1, 1]} : vector<2x128xf32> to vector<2x32xf32>
    %379 = arith.negf %378 : vector<2x32xf32>
    %380 = math.exp %379 : vector<2x32xf32>
    %cst_94 = arith.constant 1.000000e+00 : f32
    %381 = vector.broadcast %cst_94 : f32 to vector<2x32xf32>
    %382 = arith.addf %381, %380 : vector<2x32xf32>
    %383 = arith.divf %381, %382 : vector<2x32xf32>
    %384 = arith.mulf %375, %324 : vector<2x32xf32>
    %385 = arith.mulf %369, %377 : vector<2x32xf32>
    %386 = arith.addf %384, %385 : vector<2x32xf32>
    %387 = math.tanh %386 : vector<2x32xf32>
    %388 = arith.mulf %383, %387 : vector<2x32xf32>
    %cst_95 = arith.constant dense<0.000000e+00> : vector<2x16xf32>
    %389 = tpu.matmul %388, %13, %cst_95 {dimension_numbers = #tpu.dot_dimension_numbers<[1], [0], [0], [1], [0, 0, 1, 1], [], []>} : vector<2x32xf32>, vector<32x16xf32>, vector<2x16xf32> -> vector<2x16xf32>
    %390 = arith.addf %389, %16 : vector<2x16xf32>
    %c5 = arith.constant 5 : index
    %c0_96 = arith.constant 0 : index
    %c0_97 = arith.constant 0 : index
    %391 = vector.load %arg10[%c5, %c0_96, %c0_97] : memref<8x2x16xf32, #tpu.memory_space<vmem>>, vector<1x2x16xf32>
    %392 = vector.shape_cast %391 : vector<1x2x16xf32> to vector<2x16xf32>
    %393 = vector.shape_cast %390 : vector<2x16xf32> to vector<1x2x16xf32>
    tpu.vector_store %arg10[%c5, %c0_96, %c0_97], %393 {strides = array<i32>} : memref<8x2x16xf32, #tpu.memory_space<vmem>>, vector<1x2x16xf32>,
    %394 = vector.extract_strided_slice %6 {offsets = [12, 0], sizes = [2, 128], strides = [1, 1]} : vector<16x128xf32> to vector<2x128xf32>
    %cst_98 = arith.constant dense<0.000000e+00> : vector<2x128xf32>
    %395 = tpu.matmul %359, %7, %cst_98 {dimension_numbers = #tpu.dot_dimension_numbers<[1], [0], [0], [1], [0, 0, 1, 1], [], []>} : vector<2x32xf32>, vector<32x128xf32>, vector<2x128xf32> -> vector<2x128xf32>
    %396 = arith.addf %394, %395 : vector<2x128xf32>
    %397 = vector.extract_strided_slice %396 {offsets = [0, 0], sizes = [2, 32], strides = [1, 1]} : vector<2x128xf32> to vector<2x32xf32>
    %398 = arith.negf %397 : vector<2x32xf32>
    %399 = math.exp %398 : vector<2x32xf32>
    %cst_99 = arith.constant 1.000000e+00 : f32
    %400 = vector.broadcast %cst_99 : f32 to vector<2x32xf32>
    %401 = arith.addf %400, %399 : vector<2x32xf32>
    %402 = arith.divf %400, %401 : vector<2x32xf32>
    %403 = vector.extract_strided_slice %396 {offsets = [0, 32], sizes = [2, 32], strides = [1, 1]} : vector<2x128xf32> to vector<2x32xf32>
    %404 = arith.negf %403 : vector<2x32xf32>
    %405 = math.exp %404 : vector<2x32xf32>
    %cst_100 = arith.constant 1.000000e+00 : f32
    %406 = vector.broadcast %cst_100 : f32 to vector<2x32xf32>
    %407 = arith.addf %406, %405 : vector<2x32xf32>
    %408 = arith.divf %406, %407 : vector<2x32xf32>
    %409 = vector.extract_strided_slice %396 {offsets = [0, 64], sizes = [2, 32], strides = [1, 1]} : vector<2x128xf32> to vector<2x32xf32>
    %410 = math.tanh %409 : vector<2x32xf32>
    %411 = vector.extract_strided_slice %396 {offsets = [0, 96], sizes = [2, 32], strides = [1, 1]} : vector<2x128xf32> to vector<2x32xf32>
    %412 = arith.negf %411 : vector<2x32xf32>
    %413 = math.exp %412 : vector<2x32xf32>
    %cst_101 = arith.constant 1.000000e+00 : f32
    %414 = vector.broadcast %cst_101 : f32 to vector<2x32xf32>
    %415 = arith.addf %414, %413 : vector<2x32xf32>
    %416 = arith.divf %414, %415 : vector<2x32xf32>
    %417 = arith.mulf %408, %357 : vector<2x32xf32>
    %418 = arith.mulf %402, %410 : vector<2x32xf32>
    %419 = arith.addf %417, %418 : vector<2x32xf32>
    %420 = math.tanh %419 : vector<2x32xf32>
    %421 = arith.mulf %416, %420 : vector<2x32xf32>
    %cst_102 = arith.constant dense<0.000000e+00> : vector<2x128xf32>
    %422 = tpu.matmul %421, %8, %cst_102 {dimension_numbers = #tpu.dot_dimension_numbers<[1], [0], [0], [1], [0, 0, 1, 1], [], []>} : vector<2x32xf32>, vector<32x128xf32>, vector<2x128xf32> -> vector<2x128xf32>
    %423 = arith.addf %422, %12 : vector<2x128xf32>
    %cst_103 = arith.constant dense<0.000000e+00> : vector<2x128xf32>
    %424 = tpu.matmul %388, %9, %cst_103 {dimension_numbers = #tpu.dot_dimension_numbers<[1], [0], [0], [1], [0, 0, 1, 1], [], []>} : vector<2x32xf32>, vector<32x128xf32>, vector<2x128xf32> -> vector<2x128xf32>
    %425 = arith.addf %423, %424 : vector<2x128xf32>
    %426 = vector.extract_strided_slice %425 {offsets = [0, 0], sizes = [2, 32], strides = [1, 1]} : vector<2x128xf32> to vector<2x32xf32>
    %427 = arith.negf %426 : vector<2x32xf32>
    %428 = math.exp %427 : vector<2x32xf32>
    %cst_104 = arith.constant 1.000000e+00 : f32
    %429 = vector.broadcast %cst_104 : f32 to vector<2x32xf32>
    %430 = arith.addf %429, %428 : vector<2x32xf32>
    %431 = arith.divf %429, %430 : vector<2x32xf32>
    %432 = vector.extract_strided_slice %425 {offsets = [0, 32], sizes = [2, 32], strides = [1, 1]} : vector<2x128xf32> to vector<2x32xf32>
    %433 = arith.negf %432 : vector<2x32xf32>
    %434 = math.exp %433 : vector<2x32xf32>
    %cst_105 = arith.constant 1.000000e+00 : f32
    %435 = vector.broadcast %cst_105 : f32 to vector<2x32xf32>
    %436 = arith.addf %435, %434 : vector<2x32xf32>
    %437 = arith.divf %435, %436 : vector<2x32xf32>
    %438 = vector.extract_strided_slice %425 {offsets = [0, 64], sizes = [2, 32], strides = [1, 1]} : vector<2x128xf32> to vector<2x32xf32>
    %439 = math.tanh %438 : vector<2x32xf32>
    %440 = vector.extract_strided_slice %425 {offsets = [0, 96], sizes = [2, 32], strides = [1, 1]} : vector<2x128xf32> to vector<2x32xf32>
    %441 = arith.negf %440 : vector<2x32xf32>
    %442 = math.exp %441 : vector<2x32xf32>
    %cst_106 = arith.constant 1.000000e+00 : f32
    %443 = vector.broadcast %cst_106 : f32 to vector<2x32xf32>
    %444 = arith.addf %443, %442 : vector<2x32xf32>
    %445 = arith.divf %443, %444 : vector<2x32xf32>
    %446 = arith.mulf %437, %386 : vector<2x32xf32>
    %447 = arith.mulf %431, %439 : vector<2x32xf32>
    %448 = arith.addf %446, %447 : vector<2x32xf32>
    %449 = math.tanh %448 : vector<2x32xf32>
    %450 = arith.mulf %445, %449 : vector<2x32xf32>
    %cst_107 = arith.constant dense<0.000000e+00> : vector<2x16xf32>
    %451 = tpu.matmul %450, %13, %cst_107 {dimension_numbers = #tpu.dot_dimension_numbers<[1], [0], [0], [1], [0, 0, 1, 1], [], []>} : vector<2x32xf32>, vector<32x16xf32>, vector<2x16xf32> -> vector<2x16xf32>
    %452 = arith.addf %451, %16 : vector<2x16xf32>
    %c6 = arith.constant 6 : index
    %c0_108 = arith.constant 0 : index
    %c0_109 = arith.constant 0 : index
    %453 = vector.load %arg10[%c6, %c0_108, %c0_109] : memref<8x2x16xf32, #tpu.memory_space<vmem>>, vector<1x2x16xf32>
    %454 = vector.shape_cast %453 : vector<1x2x16xf32> to vector<2x16xf32>
    %455 = vector.shape_cast %452 : vector<2x16xf32> to vector<1x2x16xf32>
    tpu.vector_store %arg10[%c6, %c0_108, %c0_109], %455 {strides = array<i32>} : memref<8x2x16xf32, #tpu.memory_space<vmem>>, vector<1x2x16xf32>,
    %456 = vector.extract_strided_slice %6 {offsets = [14, 0], sizes = [2, 128], strides = [1, 1]} : vector<16x128xf32> to vector<2x128xf32>
    %cst_110 = arith.constant dense<0.000000e+00> : vector<2x128xf32>
    %457 = tpu.matmul %421, %7, %cst_110 {dimension_numbers = #tpu.dot_dimension_numbers<[1], [0], [0], [1], [0, 0, 1, 1], [], []>} : vector<2x32xf32>, vector<32x128xf32>, vector<2x128xf32> -> vector<2x128xf32>
    %458 = arith.addf %456, %457 : vector<2x128xf32>
    %459 = vector.extract_strided_slice %458 {offsets = [0, 0], sizes = [2, 32], strides = [1, 1]} : vector<2x128xf32> to vector<2x32xf32>
    %460 = arith.negf %459 : vector<2x32xf32>
    %461 = math.exp %460 : vector<2x32xf32>
    %cst_111 = arith.constant 1.000000e+00 : f32
    %462 = vector.broadcast %cst_111 : f32 to vector<2x32xf32>
    %463 = arith.addf %462, %461 : vector<2x32xf32>
    %464 = arith.divf %462, %463 : vector<2x32xf32>
    %465 = vector.extract_strided_slice %458 {offsets = [0, 32], sizes = [2, 32], strides = [1, 1]} : vector<2x128xf32> to vector<2x32xf32>
    %466 = arith.negf %465 : vector<2x32xf32>
    %467 = math.exp %466 : vector<2x32xf32>
    %cst_112 = arith.constant 1.000000e+00 : f32
    %468 = vector.broadcast %cst_112 : f32 to vector<2x32xf32>
    %469 = arith.addf %468, %467 : vector<2x32xf32>
    %470 = arith.divf %468, %469 : vector<2x32xf32>
    %471 = vector.extract_strided_slice %458 {offsets = [0, 64], sizes = [2, 32], strides = [1, 1]} : vector<2x128xf32> to vector<2x32xf32>
    %472 = math.tanh %471 : vector<2x32xf32>
    %473 = vector.extract_strided_slice %458 {offsets = [0, 96], sizes = [2, 32], strides = [1, 1]} : vector<2x128xf32> to vector<2x32xf32>
    %474 = arith.negf %473 : vector<2x32xf32>
    %475 = math.exp %474 : vector<2x32xf32>
    %cst_113 = arith.constant 1.000000e+00 : f32
    %476 = vector.broadcast %cst_113 : f32 to vector<2x32xf32>
    %477 = arith.addf %476, %475 : vector<2x32xf32>
    %478 = arith.divf %476, %477 : vector<2x32xf32>
    %479 = arith.mulf %470, %419 : vector<2x32xf32>
    %480 = arith.mulf %464, %472 : vector<2x32xf32>
    %481 = arith.addf %479, %480 : vector<2x32xf32>
    %482 = math.tanh %481 : vector<2x32xf32>
    %483 = arith.mulf %478, %482 : vector<2x32xf32>
    %cst_114 = arith.constant dense<0.000000e+00> : vector<2x128xf32>
    %484 = tpu.matmul %483, %8, %cst_114 {dimension_numbers = #tpu.dot_dimension_numbers<[1], [0], [0], [1], [0, 0, 1, 1], [], []>} : vector<2x32xf32>, vector<32x128xf32>, vector<2x128xf32> -> vector<2x128xf32>
    %485 = arith.addf %484, %12 : vector<2x128xf32>
    %cst_115 = arith.constant dense<0.000000e+00> : vector<2x128xf32>
    %486 = tpu.matmul %450, %9, %cst_115 {dimension_numbers = #tpu.dot_dimension_numbers<[1], [0], [0], [1], [0, 0, 1, 1], [], []>} : vector<2x32xf32>, vector<32x128xf32>, vector<2x128xf32> -> vector<2x128xf32>
    %487 = arith.addf %485, %486 : vector<2x128xf32>
    %488 = vector.extract_strided_slice %487 {offsets = [0, 0], sizes = [2, 32], strides = [1, 1]} : vector<2x128xf32> to vector<2x32xf32>
    %489 = arith.negf %488 : vector<2x32xf32>
    %490 = math.exp %489 : vector<2x32xf32>
    %cst_116 = arith.constant 1.000000e+00 : f32
    %491 = vector.broadcast %cst_116 : f32 to vector<2x32xf32>
    %492 = arith.addf %491, %490 : vector<2x32xf32>
    %493 = arith.divf %491, %492 : vector<2x32xf32>
    %494 = vector.extract_strided_slice %487 {offsets = [0, 32], sizes = [2, 32], strides = [1, 1]} : vector<2x128xf32> to vector<2x32xf32>
    %495 = arith.negf %494 : vector<2x32xf32>
    %496 = math.exp %495 : vector<2x32xf32>
    %cst_117 = arith.constant 1.000000e+00 : f32
    %497 = vector.broadcast %cst_117 : f32 to vector<2x32xf32>
    %498 = arith.addf %497, %496 : vector<2x32xf32>
    %499 = arith.divf %497, %498 : vector<2x32xf32>
    %500 = vector.extract_strided_slice %487 {offsets = [0, 64], sizes = [2, 32], strides = [1, 1]} : vector<2x128xf32> to vector<2x32xf32>
    %501 = math.tanh %500 : vector<2x32xf32>
    %502 = vector.extract_strided_slice %487 {offsets = [0, 96], sizes = [2, 32], strides = [1, 1]} : vector<2x128xf32> to vector<2x32xf32>
    %503 = arith.negf %502 : vector<2x32xf32>
    %504 = math.exp %503 : vector<2x32xf32>
    %cst_118 = arith.constant 1.000000e+00 : f32
    %505 = vector.broadcast %cst_118 : f32 to vector<2x32xf32>
    %506 = arith.addf %505, %504 : vector<2x32xf32>
    %507 = arith.divf %505, %506 : vector<2x32xf32>
    %508 = arith.mulf %499, %448 : vector<2x32xf32>
    %509 = arith.mulf %493, %501 : vector<2x32xf32>
    %510 = arith.addf %508, %509 : vector<2x32xf32>
    %511 = math.tanh %510 : vector<2x32xf32>
    %512 = arith.mulf %507, %511 : vector<2x32xf32>
    %cst_119 = arith.constant dense<0.000000e+00> : vector<2x16xf32>
    %513 = tpu.matmul %512, %13, %cst_119 {dimension_numbers = #tpu.dot_dimension_numbers<[1], [0], [0], [1], [0, 0, 1, 1], [], []>} : vector<2x32xf32>, vector<32x16xf32>, vector<2x16xf32> -> vector<2x16xf32>
    %514 = arith.addf %513, %16 : vector<2x16xf32>
    %c7 = arith.constant 7 : index
    %c0_120 = arith.constant 0 : index
    %c0_121 = arith.constant 0 : index
    %515 = vector.load %arg10[%c7, %c0_120, %c0_121] : memref<8x2x16xf32, #tpu.memory_space<vmem>>, vector<1x2x16xf32>
    %516 = vector.shape_cast %515 : vector<1x2x16xf32> to vector<2x16xf32>
    %517 = vector.shape_cast %514 : vector<2x16xf32> to vector<1x2x16xf32>
    tpu.vector_store %arg10[%c7, %c0_120, %c0_121], %517 {strides = array<i32>} : memref<8x2x16xf32, #tpu.memory_space<vmem>>, vector<1x2x16xf32>,
    return
  }
}

</mosaic_0001>

<bundles_post_ra>
// kernel: forward.2
= control target key start
LH: loop header
LB: loop body
LE: loop exit
PB: predicated region body
PF: predicated region fallthrough
CT: control target
= control target key end

     0   :  { %v62_v0 = vlaneseq  ;;  %v3359_v1 = vmov 0.0|0.0   ;;  %v3360_v5 = vmov 1983009808   ;;  %vm3361_vm0 = vmmov 0   ;;  %s3363_s15 = smov 64   ;;  %s3849_s2 = inlined_call_operand.vmem [shape: f32[32,128], index: 2, kind: input, shape index: {}]   ;;  %s3850_s1 = inlined_call_operand.vmem [shape: f32[16,128], index: 1, kind: input, shape index: {}]   ;;  %s3851_s0 = inlined_call_operand.vmem [shape: f32[8,2,16], index: 0, kind: input, shape index: {}]   ;;  %s3852_s3 = inlined_call_operand.vmem [shape: f32[1,128], index: 3, kind: input, shape index: {}]   ;;  %s3853_s4 = inlined_call_operand.vmem [shape: f32[32,128], index: 4, kind: input, shape index: {}]   ;;  %s3854_s5 = inlined_call_operand.vmem [shape: f32[32,128], index: 5, kind: input, shape index: {}]   ;;  %s3855_s6 = inlined_call_operand.vmem [shape: f32[1,128], index: 6, kind: input, shape index: {}]   ;;  %s3856_s7 = inlined_call_operand.vmem [shape: f32[64,64], index: 7, kind: input, shape index: {}]   ;;  %s3857_s8 = inlined_call_operand.vmem [shape: f32[1,64], index: 8, kind: input, shape index: {}]   ;;  %s3858_s9 = inlined_call_operand.vmem [shape: f32[2,2,32], index: 9, kind: output, shape index: {}]  }
   0x1   :  { %3044 = vmatprep.subr.bf16.mxu1 %v3359_v1  ;;  %v171_v2 = vld [vmem:[%s3849_s2] sm:$0xff]  ;;  %v172_v3 = vld [vmem:[%s3849_s2 + $0x8] sm:$0xff]  ;;  %v60_v6 = vunpack.c.l.s4 %v3360_v5  ;;  %v3362_v12 = vmov 0.0   ;;  %v173_v18 = vld [vmem:[%s3849_s2 + $0x10] sm:$0xff]  ;;  %vm91_vm1 = vcmask 130048   ;;  %vm190_vm2 = vcmask 261120  }
   0x2   :  { %v40_v4 = vld [vmem:[%s3850_s1] sm:$0xff]  ;;  %v3426_v7 = vpack.c.bf16 %v172_v3, %v171_v2  ;;  %v41_v8 = vld [vmem:[%s3850_s1 + $0x8] sm:$0xff]  ;;  %v63_v11 = vshrl.u32 %v62_v0, 7  ;;  %2762 = vmatprep.mubr.msk.f32.mxu1 %vm3361_vm0, %v3362_v12  ;;  %v174_v20 = vld [vmem:[%s3849_s2 + $0x18] sm:$0xff]  ;;  %vm2555_vm3 = vcmask 254976  }
   0x3   :  { %v32_v9 = vld [vmem:[%s3851_s0] sm:$0x3]  ;;  %v33_v10 = vld [vmem:[%s3851_s0 + $0x2] sm:$0x3]  ;;  %v3040_v13 = vpack.c.bf16 %v41_v8, %v40_v4  ;;  %v34_v14 = vld [vmem:[%s3851_s0 + $0x4] sm:$0x3]  ;;  %v61_v17 = vunpack.c.0.s8 %v60_v6  ;;  %v3459_v24 = vpack.c.bf16 %v174_v20, %v173_v18 }
   0x4   :  { %v35_v15 = vld [vmem:[%s3851_s0 + $0x6] sm:$0x3]  ;;  %v57_v16 = vcombine.low %v32_v9, %v33_v10  ;;  %3046 = vmatpush3.bf16.msra.mxu1 %v3426_v7  ;;  %v36_v21 = vld [vmem:[%s3851_s0 + $0x8] sm:$0x3]  ;;  %v37_v22 = vld [vmem:[%s3851_s0 + $0xa] sm:$0x3] }
   0x5   :  { %v58_v19 = vcombine.low %v34_v14, %v35_v15  ;;  %3041 = vmatprep.subr.bf16.mxu0 %v3040_v13  ;;  %3047 = vmatprep.subr.bf16.mxu1 %v3359_v1  ;;  %v64_v23 = vsub.s32 %v61_v17, %v63_v11  ;;  %v38_v25 = vld [vmem:[%s3851_s0 + $0xc] sm:$0x3]  ;;  %v39_v26 = vld [vmem:[%s3851_s0 + $0xe] sm:$0x3]  ;;  %v74_v27 = vcombine.low %v36_v21, %v37_v22  ;;  %v2567_v35 = vld [vmem:[%s3852_s3] ss:$0 sm:$0xff] }
   0x6   :  { %3043 = vmatpush3.bf16.msra.mxu0 %v3040_v13  ;;  %v75_v28 = vcombine.low %v38_v25, %v39_v26  ;;  %s3364_s3 = smov 32   ;;  %v175_v53 = vld [vmem:[%s3853_s4] sm:$0xff]  ;;  %v176_v54 = vld [vmem:[%s3853_s4 + $0x8] sm:$0xff]  ;;  %v177_v55 = vld [vmem:[%s3853_s4 + $0x10] sm:$0xff] }
   0x7   :  { %v65_v29 = vrot.slane %v57_v16, %v64_v23  ;;  %v72_v30 = vrot.slane %v58_v19, %v64_v23  ;;  %v82_v31 = vrot.slane %v74_v27, %v64_v23  ;;  %3050 = vmatprep.subr.bf16.mxu0 %v3359_v1  ;;  %v3501_v56 = vpack.c.bf16 %v176_v54, %v175_v53  ;;  %v178_v57 = vld [vmem:[%s3853_s4 + $0x18] sm:$0xff]  ;;  %v179_v62 = vld [vmem:[%s3854_s5] sm:$0xff]  ;;  %v180_v63 = vld [vmem:[%s3854_s5 + $0x8] sm:$0xff] }
   0x8   :  { %3049 = vmatpush3.bf16.msra.mxu1 %v3459_v24  ;;  %v89_v32 = vrot.slane %v75_v28, %v64_v23  ;;  %v3507_v58 = vpack.c.bf16 %v178_v57, %v177_v55  ;;  %v3520_v0 = vpack.c.bf16 %v180_v63, %v179_v62  ;;  %v181_v2 = vld [vmem:[%s3854_s5 + $0x10] sm:$0xff]  ;;  %v182_v3 = vld [vmem:[%s3854_s5 + $0x18] sm:$0xff]  ;;  %v3555_v11 = vld [vmem:[%s3855_s6] ss:$0 sm:$0xff] }
   0x9   :  { %v73_v33 = vcombine.low %v65_v29, %v72_v30  ;;  %3062 = vmatprep.subr.bf16.mxu1 %v3359_v1  ;;  %v3531_v5 = vpack.c.bf16 %v182_v3, %v181_v2 }
   0xa   :  { %v90_v34 = vcombine.low %v82_v31, %v89_v32 }
   0xb   :  { %2751 = vmatprep.mubr.msk.f32.mxu0 %vm91_vm1, %v73_v33  ;;  %2763 = vmatmul.mubr.f32.vlgmr.msra.gmra.mrb[0].mxu1 %v3362_v12 }
   0xc   :  { %2752 = vmatmul.mubr.msk.f32.vlgmr.msra.gmra.mrb[0].mxu0 %vm91_vm1, %v90_v34  ;;  %3064 = vmatpush3.bf16.msra.mxu1 %v3426_v7 }
   0xd   :  { %3065 = vmatprep.subr.bf16.mxu1 %v3359_v1  ;;  %2773 = vmatprep.mubr.msk.f32.mxu0 %vm3361_vm0, %v3362_v12 }
   0xe   :  { %2795 = vmatprep.mubr.msk.f32.mxu1 %vm3361_vm0, %v3362_v12  ;;  %3052 = vmatpush3.bf16.msra.mxu0 %v3501_v56 }
   0xf   :  { %3053 = vmatprep.subr.bf16.mxu0 %v3359_v1 }
  0x10   :  { %3067 = vmatpush3.bf16.msra.mxu1 %v3459_v24 }
  0x11   :  { %3068 = vmatprep.subr.bf16.mxu1 %v3359_v1 }
  0x12   :  { %3055 = vmatpush3.bf16.msra.mxu0 %v3507_v58 }
  0x13   :  { %3056 = vmatprep.subr.bf16.mxu0 %v3359_v1 }
  0xde   :  { %v260_v36 = vpop.f32.mrb[0].mxu1 }
  0xdf   :  { %v2753_v37 = vpop.f32.mrb[0].mxu0  ;;  %v2764_v38 = vpop.f32.mrb[1].mxu1 }
  0xe0   :  { %v3482_v39 = vadd.f32 %v2753_v37, %v2567_v35  ;;  %v162_v40 = vpop.f32.mrb[1].mxu0 }
  0xe1   :  { %v3484_v41 = vadd.f32 %v2567_v35, %v162_v40 }
  0xe3   :  { %v264_v42 = vadd.f32 %v260_v36, %v3484_v41 }
  0xe5   :  { %3231 = vtanh.f32 %v264_v42  ;;  %v2571_v44 = vmul.f32 -1.442695, %v264_v42 }
  0xe7   :  { %3233 = vpow2.f32 %v2571_v44 }
  0xef   :  { %v3232_v43 = vpop.eup %3231 }
  0xf0   :  { %274 = vrot.lane.b32.xlu0 %v3232_v43, %s3363_s15 }
  0xf1   :  { %v3234_v45 = vpop.eup %3233 }
  0xf2   :  { %v268_v46 = vadd.f32 1.0, %v3234_v45 }
  0xf4   :  { %3235 = vrcp.f32 %v268_v46 }
  0xfe   :  { %v3236_v47 = vpop.eup %3235 }
  0xff   :  { %v272_v50 = vmul.f32 0.0, %v3236_v47 }
 0x162   :  { %v275_v48 = vpop.permute.xlu0 %274 }
 0x163   :  { %v277_v49 = vmul.f32 %v3236_v47, %v275_v48 }
 0x165   :  { %279 = vrot.lane.b32.xlu0 %v277_v49, %s3364_s3 }
 0x1d7   :  { %v280_v51 = vpop.permute.xlu0 %279 }
 0x1d8   :  { %v3489_v52 = vadd.f32 %v280_v51, %v272_v50 }
 0x1da   :  { %3237 = vtanh.f32 %v3489_v52  ;;  %v541_v31 = vrot.slane %v3489_v52, 6 }
 0x1e4   :  { %v3238_v59 = vpop.eup %3237 }
 0x1e5   :  { %285 = vrot.lane.b32.xlu1 %v3238_v59, %s3363_s15 }
 0x257   :  { %v286_v60 = vpop.permute.xlu1 %285 }
 0x258   :  { %v288_v61 = vmul.f32 %v3236_v47, %v286_v60 }
 0x25a   :  { %290 = vrot.lane.b32.xlu1 %v288_v61, %s3364_s3 }
 0x2cc   :  { %v291_v4 = vpop.permute.xlu1 %290 }
 0x2cd   :  { %2774 = vmatmul.mubr.msk.f32.vlgmr.msra.gmra.mrb[2].mxu0 %vm190_vm2, %v291_v4  ;;  %2796 = vmatmul.mubr.msk.f32.vlgmr.msra.gmra.mrb[2].mxu1 %vm190_vm2, %v291_v4 }
 0x2ce   :  { %3058 = vmatpush3.bf16.msra.mxu0 %v3520_v0  ;;  %2784 = vmatprep.mubr.msk.f32.mxu0 %vm3361_vm0, %v3362_v12 }
 0x2cf   :  { %3059 = vmatprep.subr.bf16.mxu0 %v3359_v1  ;;  %3070 = vmatpush3.bf16.msra.mxu1 %v3501_v56 }
 0x2d0   :  { %3071 = vmatprep.subr.bf16.mxu1 %v3359_v1  ;;  %2806 = vmatprep.mubr.msk.f32.mxu1 %vm3361_vm0, %v3362_v12 }
 0x2d2   :  { %3061 = vmatpush3.bf16.msra.mxu0 %v3531_v5 }
 0x2d3   :  { %3080 = vmatprep.subr.bf16.mxu0 %v3359_v1  ;;  %3073 = vmatpush3.bf16.msra.mxu1 %v3507_v58 }
 0x2d4   :  { %3074 = vmatprep.subr.bf16.mxu1 %v3359_v1 }
 0x2d5   :  { %2785 = vmatmul.mubr.f32.vlgmr.msra.gmra.mrb[2].mxu0 %v3362_v12 }
 0x2d6   :  { %3082 = vmatpush3.bf16.msra.mxu0 %v3426_v7  ;;  %2828 = vmatprep.mubr.msk.f32.mxu0 %vm3361_vm0, %v3362_v12 }
 0x2d7   :  { %3083 = vmatprep.subr.bf16.mxu0 %v3359_v1 }
 0x2da   :  { %3085 = vmatpush3.bf16.msra.mxu0 %v3459_v24 }
 0x2db   :  { %3086 = vmatprep.subr.bf16.mxu0 %v3359_v1 }
 0x3a0   :  { %v525_v6 = vpop.f32.mrb[2].mxu1 }
 0x3a1   :  { %v530_v8 = vrot.slane %v525_v6, 6  ;;  %v2797_v9 = vpop.f32.mrb[3].mxu1 }
 0x3a3   :  { %v532_v10 = vadd.f32 %v530_v8, %v3484_v41 }
 0x3a5   :  { %3239 = vtanh.f32 %v532_v10  ;;  %v2575_v18 = vmul.f32 -1.442695, %v532_v10 }
 0x3a8   :  { %v430_v13 = vpop.f32.mrb[2].mxu0 }
 0x3a9   :  { %v3200_v14 = vadd.f32 %v3555_v11, %v430_v13  ;;  %v2786_v15 = vpop.f32.mrb[3].mxu0 }
 0x3ab   :  { %3241 = vtanh.f32 %v3200_v14  ;;  %v2573_v19 = vmul.f32 -1.442695, %v3200_v14 }
 0x3ac   :  { %3243 = vpow2.f32 %v2575_v18 }
 0x3ad   :  { %3245 = vpow2.f32 %v2573_v19 }
 0x3af   :  { %v3240_v16 = vpop.eup %3239 }
 0x3b0   :  { %545 = vrot.lane.b32.xlu0 %v3240_v16, %s3363_s15 }
 0x3b5   :  { %v3242_v17 = vpop.eup %3241 }
 0x3b6   :  { %444 = vrot.lane.b32.xlu1 %v3242_v17, %s3363_s15  ;;  %v3244_v20 = vpop.eup %3243 }
 0x3b7   :  { %v536_v21 = vadd.f32 1.0, %v3244_v20  ;;  %v3246_v22 = vpop.eup %3245 }
 0x3b8   :  { %v438_v23 = vadd.f32 1.0, %v3246_v22 }
 0x3b9   :  { %3247 = vrcp.f32 %v536_v21 }
 0x3ba   :  { %3249 = vrcp.f32 %v438_v23 }
 0x3c3   :  { %v3248_v25 = vpop.eup %3247 }
 0x3c4   :  { %v3250_v28 = vpop.eup %3249  ;;  %v543_v32 = vmul.f32 %v3248_v25, %v541_v31 }
 0x3c5   :  { %v442_v35 = vmul.f32 0.0, %v3250_v28 }
 0x422   :  { %v546_v26 = vpop.permute.xlu0 %545 }
 0x423   :  { %v548_v27 = vmul.f32 %v3248_v25, %v546_v26 }
 0x425   :  { %550 = vrot.lane.b32.xlu0 %v548_v27, %s3364_s3 }
 0x428   :  { %v445_v29 = vpop.permute.xlu1 %444 }
 0x429   :  { %v447_v30 = vmul.f32 %v3250_v28, %v445_v29 }
 0x42b   :  { %449 = vrot.lane.b32.xlu1 %v447_v30, %s3364_s3 }
 0x497   :  { %v551_v33 = vpop.permute.xlu0 %550 }
 0x498   :  { %v3563_v34 = vadd.f32 %v551_v33, %v543_v32 }
 0x49a   :  { %3251 = vtanh.f32 %v3563_v34  ;;  %v818_v14 = vrot.slane %v3563_v34, 6 }
 0x49d   :  { %v450_v36 = vpop.permute.xlu1 %449 }
 0x49e   :  { %v3566_v37 = vadd.f32 %v450_v36, %v442_v35 }
 0x4a0   :  { %3253 = vtanh.f32 %v3566_v37 }
 0x4a4   :  { %v3252_v38 = vpop.eup %3251 }
 0x4a5   :  { %556 = vrot.lane.b32.xlu0 %v3252_v38, %s3363_s15 }
 0x4aa   :  { %v3254_v40 = vpop.eup %3253 }
 0x4ab   :  { %455 = vrot.lane.b32.xlu1 %v3254_v40, %s3363_s15 }
 0x517   :  { %v557_v42 = vpop.permute.xlu0 %556 }
 0x518   :  { %v559_v43 = vmul.f32 %v3248_v25, %v557_v42 }
 0x51a   :  { %v561_v44 = vrot.slane %v559_v43, 2 }
 0x51c   :  { %562 = vrot.lane.b32.xlu0 %v561_v44, %s3364_s3 }
 0x51d   :  { %v456_v45 = vpop.permute.xlu1 %455 }
 0x51e   :  { %v458_v46 = vmul.f32 %v3250_v28, %v456_v45 }
 0x520   :  { %637 = vrot.lane.b32.xlu1 %v458_v46, %s3364_s3 }
 0x58e   :  { %v563_v47 = vpop.permute.xlu0 %562 }
 0x58f   :  { %2807 = vmatmul.mubr.msk.f32.vlgmr.msra.gmra.mrb[4].mxu1 %vm190_vm2, %v563_v47  ;;  %2829 = vmatmul.mubr.msk.f32.vlgmr.msra.gmra.mrb[4].mxu0 %vm190_vm2, %v563_v47 }
 0x590   :  { %3076 = vmatpush3.bf16.msra.mxu1 %v3520_v0  ;;  %2817 = vmatprep.mubr.msk.f32.mxu1 %vm3361_vm0, %v3362_v12 }
 0x591   :  { %3077 = vmatprep.subr.bf16.mxu1 %v3359_v1  ;;  %3088 = vmatpush3.bf16.msra.mxu0 %v3501_v56 }
 0x592   :  { %3089 = vmatprep.subr.bf16.mxu0 %v3359_v1  ;;  %2839 = vmatprep.mubr.msk.f32.mxu0 %vm3361_vm0, %v3362_v12  ;;  %v638_v48 = vpop.permute.xlu1 %637 }
 0x594   :  { %3079 = vmatpush3.bf16.msra.mxu1 %v3531_v5 }
 0x595   :  { %3098 = vmatprep.subr.bf16.mxu1 %v3359_v1  ;;  %3091 = vmatpush3.bf16.msra.mxu0 %v3507_v58 }
 0x596   :  { %3092 = vmatprep.subr.bf16.mxu0 %v3359_v1 }
 0x597   :  { %2818 = vmatmul.mubr.msk.f32.vlgmr.msra.gmra.mrb[4].mxu1 %vm190_vm2, %v638_v48 }
 0x598   :  { %3100 = vmatpush3.bf16.msra.mxu1 %v3426_v7  ;;  %2861 = vmatprep.mubr.msk.f32.mxu1 %vm3361_vm0, %v3362_v12 }
 0x599   :  { %3101 = vmatprep.subr.bf16.mxu1 %v3359_v1 }
 0x59c   :  { %3103 = vmatpush3.bf16.msra.mxu1 %v3459_v24 }
 0x59d   :  { %3104 = vmatprep.subr.bf16.mxu1 %v3359_v1 }
 0x662   :  { %v802_v49 = vpop.f32.mrb[4].mxu0 }
 0x663   :  { %v807_v50 = vrot.slane %v802_v49, 4  ;;  %v2830_v51 = vpop.f32.mrb[5].mxu0 }
 0x665   :  { %v809_v52 = vadd.f32 %v807_v50, %v3484_v41 }
 0x667   :  { %3255 = vtanh.f32 %v809_v52  ;;  %v2580_v60 = vmul.f32 -1.442695, %v809_v52 }
 0x66a   :  { %v707_v53 = vpop.f32.mrb[4].mxu1 }
 0x66b   :  { %v3201_v54 = vadd.f32 %v3555_v11, %v707_v53  ;;  %v2819_v55 = vpop.f32.mrb[5].mxu1 }
 0x66d   :  { %3257 = vtanh.f32 %v3201_v54  ;;  %v2578_v61 = vmul.f32 -1.442695, %v3201_v54 }
 0x66e   :  { %3259 = vpow2.f32 %v2580_v60 }
 0x66f   :  { %3261 = vpow2.f32 %v2578_v61 }
 0x671   :  { %v3256_v57 = vpop.eup %3255 }
 0x672   :  { %822 = vrot.lane.b32.xlu0 %v3256_v57, %s3363_s15 }
 0x677   :  { %v3258_v59 = vpop.eup %3257 }
 0x678   :  { %721 = vrot.lane.b32.xlu1 %v3258_v59, %s3363_s15  ;;  %v3260_v62 = vpop.eup %3259 }
 0x679   :  { %v813_v63 = vadd.f32 1.0, %v3260_v62  ;;  %v3262_v2 = vpop.eup %3261 }
 0x67a   :  { %v715_v3 = vadd.f32 1.0, %v3262_v2 }
 0x67b   :  { %3263 = vrcp.f32 %v813_v63 }
 0x67c   :  { %3265 = vrcp.f32 %v715_v3 }
 0x685   :  { %v3264_v4 = vpop.eup %3263 }
 0x686   :  { %v3266_v9 = vpop.eup %3265  ;;  %v820_v15 = vmul.f32 %v3264_v4, %v818_v14 }
 0x687   :  { %v719_v18 = vmul.f32 %v3266_v9, %v3566_v37 }
 0x6e4   :  { %v823_v6 = vpop.permute.xlu0 %822 }
 0x6e5   :  { %v825_v8 = vmul.f32 %v3264_v4, %v823_v6 }
 0x6e7   :  { %827 = vrot.lane.b32.xlu0 %v825_v8, %s3364_s3 }
 0x6ea   :  { %v722_v10 = vpop.permute.xlu1 %721 }
 0x6eb   :  { %v724_v13 = vmul.f32 %v3266_v9, %v722_v10 }
 0x6ed   :  { %726 = vrot.lane.b32.xlu1 %v724_v13, %s3364_s3 }
 0x759   :  { %v828_v16 = vpop.permute.xlu0 %827 }
 0x75a   :  { %v3601_v17 = vadd.f32 %v828_v16, %v820_v15 }
 0x75c   :  { %3267 = vtanh.f32 %v3601_v17  ;;  %v1095_v53 = vrot.slane %v3601_v17, 6 }
 0x75f   :  { %v727_v19 = vpop.permute.xlu1 %726 }
 0x760   :  { %v3605_v20 = vadd.f32 %v727_v19, %v719_v18 }
 0x762   :  { %3269 = vtanh.f32 %v3605_v20 }
 0x766   :  { %v3268_v21 = vpop.eup %3267 }
 0x767   :  { %833 = vrot.lane.b32.xlu0 %v3268_v21, %s3363_s15 }
 0x76c   :  { %v3270_v22 = vpop.eup %3269 }
 0x76d   :  { %732 = vrot.lane.b32.xlu1 %v3270_v22, %s3363_s15 }
 0x7d9   :  { %v834_v23 = vpop.permute.xlu0 %833 }
 0x7da   :  { %v836_v25 = vmul.f32 %v3264_v4, %v834_v23 }
 0x7dc   :  { %v838_v26 = vrot.slane %v836_v25, 4 }
 0x7de   :  { %839 = vrot.lane.b32.xlu0 %v838_v26, %s3364_s3 }
 0x7df   :  { %v733_v27 = vpop.permute.xlu1 %732 }
 0x7e0   :  { %v735_v28 = vmul.f32 %v3266_v9, %v733_v27 }
 0x7e2   :  { %914 = vrot.lane.b32.xlu1 %v735_v28, %s3364_s3 }
 0x850   :  { %v840_v29 = vpop.permute.xlu0 %839 }
 0x851   :  { %2840 = vmatmul.mubr.msk.f32.vlgmr.msra.gmra.mrb[6].mxu0 %vm190_vm2, %v840_v29  ;;  %2862 = vmatmul.mubr.msk.f32.vlgmr.msra.gmra.mrb[6].mxu1 %vm190_vm2, %v840_v29 }
 0x852   :  { %3094 = vmatpush3.bf16.msra.mxu0 %v3520_v0  ;;  %2850 = vmatprep.mubr.msk.f32.mxu0 %vm3361_vm0, %v3362_v12 }
 0x853   :  { %3095 = vmatprep.subr.bf16.mxu0 %v3359_v1  ;;  %3106 = vmatpush3.bf16.msra.mxu1 %v3501_v56 }
 0x854   :  { %3107 = vmatprep.subr.bf16.mxu1 %v3359_v1  ;;  %2872 = vmatprep.mubr.msk.f32.mxu1 %vm3361_vm0, %v3362_v12  ;;  %v915_v30 = vpop.permute.xlu1 %914 }
 0x856   :  { %3097 = vmatpush3.bf16.msra.mxu0 %v3531_v5 }
 0x857   :  { %3116 = vmatprep.subr.bf16.mxu0 %v3359_v1  ;;  %3109 = vmatpush3.bf16.msra.mxu1 %v3507_v58 }
 0x858   :  { %3110 = vmatprep.subr.bf16.mxu1 %v3359_v1 }
 0x859   :  { %2851 = vmatmul.mubr.msk.f32.vlgmr.msra.gmra.mrb[6].mxu0 %vm190_vm2, %v915_v30 }
 0x85a   :  { %3118 = vmatpush3.bf16.msra.mxu0 %v3426_v7  ;;  %2894 = vmatprep.mubr.msk.f32.mxu0 %vm3361_vm0, %v3362_v12 }
 0x85b   :  { %3119 = vmatprep.subr.bf16.mxu0 %v3359_v1 }
 0x85e   :  { %3121 = vmatpush3.bf16.msra.mxu0 %v3459_v24 }
 0x85f   :  { %3122 = vmatprep.subr.bf16.mxu0 %v3359_v1 }
 0x924   :  { %v1079_v31 = vpop.f32.mrb[6].mxu1 }
 0x925   :  { %v1084_v32 = vrot.slane %v1079_v31, 2  ;;  %v2863_v33 = vpop.f32.mrb[7].mxu1 }
 0x927   :  { %v1086_v34 = vadd.f32 %v1084_v32, %v3484_v41 }
 0x929   :  { %3271 = vtanh.f32 %v1086_v34  ;;  %v2585_v42 = vmul.f32 -1.442695, %v1086_v34 }
 0x92c   :  { %v984_v35 = vpop.f32.mrb[6].mxu0 }
 0x92d   :  { %v3202_v36 = vadd.f32 %v3555_v11, %v984_v35  ;;  %v2852_v37 = vpop.f32.mrb[7].mxu0 }
 0x92f   :  { %3273 = vtanh.f32 %v3202_v36  ;;  %v2583_v43 = vmul.f32 -1.442695, %v3202_v36 }
 0x930   :  { %3275 = vpow2.f32 %v2585_v42 }
 0x931   :  { %3277 = vpow2.f32 %v2583_v43 }
 0x933   :  { %v3272_v38 = vpop.eup %3271 }
 0x934   :  { %1099 = vrot.lane.b32.xlu0 %v3272_v38, %s3363_s15 }
 0x939   :  { %v3274_v40 = vpop.eup %3273 }
 0x93a   :  { %998 = vrot.lane.b32.xlu1 %v3274_v40, %s3363_s15  ;;  %v3276_v44 = vpop.eup %3275 }
 0x93b   :  { %v1090_v45 = vadd.f32 1.0, %v3276_v44  ;;  %v3278_v46 = vpop.eup %3277 }
 0x93c   :  { %v992_v41 = vadd.f32 1.0, %v3278_v46 }
 0x93d   :  { %3279 = vrcp.f32 %v1090_v45 }
 0x93e   :  { %3281 = vrcp.f32 %v992_v41 }
 0x947   :  { %v3280_v47 = vpop.eup %3279 }
 0x948   :  { %v3282_v50 = vpop.eup %3281  ;;  %v1097_v54 = vmul.f32 %v3280_v47, %v1095_v53 }
 0x949   :  { %v996_v59 = vmul.f32 %v3282_v50, %v3605_v20 }
 0x9a6   :  { %v1100_v48 = vpop.permute.xlu0 %1099 }
 0x9a7   :  { %v1102_v49 = vmul.f32 %v3280_v47, %v1100_v48 }
 0x9a9   :  { %1104 = vrot.lane.b32.xlu0 %v1102_v49, %s3364_s3 }
 0x9ac   :  { %v999_v51 = vpop.permute.xlu1 %998 }
 0x9ad   :  { %v1001_v52 = vmul.f32 %v3282_v50, %v999_v51 }
 0x9af   :  { %1003 = vrot.lane.b32.xlu1 %v1001_v52, %s3364_s3 }
 0xa1b   :  { %v1105_v55 = vpop.permute.xlu0 %1104 }
 0xa1c   :  { %v3640_v57 = vadd.f32 %v1105_v55, %v1097_v54 }
 0xa1e   :  { %3283 = vtanh.f32 %v3640_v57  ;;  %v1369_v34 = vrot.slane %v3640_v57, 6 }
 0xa21   :  { %v1004_v60 = vpop.permute.xlu1 %1003 }
 0xa22   :  { %v3644_v61 = vadd.f32 %v1004_v60, %v996_v59 }
 0xa24   :  { %3285 = vtanh.f32 %v3644_v61 }
 0xa28   :  { %v3284_v62 = vpop.eup %3283 }
 0xa29   :  { %1110 = vrot.lane.b32.xlu0 %v3284_v62, %s3363_s15 }
 0xa2e   :  { %v3286_v63 = vpop.eup %3285 }
 0xa2f   :  { %1009 = vrot.lane.b32.xlu1 %v3286_v63, %s3363_s15 }
 0xa9b   :  { %v1111_v2 = vpop.permute.xlu0 %1110 }
 0xa9c   :  { %v1113_v3 = vmul.f32 %v3280_v47, %v1111_v2 }
 0xa9e   :  { %v1115_v4 = vrot.slane %v1113_v3, 6 }
 0xaa0   :  { %1116 = vrot.lane.b32.xlu0 %v1115_v4, %s3364_s3 }
 0xaa1   :  { %v1010_v6 = vpop.permute.xlu1 %1009 }
 0xaa2   :  { %v1012_v8 = vmul.f32 %v3282_v50, %v1010_v6 }
 0xaa4   :  { %1191 = vrot.lane.b32.xlu1 %v1012_v8, %s3364_s3 }
 0xb12   :  { %v1117_v9 = vpop.permute.xlu0 %1116 }
 0xb13   :  { %2873 = vmatmul.mubr.msk.f32.vlgmr.msra.gmra.mrb[8].mxu1 %vm190_vm2, %v1117_v9  ;;  %2895 = vmatmul.mubr.msk.f32.vlgmr.msra.gmra.mrb[8].mxu0 %vm190_vm2, %v1117_v9 }
 0xb14   :  { %3112 = vmatpush3.bf16.msra.mxu1 %v3520_v0  ;;  %2883 = vmatprep.mubr.msk.f32.mxu1 %vm3361_vm0, %v3362_v12 }
 0xb15   :  { %3113 = vmatprep.subr.bf16.mxu1 %v3359_v1  ;;  %3124 = vmatpush3.bf16.msra.mxu0 %v3501_v56 }
 0xb16   :  { %3125 = vmatprep.subr.bf16.mxu0 %v3359_v1  ;;  %2905 = vmatprep.mubr.msk.f32.mxu0 %vm3361_vm0, %v3362_v12  ;;  %v1192_v10 = vpop.permute.xlu1 %1191 }
 0xb18   :  { %3115 = vmatpush3.bf16.msra.mxu1 %v3531_v5 }
 0xb19   :  { %3134 = vmatprep.subr.bf16.mxu1 %v3359_v1  ;;  %3127 = vmatpush3.bf16.msra.mxu0 %v3507_v58 }
 0xb1a   :  { %3128 = vmatprep.subr.bf16.mxu0 %v3359_v1 }
 0xb1b   :  { %2884 = vmatmul.mubr.msk.f32.vlgmr.msra.gmra.mrb[8].mxu1 %vm190_vm2, %v1192_v10 }
 0xb1c   :  { %3136 = vmatpush3.bf16.msra.mxu1 %v3426_v7  ;;  %2927 = vmatprep.mubr.msk.f32.mxu1 %vm3361_vm0, %v3362_v12 }
 0xb1d   :  { %3137 = vmatprep.subr.bf16.mxu1 %v3359_v1 }
 0xb20   :  { %3139 = vmatpush3.bf16.msra.mxu1 %v3459_v24 }
 0xb21   :  { %3140 = vmatprep.subr.bf16.mxu1 %v3359_v1 }
 0xbe6   :  { %v1356_v13 = vpop.f32.mrb[8].mxu0 }
 0xbe7   :  { %v1360_v14 = vadd.f32 %v1356_v13, %v3482_v39  ;;  %v2896_v15 = vpop.f32.mrb[9].mxu0 }
 0xbe9   :  { %3287 = vtanh.f32 %v1360_v14  ;;  %v2590_v21 = vmul.f32 -1.442695, %v1360_v14 }
 0xbee   :  { %v1261_v16 = vpop.f32.mrb[8].mxu1 }
 0xbef   :  { %v3203_v17 = vadd.f32 %v3555_v11, %v1261_v16  ;;  %v2885_v18 = vpop.f32.mrb[9].mxu1 }
 0xbf1   :  { %3289 = vtanh.f32 %v3203_v17  ;;  %v2588_v22 = vmul.f32 -1.442695, %v3203_v17 }
 0xbf2   :  { %3291 = vpow2.f32 %v2590_v21 }
 0xbf3   :  { %v3288_v19 = vpop.eup %3287  ;;  %3293 = vpow2.f32 %v2588_v22 }
 0xbf4   :  { %1373 = vrot.lane.b32.xlu0 %v3288_v19, %s3363_s15 }
 0xbfb   :  { %v3290_v20 = vpop.eup %3289 }
 0xbfc   :  { %1275 = vrot.lane.b32.xlu1 %v3290_v20, %s3363_s15  ;;  %v3292_v23 = vpop.eup %3291 }
 0xbfd   :  { %v1364_v25 = vadd.f32 1.0, %v3292_v23  ;;  %v3294_v26 = vpop.eup %3293 }
 0xbfe   :  { %v1269_v27 = vadd.f32 1.0, %v3294_v26 }
 0xbff   :  { %3295 = vrcp.f32 %v1364_v25 }
 0xc00   :  { %3297 = vrcp.f32 %v1269_v27 }
 0xc09   :  { %v3296_v28 = vpop.eup %3295 }
 0xc0a   :  { %v3298_v31 = vpop.eup %3297  ;;  %v1371_v35 = vmul.f32 %v3296_v28, %v1369_v34 }
 0xc0b   :  { %v1273_v38 = vmul.f32 %v3298_v31, %v3644_v61 }
 0xc66   :  { %v1374_v29 = vpop.permute.xlu0 %1373 }
 0xc67   :  { %v1376_v30 = vmul.f32 %v3296_v28, %v1374_v29 }
 0xc69   :  { %1378 = vrot.lane.b32.xlu0 %v1376_v30, %s3364_s3 }
 0xc6e   :  { %v1276_v32 = vpop.permute.xlu1 %1275 }
 0xc6f   :  { %v1278_v33 = vmul.f32 %v3298_v31, %v1276_v32 }
 0xc71   :  { %1280 = vrot.lane.b32.xlu1 %v1278_v33, %s3364_s3 }
 0xcdb   :  { %v1379_v36 = vpop.permute.xlu0 %1378 }
 0xcdc   :  { %v3679_v37 = vadd.f32 %v1379_v36, %v1371_v35 }
 0xcde   :  { %3299 = vtanh.f32 %v3679_v37  ;;  %v1645_v15 = vrot.slane %v3679_v37, 6 }
 0xce3   :  { %v1281_v40 = vpop.permute.xlu1 %1280 }
 0xce4   :  { %v3683_v42 = vadd.f32 %v1281_v40, %v1273_v38 }
 0xce6   :  { %3301 = vtanh.f32 %v3683_v42 }
 0xce8   :  { %v3300_v43 = vpop.eup %3299 }
 0xce9   :  { %1384 = vrot.lane.b32.xlu0 %v3300_v43, %s3363_s15 }
 0xcf0   :  { %v3302_v44 = vpop.eup %3301 }
 0xcf1   :  { %1286 = vrot.lane.b32.xlu1 %v3302_v44, %s3363_s15 }
 0xd5b   :  { %v1385_v45 = vpop.permute.xlu0 %1384 }
 0xd5c   :  { %v1387_v46 = vmul.f32 %v3296_v28, %v1385_v45 }
 0xd5e   :  { %1389 = vrot.lane.b32.xlu0 %v1387_v46, %s3364_s3 }
 0xd63   :  { %v1287_v41 = vpop.permute.xlu1 %1286 }
 0xd64   :  { %v1289_v47 = vmul.f32 %v3298_v31, %v1287_v41 }
 0xd66   :  { %1464 = vrot.lane.b32.xlu1 %v1289_v47, %s3364_s3 }
 0xdd0   :  { %v1390_v48 = vpop.permute.xlu0 %1389 }
 0xdd1   :  { %2906 = vmatmul.mubr.msk.f32.vlgmr.msra.gmra.mrb[10].mxu0 %vm190_vm2, %v1390_v48  ;;  %2928 = vmatmul.mubr.msk.f32.vlgmr.msra.gmra.mrb[10].mxu1 %vm190_vm2, %v1390_v48 }
 0xdd2   :  { %3130 = vmatpush3.bf16.msra.mxu0 %v3520_v0  ;;  %2916 = vmatprep.mubr.msk.f32.mxu0 %vm3361_vm0, %v3362_v12 }
 0xdd3   :  { %3131 = vmatprep.subr.bf16.mxu0 %v3359_v1  ;;  %3142 = vmatpush3.bf16.msra.mxu1 %v3501_v56 }
 0xdd4   :  { %3143 = vmatprep.subr.bf16.mxu1 %v3359_v1  ;;  %2938 = vmatprep.mubr.msk.f32.mxu1 %vm3361_vm0, %v3362_v12 }
 0xdd6   :  { %3133 = vmatpush3.bf16.msra.mxu0 %v3531_v5 }
 0xdd7   :  { %3152 = vmatprep.subr.bf16.mxu0 %v3359_v1  ;;  %3145 = vmatpush3.bf16.msra.mxu1 %v3507_v58 }
 0xdd8   :  { %v1465_v49 = vpop.permute.xlu1 %1464  ;;  %3146 = vmatprep.subr.bf16.mxu1 %v3359_v1 }
 0xdd9   :  { %2917 = vmatmul.mubr.msk.f32.vlgmr.msra.gmra.mrb[10].mxu0 %vm190_vm2, %v1465_v49 }
 0xdda   :  { %3154 = vmatpush3.bf16.msra.mxu0 %v3426_v7  ;;  %2960 = vmatprep.mubr.msk.f32.mxu0 %vm3361_vm0, %v3362_v12 }
 0xddb   :  { %3155 = vmatprep.subr.bf16.mxu0 %v3359_v1 }
 0xdde   :  { %3157 = vmatpush3.bf16.msra.mxu0 %v3459_v24 }
 0xddf   :  { %3158 = vmatprep.subr.bf16.mxu0 %v3359_v1 }
 0xea4   :  { %v1629_v50 = vpop.f32.mrb[10].mxu1 }
 0xea5   :  { %v1634_v51 = vrot.slane %v1629_v50, 6  ;;  %v2929_v52 = vpop.f32.mrb[11].mxu1 }
 0xea7   :  { %v1636_v53 = vadd.f32 %v1634_v51, %v3482_v39 }
 0xea9   :  { %3303 = vtanh.f32 %v1636_v53  ;;  %v2595_v61 = vmul.f32 -1.442695, %v1636_v53 }
 0xeac   :  { %v1534_v54 = vpop.f32.mrb[10].mxu0 }
 0xead   :  { %v3204_v55 = vadd.f32 %v3555_v11, %v1534_v54  ;;  %v2918_v57 = vpop.f32.mrb[11].mxu0 }
 0xeaf   :  { %3305 = vtanh.f32 %v3204_v55  ;;  %v2593_v62 = vmul.f32 -1.442695, %v3204_v55 }
 0xeb0   :  { %3307 = vpow2.f32 %v2595_v61 }
 0xeb1   :  { %3309 = vpow2.f32 %v2593_v62 }
 0xeb3   :  { %v3304_v59 = vpop.eup %3303 }
 0xeb4   :  { %1649 = vrot.lane.b32.xlu0 %v3304_v59, %s3363_s15 }
 0xeb9   :  { %v3306_v60 = vpop.eup %3305 }
 0xeba   :  { %1548 = vrot.lane.b32.xlu1 %v3306_v60, %s3363_s15  ;;  %v3308_v63 = vpop.eup %3307 }
 0xebb   :  { %v1640_v2 = vadd.f32 1.0, %v3308_v63  ;;  %v3310_v3 = vpop.eup %3309 }
 0xebc   :  { %v1542_v4 = vadd.f32 1.0, %v3310_v3 }
 0xebd   :  { %3311 = vrcp.f32 %v1640_v2 }
 0xebe   :  { %3313 = vrcp.f32 %v1542_v4 }
 0xec7   :  { %v3312_v6 = vpop.eup %3311 }
 0xec8   :  { %v3314_v10 = vpop.eup %3313  ;;  %v1647_v16 = vmul.f32 %v3312_v6, %v1645_v15 }
 0xec9   :  { %v1546_v19 = vmul.f32 %v3314_v10, %v3683_v42 }
 0xf26   :  { %v1650_v8 = vpop.permute.xlu0 %1649 }
 0xf27   :  { %v1652_v9 = vmul.f32 %v3312_v6, %v1650_v8 }
 0xf29   :  { %1654 = vrot.lane.b32.xlu0 %v1652_v9, %s3364_s3 }
 0xf2c   :  { %v1549_v13 = vpop.permute.xlu1 %1548 }
 0xf2d   :  { %v1551_v14 = vmul.f32 %v3314_v10, %v1549_v13 }
 0xf2f   :  { %1553 = vrot.lane.b32.xlu1 %v1551_v14, %s3364_s3 }
 0xf9b   :  { %v1655_v17 = vpop.permute.xlu0 %1654 }
 0xf9c   :  { %v3718_v18 = vadd.f32 %v1655_v17, %v1647_v16 }
 0xf9e   :  { %3315 = vtanh.f32 %v3718_v18  ;;  %v1922_v52 = vrot.slane %v3718_v18, 6 }
 0xfa1   :  { %v1554_v20 = vpop.permute.xlu1 %1553 }
 0xfa2   :  { %v3722_v21 = vadd.f32 %v1554_v20, %v1546_v19 }
 0xfa4   :  { %3317 = vtanh.f32 %v3722_v21 }
 0xfa8   :  { %v3316_v22 = vpop.eup %3315 }
 0xfa9   :  { %1660 = vrot.lane.b32.xlu0 %v3316_v22, %s3363_s15 }
 0xfae   :  { %v3318_v23 = vpop.eup %3317 }
 0xfaf   :  { %1559 = vrot.lane.b32.xlu1 %v3318_v23, %s3363_s15 }
0x101b   :  { %v1661_v25 = vpop.permute.xlu0 %1660 }
0x101c   :  { %v1663_v26 = vmul.f32 %v3312_v6, %v1661_v25 }
0x101e   :  { %v1665_v27 = vrot.slane %v1663_v26, 2 }
0x1020   :  { %1666 = vrot.lane.b32.xlu0 %v1665_v27, %s3364_s3 }
0x1021   :  { %v1560_v28 = vpop.permute.xlu1 %1559 }
0x1022   :  { %v1562_v29 = vmul.f32 %v3314_v10, %v1560_v28 }
0x1024   :  { %1741 = vrot.lane.b32.xlu1 %v1562_v29, %s3364_s3 }
0x1092   :  { %v1667_v30 = vpop.permute.xlu0 %1666 }
0x1093   :  { %2939 = vmatmul.mubr.msk.f32.vlgmr.msra.gmra.mrb[12].mxu1 %vm190_vm2, %v1667_v30  ;;  %2961 = vmatmul.mubr.msk.f32.vlgmr.msra.gmra.mrb[12].mxu0 %vm190_vm2, %v1667_v30 }
0x1094   :  { %3148 = vmatpush3.bf16.msra.mxu1 %v3520_v0  ;;  %2949 = vmatprep.mubr.msk.f32.mxu1 %vm3361_vm0, %v3362_v12 }
0x1095   :  { %3149 = vmatprep.subr.bf16.mxu1 %v3359_v1  ;;  %3160 = vmatpush3.bf16.msra.mxu0 %v3501_v56 }
0x1096   :  { %3161 = vmatprep.subr.bf16.mxu0 %v3359_v1  ;;  %2971 = vmatprep.mubr.msk.f32.mxu0 %vm3361_vm0, %v3362_v12  ;;  %v1742_v31 = vpop.permute.xlu1 %1741 }
0x1098   :  { %3151 = vmatpush3.bf16.msra.mxu1 %v3531_v5 }
0x1099   :  { %3170 = vmatprep.subr.bf16.mxu1 %v3359_v1  ;;  %3163 = vmatpush3.bf16.msra.mxu0 %v3507_v58 }
0x109a   :  { %3164 = vmatprep.subr.bf16.mxu0 %v3359_v1 }
0x109b   :  { %2950 = vmatmul.mubr.msk.f32.vlgmr.msra.gmra.mrb[12].mxu1 %vm190_vm2, %v1742_v31 }
0x109c   :  { %3172 = vmatpush3.bf16.msra.mxu1 %v3426_v7  ;;  %2993 = vmatprep.mubr.msk.f32.mxu1 %vm3361_vm0, %v3362_v12 }
0x109d   :  { %3173 = vmatprep.subr.bf16.mxu1 %v3359_v1 }
0x10a0   :  { %3175 = vmatpush3.bf16.msra.mxu1 %v3459_v24 }
0x10a1   :  { %3176 = vmatprep.subr.bf16.mxu1 %v3359_v1 }
0x1166   :  { %v1906_v32 = vpop.f32.mrb[12].mxu0 }
0x1167   :  { %v1911_v33 = vrot.slane %v1906_v32, 4  ;;  %v2962_v34 = vpop.f32.mrb[13].mxu0 }
0x1169   :  { %v1913_v35 = vadd.f32 %v1911_v33, %v3482_v39 }
0x116b   :  { %3319 = vtanh.f32 %v1913_v35  ;;  %v2600_v24 = vmul.f32 -1.442695, %v1913_v35 }
0x116e   :  { %v1811_v36 = vpop.f32.mrb[12].mxu1 }
0x116f   :  { %v3205_v37 = vadd.f32 %v3555_v11, %v1811_v36  ;;  %v2951_v38 = vpop.f32.mrb[13].mxu1 }
0x1171   :  { %3321 = vtanh.f32 %v3205_v37  ;;  %v2598_v42 = vmul.f32 -1.442695, %v3205_v37 }
0x1172   :  { %3323 = vpow2.f32 %v2600_v24 }
0x1173   :  { %3325 = vpow2.f32 %v2598_v42 }
0x1175   :  { %v3320_v7 = vpop.eup %3319 }
0x1176   :  { %1926 = vrot.lane.b32.xlu0 %v3320_v7, %s3363_s15 }
0x117b   :  { %v3322_v40 = vpop.eup %3321 }
0x117c   :  { %1825 = vrot.lane.b32.xlu1 %v3322_v40, %s3363_s15  ;;  %v3324_v43 = vpop.eup %3323 }
0x117d   :  { %v1917_v44 = vadd.f32 1.0, %v3324_v43  ;;  %v3326_v45 = vpop.eup %3325 }
0x117e   :  { %v1819_v46 = vadd.f32 1.0, %v3326_v45 }
0x117f   :  { %3327 = vrcp.f32 %v1917_v44 }
0x1180   :  { %3329 = vrcp.f32 %v1819_v46 }
0x1189   :  { %v3328_v41 = vpop.eup %3327 }
0x118a   :  { %v3330_v49 = vpop.eup %3329  ;;  %v1924_v53 = vmul.f32 %v3328_v41, %v1922_v52 }
0x118b   :  { %v1823_v57 = vmul.f32 %v3330_v49, %v3722_v21 }
0x11e8   :  { %v1927_v47 = vpop.permute.xlu0 %1926 }
0x11e9   :  { %v1929_v48 = vmul.f32 %v3328_v41, %v1927_v47 }
0x11eb   :  { %1931 = vrot.lane.b32.xlu0 %v1929_v48, %s3364_s3 }
0x11ee   :  { %v1826_v50 = vpop.permute.xlu1 %1825 }
0x11ef   :  { %v1828_v51 = vmul.f32 %v3330_v49, %v1826_v50 }
0x11f1   :  { %1830 = vrot.lane.b32.xlu1 %v1828_v51, %s3364_s3 }
0x125d   :  { %v1932_v54 = vpop.permute.xlu0 %1931 }
0x125e   :  { %v3757_v55 = vadd.f32 %v1932_v54, %v1924_v53 }
0x1260   :  { %3331 = vtanh.f32 %v3757_v55  ;;  %v2199_v31 = vrot.slane %v3757_v55, 6 }
0x1263   :  { %v1831_v59 = vpop.permute.xlu1 %1830 }
0x1264   :  { %v3761_v60 = vadd.f32 %v1831_v59, %v1823_v57  ;;  %v2399_v59 = vld [vmem:[%s3856_s7 + $0x28] sm:$0xff] }
0x1266   :  { %3333 = vtanh.f32 %v3761_v60 }
0x126a   :  { %v3332_v61 = vpop.eup %3331 }
0x126b   :  { %1937 = vrot.lane.b32.xlu0 %v3332_v61, %s3363_s15 }
0x1270   :  { %v3334_v62 = vpop.eup %3333 }
0x1271   :  { %1836 = vrot.lane.b32.xlu1 %v3334_v62, %s3363_s15  ;;  %v2401_v62 = vld [vmem:[%s3856_s7 + $0x38] sm:$0xff] }
0x12dd   :  { %v1938_v63 = vpop.permute.xlu0 %1937 }
0x12de   :  { %v1940_v2 = vmul.f32 %v3328_v41, %v1938_v63 }
0x12e0   :  { %v1942_v3 = vrot.slane %v1940_v2, 4 }
0x12e2   :  { %1943 = vrot.lane.b32.xlu0 %v1942_v3, %s3364_s3 }
0x12e3   :  { %v1837_v4 = vpop.permute.xlu1 %1836 }
0x12e4   :  { %v1839_v6 = vmul.f32 %v3330_v49, %v1837_v4 }
0x12e6   :  { %2018 = vrot.lane.b32.xlu1 %v1839_v6, %s3364_s3  ;;  %v2394_v6 = vld [vmem:[%s3856_s7] sm:$0xff] }
0x1354   :  { %v1944_v8 = vpop.permute.xlu0 %1943 }
0x1355   :  { %2972 = vmatmul.mubr.msk.f32.vlgmr.msra.gmra.mrb[14].mxu0 %vm190_vm2, %v1944_v8  ;;  %2994 = vmatmul.mubr.msk.f32.vlgmr.msra.gmra.mrb[14].mxu1 %vm190_vm2, %v1944_v8  ;;  %v2395_v8 = vld [vmem:[%s3856_s7 + $0x8] sm:$0xff] }
0x1356   :  { %3166 = vmatpush3.bf16.msra.mxu0 %v3520_v0  ;;  %2982 = vmatprep.mubr.msk.f32.mxu0 %vm3361_vm0, %v3362_v12 }
0x1357   :  { %3167 = vmatprep.subr.bf16.mxu0 %v3359_v1  ;;  %3178 = vmatpush3.bf16.msra.mxu1 %v3501_v56 }
0x1358   :  { %3179 = vmatprep.subr.bf16.mxu1 %v3359_v1  ;;  %3004 = vmatprep.mubr.msk.f32.mxu1 %vm3361_vm0, %v3362_v12  ;;  %v2019_v9 = vpop.permute.xlu1 %2018 }
0x135a   :  { %3169 = vmatpush3.bf16.msra.mxu0 %v3531_v5 }
0x135b   :  { %3181 = vmatpush3.bf16.msra.mxu1 %v3507_v58  ;;  %3188 = vmatprep.subr.bf16.mxu0 %v3359_v1 }
0x135c   :  { %3182 = vmatprep.subr.bf16.mxu1 %v3359_v1 }
0x135d   :  { %2983 = vmatmul.mubr.msk.f32.vlgmr.msra.gmra.mrb[14].mxu0 %vm190_vm2, %v2019_v9  ;;  %v3195_v9 = vpack.c.bf16 %v2395_v8, %v2394_v6 }
0x135e   :  { %3026 = vmatprep.mubr.msk.f32.mxu0 %vm3361_vm0, %v3362_v12 }
0x1428   :  { %v2183_v56 = vpop.f32.mrb[14].mxu1 }
0x1429   :  { %v2188_v10 = vrot.slane %v2183_v56, 2  ;;  %v2995_v13 = vpop.f32.mrb[15].mxu1  ;;  %v2396_v56 = vld [vmem:[%s3856_s7 + $0x10] sm:$0xff] }
0x142b   :  { %v2190_v14 = vadd.f32 %v2188_v10, %v3482_v39  ;;  %v2397_v10 = vld [vmem:[%s3856_s7 + $0x18] sm:$0xff] }
0x142d   :  { %3335 = vtanh.f32 %v2190_v14  ;;  %v2605_v19 = vmul.f32 -1.442695, %v2190_v14  ;;  %v3198_v14 = vpack.c.bf16 %v2397_v10, %v2396_v56 }
0x1430   :  { %v2088_v15 = vpop.f32.mrb[14].mxu0 }
0x1431   :  { %v3206_v16 = vadd.f32 %v3555_v11, %v2088_v15  ;;  %v2984_v58 = vpop.f32.mrb[15].mxu0 }
0x1433   :  { %3337 = vtanh.f32 %v3206_v16  ;;  %v2603_v20 = vmul.f32 -1.442695, %v3206_v16 }
0x1434   :  { %3339 = vpow2.f32 %v2605_v19 }
0x1435   :  { %3341 = vpow2.f32 %v2603_v20 }
0x1437   :  { %v3336_v17 = vpop.eup %3335 }
0x1438   :  { %2203 = vrot.lane.b32.xlu0 %v3336_v17, %s3363_s15  ;;  %v2611_v17 = vld [vmem:[%s3857_s8] ss:$0 sm:$0xff] }
0x143d   :  { %v3338_v18 = vpop.eup %3337 }
0x143e   :  { %2102 = vrot.lane.b32.xlu1 %v3338_v18, %s3363_s15  ;;  %v3340_v21 = vpop.eup %3339 }
0x143f   :  { %v2194_v22 = vadd.f32 1.0, %v3340_v21  ;;  %v3342_v23 = vpop.eup %3341 }
0x1440   :  { %v2096_v39 = vadd.f32 1.0, %v3342_v23 }
0x1441   :  { %3343 = vrcp.f32 %v2194_v22 }
0x1442   :  { %3345 = vrcp.f32 %v2096_v39 }
0x144b   :  { %v3344_v25 = vpop.eup %3343 }
0x144c   :  { %v3346_v28 = vpop.eup %3345  ;;  %v2201_v32 = vmul.f32 %v3344_v25, %v2199_v31 }
0x144d   :  { %v2100_v35 = vmul.f32 %v3346_v28, %v3761_v60  ;;  %v2400_v60 = vld [vmem:[%s3856_s7 + $0x30] sm:$0xff] }
0x144e   :  { %v3192_v63 = vpack.c.bf16 %v2401_v62, %v2400_v60 }
0x14aa   :  { %v2204_v26 = vpop.permute.xlu0 %2203 }
0x14ab   :  { %v2206_v27 = vmul.f32 %v3344_v25, %v2204_v26 }
0x14ad   :  { %2208 = vrot.lane.b32.xlu0 %v2206_v27, %s3364_s3 }
0x14b0   :  { %v2103_v29 = vpop.permute.xlu1 %2102 }
0x14b1   :  { %v2105_v30 = vmul.f32 %v3346_v28, %v2103_v29 }
0x14b3   :  { %2107 = vrot.lane.b32.xlu1 %v2105_v30, %s3364_s3 }
0x151f   :  { %v2209_v33 = vpop.permute.xlu0 %2208 }
0x1520   :  { %v2211_v34 = vadd.f32 %v2209_v33, %v2201_v32 }
0x1522   :  { %3347 = vtanh.f32 %v2211_v34 }
0x1525   :  { %v2108_v36 = vpop.permute.xlu1 %2107 }
0x1526   :  { %v2110_v37 = vadd.f32 %v2108_v36, %v2100_v35 }
0x1528   :  { %3349 = vtanh.f32 %v2110_v37 }
0x152c   :  { %v3348_v38 = vpop.eup %3347 }
0x152d   :  { %2214 = vrot.lane.b32.xlu0 %v3348_v38, %s3363_s15 }
0x1532   :  { %v3350_v7 = vpop.eup %3349 }
0x1533   :  { %2113 = vrot.lane.b32.xlu1 %v3350_v7, %s3363_s15 }
0x159f   :  { %v2215_v40 = vpop.permute.xlu0 %2214 }
0x15a0   :  { %v2217_v24 = vmul.f32 %v3344_v25, %v2215_v40 }
0x15a2   :  { %v2219_v42 = vrot.slane %v2217_v24, 6 }
0x15a4   :  { %2220 = vrot.lane.b32.xlu0 %v2219_v42, %s3364_s3 }
0x15a5   :  { %v2114_v43 = vpop.permute.xlu1 %2113 }
0x15a6   :  { %v2116_v44 = vmul.f32 %v3346_v28, %v2114_v43 }
0x15a8   :  { %2295 = vrot.lane.b32.xlu1 %v2116_v44, %s3364_s3 }
0x1616   :  { %v2221_v45 = vpop.permute.xlu0 %2220 }
0x1617   :  { %3005 = vmatmul.mubr.msk.f32.vlgmr.msra.gmra.mrb[16].mxu1 %vm190_vm2, %v2221_v45 }
0x1618   :  { %3184 = vmatpush3.bf16.msra.mxu1 %v3520_v0  ;;  %3015 = vmatprep.mubr.msk.f32.mxu1 %vm3361_vm0, %v3362_v12 }
0x1619   :  { %3185 = vmatprep.subr.bf16.mxu1 %v3359_v1 }
0x161a   :  { %v2296_v46 = vpop.permute.xlu1 %2295 }
0x161c   :  { %3187 = vmatpush3.bf16.msra.mxu1 %v3531_v5 }
0x161f   :  { %3016 = vmatmul.mubr.msk.f32.vlgmr.msra.gmra.mrb[16].mxu1 %vm190_vm2, %v2296_v46 }
0x16f2   :  { %v2365_v41 = vpop.f32.mrb[16].mxu1 }
0x16f3   :  { %v3207_v47 = vadd.f32 %v3555_v11, %v2365_v41  ;;  %v3017_v48 = vpop.f32.mrb[17].mxu1  ;;  %v2398_v11 = vld [vmem:[%s3856_s7 + $0x20] sm:$0xff]  ;;  %s3365_s7 = smov 96  }
0x16f4   :  { %v3189_v61 = vpack.c.bf16 %v2399_v59, %v2398_v11 }
0x16f5   :  { %3351 = vtanh.f32 %v3207_v47  ;;  %v2608_v50 = vmul.f32 -1.442695, %v3207_v47 }
0x16f6   :  { %3190 = vmatpush3.bf16.msra.mxu0 %v3189_v61 }
0x16f7   :  { %3353 = vpow2.f32 %v2608_v50  ;;  %3191 = vmatprep.subr.bf16.mxu0 %v3359_v1 }
0x16fa   :  { %3193 = vmatpush3.bf16.msra.mxu0 %v3192_v63 }
0x16fb   :  { %3194 = vmatprep.subr.bf16.mxu0 %v3359_v1 }
0x16ff   :  { %v3352_v49 = vpop.eup %3351 }
0x1700   :  { %2379 = vrot.lane.b32.xlu0 %v3352_v49, %s3363_s15 }
0x1701   :  { %v3354_v0 = vpop.eup %3353 }
0x1702   :  { %v2373_v51 = vadd.f32 1.0, %v3354_v0 }
0x1704   :  { %3355 = vrcp.f32 %v2373_v51 }
0x170e   :  { %v3356_v52 = vpop.eup %3355 }
0x170f   :  { %v2377_v5 = vmul.f32 %v3356_v52, %v2110_v37 }
0x1772   :  { %v2380_v53 = vpop.permute.xlu0 %2379 }
0x1773   :  { %v2382_v54 = vmul.f32 %v3356_v52, %v2380_v53 }
0x1775   :  { %2384 = vrot.lane.b32.xlu1 %v2382_v54, %s3364_s3 }
0x17e7   :  { %v2385_v55 = vpop.permute.xlu1 %2384 }
0x17e8   :  { %v2387_v57 = vadd.f32 %v2385_v55, %v2377_v5 }
0x17ea   :  { %3357 = vtanh.f32 %v2387_v57 }
0x17f4   :  { %v3358_v2 = vpop.eup %3357 }
0x17f5   :  { %2390 = vrot.lane.b32.xlu0 %v3358_v2, %s3363_s15 }
0x1867   :  { %v2391_v3 = vpop.permute.xlu0 %2390 }
0x1868   :  { %v2393_v4 = vmul.f32 %v3356_v52, %v2391_v3 }
0x186a   :  { %2403 = vrot.lane.b32.xlu1 %v2393_v4, %s3364_s3 }
0x18dc   :  { %v2404_v13 = vpop.permute.xlu1 %2403 }
0x18dd   :  { %3027 = vmatmul.mubr.msk.f32.vlgmr.msra.gmra.mrb[16].mxu0 %vm190_vm2, %v2404_v13 }
0x18de   :  { %3196 = vmatpush3.bf16.msra.mxu0 %v3195_v9  ;;  %3037 = vmatprep.mubr.msk.f32.mxu0 %vm3361_vm0, %v3362_v12 }
0x18df   :  { %3197 = vmatprep.subr.bf16.mxu0 %v3359_v1 }
0x18e2   :  { %3199 = vmatpush3.bf16.msra.mxu0 %v3198_v14 }
0x18e5   :  { %3038 = vmatmul.mubr.msk.f32.vlgmr.msra.gmra.mrb[18].mxu0 %vm190_vm2, %v2221_v45 }
0x19b0   :  { %v2473_v15 = vpop.f32.mrb[16].mxu0 }
0x19b1   :  { %v3028_v16 = vpop.f32.mrb[17].mxu0 }
0x19b8   :  { %v2543_v58 = vpop.f32.mrb[18].mxu0 }
0x19b9   :  { %v2544_v18 = vadd.f32 %v2543_v58, %v2473_v15  ;;  %v3039_v19 = vpop.f32.mrb[19].mxu0 }
0x19bb   :  { %v2554_v20 = vadd.f32 %v2611_v17, %v2544_v18 }
0x19bd   :  { %2558 = vrot.lane.b32.xlu0 %v2554_v20, %s3365_s7  ;;  %2556 = vst.msk [vmem:[%s3858_s9] sm:$0x3] %vm2555_vm3, %v2554_v20 }
0x1a2f   :  { %v2559_v1 = vpop.permute.xlu0 %2558 }
0x1a30   :  { %2612 = vst.msk [vmem:[%s3858_s9 + $0x2] sm:$0x3] %vm2555_vm3, %v2559_v1 }

// kernel: forward.3
= control target key start
LH: loop header
LB: loop body
LE: loop exit
PB: predicated region body
PF: predicated region fallthrough
CT: control target
= control target key end

     0   :  { %v65_v0 = vlaneseq  ;;  %v3939_v1 = vmov 0.0|0.0   ;;  %v3940_v5 = vmov 1983009808   ;;  %vm3941_vm0 = vmmov 0   ;;  %s3943_s22 = smov 64   ;;  %s4521_s3 = inlined_call_operand.vmem [shape: f32[32,128], index: 3, kind: input, shape index: {}]   ;;  %s4522_s2 = inlined_call_operand.vmem [shape: f32[16,128], index: 2, kind: input, shape index: {}]   ;;  %s4523_s0 = inlined_call_operand.vmem [shape: f32[8,2,16], index: 0, kind: input, shape index: {}]   ;;  %s4524_s1 = inlined_call_operand.vmem [shape: f32[2,2,32], index: 1, kind: input, shape index: {}]   ;;  %s4525_s4 = inlined_call_operand.vmem [shape: f32[1,128], index: 4, kind: input, shape index: {}]   ;;  %s4526_s5 = inlined_call_operand.vmem [shape: f32[32,128], index: 5, kind: input, shape index: {}]   ;;  %s4527_s6 = inlined_call_operand.vmem [shape: f32[32,128], index: 6, kind: input, shape index: {}]   ;;  %s4528_s7 = inlined_call_operand.vmem [shape: f32[1,128], index: 7, kind: input, shape index: {}]   ;;  %s4529_s8 = inlined_call_operand.vmem [shape: f32[32,16], index: 8, kind: input, shape index: {}]   ;;  %s4530_s9 = inlined_call_operand.vmem [shape: f32[1,16], index: 9, kind: input, shape index: {}]   ;;  %s4531_s10 = inlined_call_operand.vmem [shape: f32[8,2,16], index: 10, kind: output, shape index: {}]  }
   0x1   :  { %3587 = vmatprep.subr.bf16.mxu1 %v3939_v1  ;;  %v174_v2 = vld [vmem:[%s4521_s3] sm:$0xff]  ;;  %v175_v3 = vld [vmem:[%s4521_s3 + $0x8] sm:$0xff]  ;;  %v63_v6 = vunpack.c.l.s4 %v3940_v5  ;;  %v3942_v12 = vmov 0.0   ;;  %v176_v18 = vld [vmem:[%s4521_s3 + $0x10] sm:$0xff]  ;;  %vm94_vm1 = vcmask 130048   ;;  %vm207_vm2 = vcmask 261120  }
   0x2   :  { %v43_v4 = vld [vmem:[%s4522_s2] sm:$0xff]  ;;  %v4010_v7 = vpack.c.bf16 %v175_v3, %v174_v2  ;;  %v44_v8 = vld [vmem:[%s4522_s2 + $0x8] sm:$0xff]  ;;  %v66_v11 = vshrl.u32 %v65_v0, 7  ;;  %3239 = vmatprep.mubr.msk.f32.mxu1 %vm3941_vm0, %v3942_v12  ;;  %v177_v20 = vld [vmem:[%s4521_s3 + $0x18] sm:$0xff]  ;;  %vm554_vm3 = vcmask 123904  }
   0x3   :  { %v35_v9 = vld [vmem:[%s4523_s0] sm:$0x3]  ;;  %v36_v10 = vld [vmem:[%s4523_s0 + $0x2] sm:$0x3]  ;;  %v3583_v13 = vpack.c.bf16 %v44_v8, %v43_v4  ;;  %v37_v14 = vld [vmem:[%s4523_s0 + $0x4] sm:$0x3]  ;;  %v64_v17 = vunpack.c.0.s8 %v63_v6  ;;  %v4043_v24 = vpack.c.bf16 %v177_v20, %v176_v18 }
   0x4   :  { %v38_v15 = vld [vmem:[%s4523_s0 + $0x6] sm:$0x3]  ;;  %v60_v16 = vcombine.low %v35_v9, %v36_v10  ;;  %3589 = vmatpush3.bf16.msra.mxu1 %v4010_v7  ;;  %v39_v21 = vld [vmem:[%s4523_s0 + $0x8] sm:$0x3]  ;;  %v40_v22 = vld [vmem:[%s4523_s0 + $0xa] sm:$0x3] }
   0x5   :  { %v61_v19 = vcombine.low %v37_v14, %v38_v15  ;;  %3584 = vmatprep.subr.bf16.mxu0 %v3583_v13  ;;  %3590 = vmatprep.subr.bf16.mxu1 %v3939_v1  ;;  %v67_v23 = vsub.s32 %v64_v17, %v66_v11  ;;  %v41_v25 = vld [vmem:[%s4523_s0 + $0xc] sm:$0x3]  ;;  %v42_v26 = vld [vmem:[%s4523_s0 + $0xe] sm:$0x3]  ;;  %v77_v27 = vcombine.low %v39_v21, %v40_v22  ;;  %v204_v33 = vld [vmem:[%s4524_s1] sm:$0x3] }
   0x6   :  { %3586 = vmatpush3.bf16.msra.mxu0 %v3583_v13  ;;  %v78_v28 = vcombine.low %v41_v25, %v42_v26  ;;  %v2999_v36 = vld [vmem:[%s4525_s4] ss:$0 sm:$0xff]  ;;  %s3944_s4 = smov 32   ;;  %v179_v55 = vld [vmem:[%s4526_s5 + $0x8] sm:$0xff]  ;;  %v180_v56 = vld [vmem:[%s4526_s5 + $0x10] sm:$0xff] }
   0x7   :  { %v68_v29 = vrot.slane %v60_v16, %v67_v23  ;;  %v75_v30 = vrot.slane %v61_v19, %v67_v23  ;;  %v85_v31 = vrot.slane %v77_v27, %v67_v23  ;;  %3593 = vmatprep.subr.bf16.mxu0 %v3939_v1  ;;  %v178_v54 = vld [vmem:[%s4526_s5] sm:$0xff]  ;;  %v181_v58 = vld [vmem:[%s4526_s5 + $0x18] sm:$0xff]  ;;  %v183_v0 = vld [vmem:[%s4527_s6 + $0x8] sm:$0xff] }
   0x8   :  { %3592 = vmatpush3.bf16.msra.mxu1 %v4043_v24  ;;  %v92_v32 = vrot.slane %v78_v28, %v67_v23  ;;  %v4084_v57 = vpack.c.bf16 %v179_v55, %v178_v54  ;;  %v4090_v59 = vpack.c.bf16 %v181_v58, %v180_v56  ;;  %v182_v63 = vld [vmem:[%s4527_s6] sm:$0xff]  ;;  %v184_v3 = vld [vmem:[%s4527_s6 + $0x10] sm:$0xff]  ;;  %v185_v4 = vld [vmem:[%s4527_s6 + $0x18] sm:$0xff] }
   0x9   :  { %v76_v34 = vcombine.low %v68_v29, %v75_v30  ;;  %3605 = vmatprep.subr.bf16.mxu1 %v3939_v1  ;;  %v4103_v2 = vpack.c.bf16 %v183_v0, %v182_v63  ;;  %v4113_v6 = vpack.c.bf16 %v185_v4, %v184_v3  ;;  %v3004_v8 = vld [vmem:[%s4524_s1 + $0x2] sm:$0x3]  ;;  %v4133_v9 = vld [vmem:[%s4528_s7] ss:$0 sm:$0xff]  ;;  %v194_v26 = vld [vmem:[%s4529_s8 + $0x8] sm:$0xff] }
   0xa   :  { %v93_v35 = vcombine.low %v85_v31, %v92_v32  ;;  %v193_v25 = vld [vmem:[%s4529_s8] sm:$0xff]  ;;  %v195_v27 = vld [vmem:[%s4529_s8 + $0x10] sm:$0xff]  ;;  %v196_v29 = vld [vmem:[%s4529_s8 + $0x18] sm:$0xff] }
   0xb   :  { %3228 = vmatprep.mubr.msk.f32.mxu0 %vm94_vm1, %v76_v34  ;;  %3240 = vmatmul.mubr.msk.f32.vlgmr.msra.gmra.mrb[0].mxu1 %vm207_vm2, %v204_v33  ;;  %v4150_v28 = vpack.c.bf16 %v194_v26, %v193_v25  ;;  %v4156_v30 = vpack.c.bf16 %v196_v29, %v195_v27 }
   0xc   :  { %3229 = vmatmul.mubr.msk.f32.vlgmr.msra.gmra.mrb[0].mxu0 %vm94_vm1, %v93_v35  ;;  %3272 = vmatprep.mubr.msk.f32.mxu1 %vm3941_vm0, %v3942_v12  ;;  %v4180_v35 = vld [vmem:[%s4530_s9] ss:$0 sm:$0xff] }
   0xd   :  { %3250 = vmatprep.mubr.msk.f32.mxu0 %vm3941_vm0, %v3942_v12  ;;  %3595 = vmatpush3.bf16.msra.mxu0 %v4084_v57 }
   0xe   :  { %3596 = vmatprep.subr.bf16.mxu0 %v3939_v1  ;;  %3607 = vmatpush3.bf16.msra.mxu1 %v4150_v28 }
   0xf   :  { %3608 = vmatprep.subr.bf16.mxu1 %v3939_v1 }
  0x11   :  { %3598 = vmatpush3.bf16.msra.mxu0 %v4090_v59 }
  0x12   :  { %3599 = vmatprep.subr.bf16.mxu0 %v3939_v1  ;;  %3610 = vmatpush3.bf16.msra.mxu1 %v4156_v30 }
  0x13   :  { %3611 = vmatprep.subr.bf16.mxu1 %v3939_v1 }
  0xde   :  { %v277_v37 = vpop.f32.mrb[0].mxu1 }
  0xdf   :  { %v3230_v38 = vpop.f32.mrb[0].mxu0  ;;  %v3241_v39 = vpop.f32.mrb[1].mxu1 }
  0xe0   :  { %v4065_v40 = vadd.f32 %v3230_v38, %v2999_v36  ;;  %v165_v41 = vpop.f32.mrb[1].mxu0 }
  0xe1   :  { %v4067_v42 = vadd.f32 %v2999_v36, %v165_v41 }
  0xe3   :  { %v281_v43 = vadd.f32 %v277_v37, %v4067_v42 }
  0xe5   :  { %3809 = vtanh.f32 %v281_v43  ;;  %v3006_v45 = vmul.f32 -1.442695, %v281_v43 }
  0xe7   :  { %3811 = vpow2.f32 %v3006_v45 }
  0xef   :  { %v3810_v44 = vpop.eup %3809 }
  0xf0   :  { %291 = vrot.lane.b32.xlu0 %v3810_v44, %s3943_s22 }
  0xf1   :  { %v3812_v46 = vpop.eup %3811 }
  0xf2   :  { %v285_v47 = vadd.f32 1.0, %v3812_v46 }
  0xf4   :  { %3813 = vrcp.f32 %v285_v47 }
  0xfe   :  { %v3814_v48 = vpop.eup %3813 }
  0xff   :  { %v289_v51 = vmul.f32 0.0, %v3814_v48 }
 0x162   :  { %v292_v49 = vpop.permute.xlu0 %291 }
 0x163   :  { %v294_v50 = vmul.f32 %v3814_v48, %v292_v49 }
 0x165   :  { %296 = vrot.lane.b32.xlu0 %v294_v50, %s3944_s4 }
 0x1d7   :  { %v297_v52 = vpop.permute.xlu0 %296 }
 0x1d8   :  { %v4072_v53 = vadd.f32 %v297_v52, %v289_v51 }
 0x1da   :  { %3815 = vtanh.f32 %v4072_v53  ;;  %v638_v52 = vrot.slane %v4072_v53, 6 }
 0x1e4   :  { %v3816_v60 = vpop.eup %3815 }
 0x1e5   :  { %302 = vrot.lane.b32.xlu1 %v3816_v60, %s3943_s22 }
 0x257   :  { %v303_v61 = vpop.permute.xlu1 %302 }
 0x258   :  { %v305_v62 = vmul.f32 %v3814_v48, %v303_v61 }
 0x25a   :  { %307 = vrot.lane.b32.xlu1 %v305_v62, %s3944_s4 }
 0x2cc   :  { %v308_v5 = vpop.permute.xlu1 %307 }
 0x2cd   :  { %3251 = vmatmul.mubr.msk.f32.vlgmr.msra.gmra.mrb[2].mxu0 %vm207_vm2, %v308_v5 }
 0x2ce   :  { %3601 = vmatpush3.bf16.msra.mxu0 %v4103_v2  ;;  %3261 = vmatprep.mubr.msk.f32.mxu0 %vm3941_vm0, %v3942_v12 }
 0x2cf   :  { %3602 = vmatprep.subr.bf16.mxu0 %v3939_v1 }
 0x2d2   :  { %3604 = vmatpush3.bf16.msra.mxu0 %v4113_v6 }
 0x2d3   :  { %3617 = vmatprep.subr.bf16.mxu0 %v3939_v1 }
 0x2d5   :  { %3262 = vmatmul.mubr.msk.f32.vlgmr.msra.gmra.mrb[2].mxu0 %vm207_vm2, %v3004_v8 }
 0x2d6   :  { %3619 = vmatpush3.bf16.msra.mxu0 %v4084_v57  ;;  %3294 = vmatprep.mubr.msk.f32.mxu0 %vm3941_vm0, %v3942_v12 }
 0x2d7   :  { %3620 = vmatprep.subr.bf16.mxu0 %v3939_v1 }
 0x2da   :  { %3622 = vmatpush3.bf16.msra.mxu0 %v4090_v59 }
 0x2db   :  { %3623 = vmatprep.subr.bf16.mxu0 %v3939_v1 }
 0x3a8   :  { %v450_v10 = vpop.f32.mrb[2].mxu0 }
 0x3a9   :  { %v3779_v11 = vadd.f32 %v4133_v9, %v450_v10  ;;  %v3263_v13 = vpop.f32.mrb[3].mxu0 }
 0x3ab   :  { %3817 = vtanh.f32 %v3779_v11  ;;  %v3009_v15 = vmul.f32 -1.442695, %v3779_v11 }
 0x3ad   :  { %3819 = vpow2.f32 %v3009_v15 }
 0x3b5   :  { %v3818_v14 = vpop.eup %3817 }
 0x3b6   :  { %464 = vrot.lane.b32.xlu0 %v3818_v14, %s3943_s22 }
 0x3b7   :  { %v3820_v16 = vpop.eup %3819 }
 0x3b8   :  { %v458_v17 = vadd.f32 1.0, %v3820_v16 }
 0x3ba   :  { %3821 = vrcp.f32 %v458_v17 }
 0x3c4   :  { %v3822_v18 = vpop.eup %3821 }
 0x3c5   :  { %v462_v21 = vmul.f32 0.0, %v3822_v18 }
 0x428   :  { %v465_v19 = vpop.permute.xlu0 %464 }
 0x429   :  { %v467_v20 = vmul.f32 %v3822_v18, %v465_v19 }
 0x42b   :  { %469 = vrot.lane.b32.xlu1 %v467_v20, %s3944_s4 }
 0x49d   :  { %v470_v22 = vpop.permute.xlu1 %469 }
 0x49e   :  { %v4138_v23 = vadd.f32 %v470_v22, %v462_v21 }
 0x4a0   :  { %3823 = vtanh.f32 %v4138_v23 }
 0x4aa   :  { %v3824_v31 = vpop.eup %3823 }
 0x4ab   :  { %475 = vrot.lane.b32.xlu0 %v3824_v31, %s3943_s22 }
 0x51d   :  { %v476_v32 = vpop.permute.xlu0 %475 }
 0x51e   :  { %v478_v33 = vmul.f32 %v3822_v18, %v476_v32 }
 0x520   :  { %480 = vrot.lane.b32.xlu1 %v478_v33, %s3944_s4 }
 0x592   :  { %v481_v34 = vpop.permute.xlu1 %480 }
 0x593   :  { %3273 = vmatmul.mubr.msk.f32.vlgmr.msra.gmra.mrb[2].mxu1 %vm207_vm2, %v481_v34 }
 0x594   :  { %3613 = vmatpush3.bf16.msra.mxu1 %v4010_v7  ;;  %3283 = vmatprep.mubr.msk.f32.mxu1 %vm3941_vm0, %v3942_v12 }
 0x595   :  { %3614 = vmatprep.subr.bf16.mxu1 %v3939_v1 }
 0x598   :  { %3616 = vmatpush3.bf16.msra.mxu1 %v4043_v24 }
 0x599   :  { %3629 = vmatprep.subr.bf16.mxu1 %v3939_v1 }
 0x59b   :  { %3284 = vmatmul.mubr.msk.f32.vlgmr.msra.gmra.mrb[4].mxu1 %vm207_vm2, %v308_v5 }
 0x59c   :  { %3631 = vmatpush3.bf16.msra.mxu1 %v4150_v28  ;;  %3316 = vmatprep.mubr.msk.f32.mxu1 %vm3941_vm0, %v3942_v12 }
 0x59d   :  { %3632 = vmatprep.subr.bf16.mxu1 %v3939_v1 }
 0x5a0   :  { %3634 = vmatpush3.bf16.msra.mxu1 %v4156_v30 }
 0x5a1   :  { %3635 = vmatprep.subr.bf16.mxu1 %v3939_v1 }
 0x666   :  { %v550_v36 = vpop.f32.mrb[2].mxu1 }
 0x667   :  { %v551_v37 = vadd.f32 %v4180_v35, %v550_v36  ;;  %v3274_v38 = vpop.f32.mrb[3].mxu1 }
 0x669   :  { %555 = vst.msk [vmem:[%s4531_s10] sm:$0x3] %vm554_vm3, %v551_v37 }
 0x66e   :  { %v622_v39 = vpop.f32.mrb[4].mxu1 }
 0x66f   :  { %v627_v41 = vrot.slane %v622_v39, 6  ;;  %v3285_v43 = vpop.f32.mrb[5].mxu1 }
 0x671   :  { %v629_v44 = vadd.f32 %v627_v41, %v4067_v42 }
 0x673   :  { %3825 = vtanh.f32 %v629_v44  ;;  %v3012_v46 = vmul.f32 -1.442695, %v629_v44 }
 0x675   :  { %3827 = vpow2.f32 %v3012_v46 }
 0x67d   :  { %v3826_v45 = vpop.eup %3825 }
 0x67e   :  { %642 = vrot.lane.b32.xlu0 %v3826_v45, %s3943_s22 }
 0x67f   :  { %v3828_v47 = vpop.eup %3827 }
 0x680   :  { %v633_v48 = vadd.f32 1.0, %v3828_v47 }
 0x682   :  { %3829 = vrcp.f32 %v633_v48 }
 0x68c   :  { %v3830_v49 = vpop.eup %3829 }
 0x68d   :  { %v640_v54 = vmul.f32 %v3830_v49, %v638_v52 }
 0x6f0   :  { %v643_v50 = vpop.permute.xlu0 %642 }
 0x6f1   :  { %v645_v51 = vmul.f32 %v3830_v49, %v643_v50 }
 0x6f3   :  { %647 = vrot.lane.b32.xlu1 %v645_v51, %s3944_s4 }
 0x765   :  { %v648_v55 = vpop.permute.xlu1 %647 }
 0x766   :  { %v4191_v56 = vadd.f32 %v648_v55, %v640_v54 }
 0x768   :  { %3831 = vtanh.f32 %v4191_v56  ;;  %v987_v41 = vrot.slane %v4191_v56, 6 }
 0x772   :  { %v3832_v58 = vpop.eup %3831 }
 0x773   :  { %653 = vrot.lane.b32.xlu0 %v3832_v58, %s3943_s22 }
 0x7e5   :  { %v654_v60 = vpop.permute.xlu0 %653 }
 0x7e6   :  { %v656_v61 = vmul.f32 %v3830_v49, %v654_v60 }
 0x7e8   :  { %v658_v62 = vrot.slane %v656_v61, 2 }
 0x7ea   :  { %659 = vrot.lane.b32.xlu1 %v658_v62, %s3944_s4 }
 0x85c   :  { %v660_v63 = vpop.permute.xlu1 %659 }
 0x85d   :  { %3295 = vmatmul.mubr.msk.f32.vlgmr.msra.gmra.mrb[4].mxu0 %vm207_vm2, %v660_v63 }
 0x85e   :  { %3625 = vmatpush3.bf16.msra.mxu0 %v4103_v2  ;;  %3305 = vmatprep.mubr.msk.f32.mxu0 %vm3941_vm0, %v3942_v12 }
 0x85f   :  { %3626 = vmatprep.subr.bf16.mxu0 %v3939_v1 }
 0x862   :  { %3628 = vmatpush3.bf16.msra.mxu0 %v4113_v6 }
 0x863   :  { %3641 = vmatprep.subr.bf16.mxu0 %v3939_v1 }
 0x865   :  { %3306 = vmatmul.mubr.msk.f32.vlgmr.msra.gmra.mrb[4].mxu0 %vm207_vm2, %v481_v34 }
 0x866   :  { %3643 = vmatpush3.bf16.msra.mxu0 %v4084_v57  ;;  %3338 = vmatprep.mubr.msk.f32.mxu0 %vm3941_vm0, %v3942_v12 }
 0x867   :  { %3644 = vmatprep.subr.bf16.mxu0 %v3939_v1 }
 0x86a   :  { %3646 = vmatpush3.bf16.msra.mxu0 %v4090_v59 }
 0x86b   :  { %3647 = vmatprep.subr.bf16.mxu0 %v3939_v1 }
 0x938   :  { %v799_v53 = vpop.f32.mrb[4].mxu0 }
 0x939   :  { %v3780_v0 = vadd.f32 %v4133_v9, %v799_v53  ;;  %v3307_v3 = vpop.f32.mrb[5].mxu0 }
 0x93b   :  { %3833 = vtanh.f32 %v3780_v0  ;;  %v3015_v5 = vmul.f32 -1.442695, %v3780_v0 }
 0x93d   :  { %3835 = vpow2.f32 %v3015_v5 }
 0x945   :  { %v3834_v4 = vpop.eup %3833 }
 0x946   :  { %813 = vrot.lane.b32.xlu0 %v3834_v4, %s3943_s22 }
 0x947   :  { %v3836_v8 = vpop.eup %3835 }
 0x948   :  { %v807_v10 = vadd.f32 1.0, %v3836_v8 }
 0x94a   :  { %3837 = vrcp.f32 %v807_v10 }
 0x954   :  { %v3838_v11 = vpop.eup %3837 }
 0x955   :  { %v811_v15 = vmul.f32 %v3838_v11, %v4138_v23 }
 0x9b8   :  { %v814_v13 = vpop.permute.xlu0 %813 }
 0x9b9   :  { %v816_v14 = vmul.f32 %v3838_v11, %v814_v13 }
 0x9bb   :  { %818 = vrot.lane.b32.xlu1 %v816_v14, %s3944_s4 }
 0xa2d   :  { %v819_v16 = vpop.permute.xlu1 %818 }
 0xa2e   :  { %v4214_v17 = vadd.f32 %v819_v16, %v811_v15 }
 0xa30   :  { %3839 = vtanh.f32 %v4214_v17 }
 0xa3a   :  { %v3840_v18 = vpop.eup %3839 }
 0xa3b   :  { %824 = vrot.lane.b32.xlu0 %v3840_v18, %s3943_s22 }
 0xaad   :  { %v825_v19 = vpop.permute.xlu0 %824 }
 0xaae   :  { %v827_v20 = vmul.f32 %v3838_v11, %v825_v19 }
 0xab0   :  { %829 = vrot.lane.b32.xlu1 %v827_v20, %s3944_s4 }
 0xb22   :  { %v830_v21 = vpop.permute.xlu1 %829 }
 0xb23   :  { %3317 = vmatmul.mubr.msk.f32.vlgmr.msra.gmra.mrb[6].mxu1 %vm207_vm2, %v830_v21 }
 0xb24   :  { %3637 = vmatpush3.bf16.msra.mxu1 %v4010_v7  ;;  %3327 = vmatprep.mubr.msk.f32.mxu1 %vm3941_vm0, %v3942_v12 }
 0xb25   :  { %3638 = vmatprep.subr.bf16.mxu1 %v3939_v1 }
 0xb28   :  { %3640 = vmatpush3.bf16.msra.mxu1 %v4043_v24 }
 0xb29   :  { %3653 = vmatprep.subr.bf16.mxu1 %v3939_v1 }
 0xb2b   :  { %3328 = vmatmul.mubr.msk.f32.vlgmr.msra.gmra.mrb[8].mxu1 %vm207_vm2, %v660_v63 }
 0xb2c   :  { %3655 = vmatpush3.bf16.msra.mxu1 %v4150_v28  ;;  %3360 = vmatprep.mubr.msk.f32.mxu1 %vm3941_vm0, %v3942_v12 }
 0xb2d   :  { %3656 = vmatprep.subr.bf16.mxu1 %v3939_v1 }
 0xb30   :  { %3658 = vmatpush3.bf16.msra.mxu1 %v4156_v30 }
 0xb31   :  { %3659 = vmatprep.subr.bf16.mxu1 %v3939_v1 }
 0xbf6   :  { %v899_v22 = vpop.f32.mrb[6].mxu1 }
 0xbf7   :  { %v900_v23 = vadd.f32 %v4180_v35, %v899_v22  ;;  %v3318_v25 = vpop.f32.mrb[7].mxu1 }
 0xbf9   :  { %3017 = vst.msk [vmem:[%s4531_s10 + $0x2] sm:$0x3] %vm554_vm3, %v900_v23 }
 0xbfe   :  { %v971_v26 = vpop.f32.mrb[8].mxu1 }
 0xbff   :  { %v976_v27 = vrot.slane %v971_v26, 4  ;;  %v3329_v29 = vpop.f32.mrb[9].mxu1 }
 0xc01   :  { %v978_v31 = vadd.f32 %v976_v27, %v4067_v42 }
 0xc03   :  { %3841 = vtanh.f32 %v978_v31  ;;  %v3019_v33 = vmul.f32 -1.442695, %v978_v31 }
 0xc05   :  { %3843 = vpow2.f32 %v3019_v33 }
 0xc0d   :  { %v3842_v32 = vpop.eup %3841 }
 0xc0e   :  { %991 = vrot.lane.b32.xlu0 %v3842_v32, %s3943_s22 }
 0xc0f   :  { %v3844_v34 = vpop.eup %3843 }
 0xc10   :  { %v982_v36 = vadd.f32 1.0, %v3844_v34 }
 0xc12   :  { %3845 = vrcp.f32 %v982_v36 }
 0xc1c   :  { %v3846_v37 = vpop.eup %3845 }
 0xc1d   :  { %v989_v43 = vmul.f32 %v3846_v37, %v987_v41 }
 0xc80   :  { %v992_v38 = vpop.permute.xlu0 %991 }
 0xc81   :  { %v994_v39 = vmul.f32 %v3846_v37, %v992_v38 }
 0xc83   :  { %996 = vrot.lane.b32.xlu1 %v994_v39, %s3944_s4 }
 0xcf5   :  { %v997_v44 = vpop.permute.xlu1 %996 }
 0xcf6   :  { %v4242_v45 = vadd.f32 %v997_v44, %v989_v43 }
 0xcf8   :  { %3847 = vtanh.f32 %v4242_v45  ;;  %v1336_v27 = vrot.slane %v4242_v45, 6 }
 0xd02   :  { %v3848_v46 = vpop.eup %3847 }
 0xd03   :  { %1002 = vrot.lane.b32.xlu0 %v3848_v46, %s3943_s22 }
 0xd75   :  { %v1003_v47 = vpop.permute.xlu0 %1002 }
 0xd76   :  { %v1005_v48 = vmul.f32 %v3846_v37, %v1003_v47 }
 0xd78   :  { %v1007_v49 = vrot.slane %v1005_v48, 4 }
 0xd7a   :  { %1008 = vrot.lane.b32.xlu1 %v1007_v49, %s3944_s4 }
 0xdec   :  { %v1009_v50 = vpop.permute.xlu1 %1008 }
 0xded   :  { %3339 = vmatmul.mubr.msk.f32.vlgmr.msra.gmra.mrb[6].mxu0 %vm207_vm2, %v1009_v50 }
 0xdee   :  { %3649 = vmatpush3.bf16.msra.mxu0 %v4103_v2  ;;  %3349 = vmatprep.mubr.msk.f32.mxu0 %vm3941_vm0, %v3942_v12 }
 0xdef   :  { %3650 = vmatprep.subr.bf16.mxu0 %v3939_v1 }
 0xdf2   :  { %3652 = vmatpush3.bf16.msra.mxu0 %v4113_v6 }
 0xdf3   :  { %3665 = vmatprep.subr.bf16.mxu0 %v3939_v1 }
 0xdf5   :  { %3350 = vmatmul.mubr.msk.f32.vlgmr.msra.gmra.mrb[6].mxu0 %vm207_vm2, %v830_v21 }
 0xdf6   :  { %3667 = vmatpush3.bf16.msra.mxu0 %v4084_v57  ;;  %3382 = vmatprep.mubr.msk.f32.mxu0 %vm3941_vm0, %v3942_v12 }
 0xdf7   :  { %3668 = vmatprep.subr.bf16.mxu0 %v3939_v1 }
 0xdfa   :  { %3670 = vmatpush3.bf16.msra.mxu0 %v4090_v59 }
 0xdfb   :  { %3671 = vmatprep.subr.bf16.mxu0 %v3939_v1 }
 0xec8   :  { %v1148_v51 = vpop.f32.mrb[6].mxu0 }
 0xec9   :  { %v3781_v52 = vadd.f32 %v4133_v9, %v1148_v51  ;;  %v3351_v54 = vpop.f32.mrb[7].mxu0 }
 0xecb   :  { %3849 = vtanh.f32 %v3781_v52  ;;  %v3022_v56 = vmul.f32 -1.442695, %v3781_v52 }
 0xecd   :  { %3851 = vpow2.f32 %v3022_v56 }
 0xed5   :  { %v3850_v55 = vpop.eup %3849 }
 0xed6   :  { %1162 = vrot.lane.b32.xlu0 %v3850_v55, %s3943_s22 }
 0xed7   :  { %v3852_v58 = vpop.eup %3851 }
 0xed8   :  { %v1156_v60 = vadd.f32 1.0, %v3852_v58 }
 0xeda   :  { %3853 = vrcp.f32 %v1156_v60 }
 0xee4   :  { %v3854_v61 = vpop.eup %3853 }
 0xee5   :  { %v1160_v53 = vmul.f32 %v3854_v61, %v4214_v17 }
 0xf48   :  { %v1163_v62 = vpop.permute.xlu0 %1162 }
 0xf49   :  { %v1165_v63 = vmul.f32 %v3854_v61, %v1163_v62 }
 0xf4b   :  { %1167 = vrot.lane.b32.xlu1 %v1165_v63, %s3944_s4 }
 0xfbd   :  { %v1168_v0 = vpop.permute.xlu1 %1167 }
 0xfbe   :  { %v4265_v3 = vadd.f32 %v1168_v0, %v1160_v53 }
 0xfc0   :  { %3855 = vtanh.f32 %v4265_v3 }
 0xfca   :  { %v3856_v4 = vpop.eup %3855 }
 0xfcb   :  { %1173 = vrot.lane.b32.xlu0 %v3856_v4, %s3943_s22 }
0x103d   :  { %v1174_v5 = vpop.permute.xlu0 %1173 }
0x103e   :  { %v1176_v8 = vmul.f32 %v3854_v61, %v1174_v5 }
0x1040   :  { %1178 = vrot.lane.b32.xlu1 %v1176_v8, %s3944_s4 }
0x10b2   :  { %v1179_v10 = vpop.permute.xlu1 %1178 }
0x10b3   :  { %3361 = vmatmul.mubr.msk.f32.vlgmr.msra.gmra.mrb[10].mxu1 %vm207_vm2, %v1179_v10 }
0x10b4   :  { %3661 = vmatpush3.bf16.msra.mxu1 %v4010_v7  ;;  %3371 = vmatprep.mubr.msk.f32.mxu1 %vm3941_vm0, %v3942_v12 }
0x10b5   :  { %3662 = vmatprep.subr.bf16.mxu1 %v3939_v1 }
0x10b8   :  { %3664 = vmatpush3.bf16.msra.mxu1 %v4043_v24 }
0x10b9   :  { %3677 = vmatprep.subr.bf16.mxu1 %v3939_v1 }
0x10bb   :  { %3372 = vmatmul.mubr.msk.f32.vlgmr.msra.gmra.mrb[12].mxu1 %vm207_vm2, %v1009_v50 }
0x10bc   :  { %3679 = vmatpush3.bf16.msra.mxu1 %v4150_v28  ;;  %3404 = vmatprep.mubr.msk.f32.mxu1 %vm3941_vm0, %v3942_v12 }
0x10bd   :  { %3680 = vmatprep.subr.bf16.mxu1 %v3939_v1 }
0x10c0   :  { %3682 = vmatpush3.bf16.msra.mxu1 %v4156_v30 }
0x10c1   :  { %3683 = vmatprep.subr.bf16.mxu1 %v3939_v1 }
0x1186   :  { %v1248_v11 = vpop.f32.mrb[10].mxu1 }
0x1187   :  { %v1249_v13 = vadd.f32 %v4180_v35, %v1248_v11  ;;  %v3362_v14 = vpop.f32.mrb[11].mxu1 }
0x1189   :  { %3024 = vst.msk [vmem:[%s4531_s10 + $0x4] sm:$0x3] %vm554_vm3, %v1249_v13 }
0x118e   :  { %v1320_v15 = vpop.f32.mrb[12].mxu1 }
0x118f   :  { %v1325_v16 = vrot.slane %v1320_v15, 2  ;;  %v3373_v17 = vpop.f32.mrb[13].mxu1 }
0x1191   :  { %v1327_v18 = vadd.f32 %v1325_v16, %v4067_v42 }
0x1193   :  { %3857 = vtanh.f32 %v1327_v18  ;;  %v3026_v20 = vmul.f32 -1.442695, %v1327_v18 }
0x1195   :  { %3859 = vpow2.f32 %v3026_v20 }
0x119d   :  { %v3858_v19 = vpop.eup %3857 }
0x119e   :  { %1340 = vrot.lane.b32.xlu0 %v3858_v19, %s3943_s22 }
0x119f   :  { %v3860_v21 = vpop.eup %3859 }
0x11a0   :  { %v1331_v22 = vadd.f32 1.0, %v3860_v21 }
0x11a2   :  { %3861 = vrcp.f32 %v1331_v22 }
0x11ac   :  { %v3862_v23 = vpop.eup %3861 }
0x11ad   :  { %v1338_v29 = vmul.f32 %v3862_v23, %v1336_v27 }
0x1210   :  { %v1341_v25 = vpop.permute.xlu0 %1340 }
0x1211   :  { %v1343_v26 = vmul.f32 %v3862_v23, %v1341_v25 }
0x1213   :  { %1345 = vrot.lane.b32.xlu1 %v1343_v26, %s3944_s4 }
0x1285   :  { %v1346_v31 = vpop.permute.xlu1 %1345 }
0x1286   :  { %v4293_v32 = vadd.f32 %v1346_v31, %v1338_v29 }
0x1288   :  { %3863 = vtanh.f32 %v4293_v32  ;;  %v1682_v14 = vrot.slane %v4293_v32, 6 }
0x1292   :  { %v3864_v42 = vpop.eup %3863 }
0x1293   :  { %1351 = vrot.lane.b32.xlu0 %v3864_v42, %s3943_s22 }
0x1305   :  { %v1352_v33 = vpop.permute.xlu0 %1351 }
0x1306   :  { %v1354_v34 = vmul.f32 %v3862_v23, %v1352_v33 }
0x1308   :  { %v1356_v36 = vrot.slane %v1354_v34, 6 }
0x130a   :  { %1357 = vrot.lane.b32.xlu1 %v1356_v36, %s3944_s4 }
0x137c   :  { %v1358_v37 = vpop.permute.xlu1 %1357 }
0x137d   :  { %3383 = vmatmul.mubr.msk.f32.vlgmr.msra.gmra.mrb[8].mxu0 %vm207_vm2, %v1358_v37 }
0x137e   :  { %3673 = vmatpush3.bf16.msra.mxu0 %v4103_v2  ;;  %3393 = vmatprep.mubr.msk.f32.mxu0 %vm3941_vm0, %v3942_v12 }
0x137f   :  { %3674 = vmatprep.subr.bf16.mxu0 %v3939_v1 }
0x1382   :  { %3676 = vmatpush3.bf16.msra.mxu0 %v4113_v6 }
0x1383   :  { %3689 = vmatprep.subr.bf16.mxu0 %v3939_v1 }
0x1385   :  { %3394 = vmatmul.mubr.msk.f32.vlgmr.msra.gmra.mrb[8].mxu0 %vm207_vm2, %v1179_v10 }
0x1386   :  { %3691 = vmatpush3.bf16.msra.mxu0 %v4084_v57  ;;  %3426 = vmatprep.mubr.msk.f32.mxu0 %vm3941_vm0, %v3942_v12 }
0x1387   :  { %3692 = vmatprep.subr.bf16.mxu0 %v3939_v1 }
0x138a   :  { %3694 = vmatpush3.bf16.msra.mxu0 %v4090_v59 }
0x138b   :  { %3695 = vmatprep.subr.bf16.mxu0 %v3939_v1 }
0x1458   :  { %v1497_v38 = vpop.f32.mrb[8].mxu0 }
0x1459   :  { %v3782_v39 = vadd.f32 %v4133_v9, %v1497_v38  ;;  %v3395_v41 = vpop.f32.mrb[9].mxu0 }
0x145b   :  { %3865 = vtanh.f32 %v3782_v39  ;;  %v3029_v44 = vmul.f32 -1.442695, %v3782_v39 }
0x145d   :  { %3867 = vpow2.f32 %v3029_v44 }
0x1465   :  { %v3866_v43 = vpop.eup %3865 }
0x1466   :  { %1511 = vrot.lane.b32.xlu0 %v3866_v43, %s3943_s22 }
0x1467   :  { %v3868_v45 = vpop.eup %3867 }
0x1468   :  { %v1505_v46 = vadd.f32 1.0, %v3868_v45 }
0x146a   :  { %3869 = vrcp.f32 %v1505_v46 }
0x1474   :  { %v3870_v47 = vpop.eup %3869 }
0x1475   :  { %v1509_v50 = vmul.f32 %v3870_v47, %v4265_v3 }
0x14d8   :  { %v1512_v48 = vpop.permute.xlu0 %1511 }
0x14d9   :  { %v1514_v49 = vmul.f32 %v3870_v47, %v1512_v48 }
0x14db   :  { %1516 = vrot.lane.b32.xlu1 %v1514_v49, %s3944_s4 }
0x154d   :  { %v1517_v51 = vpop.permute.xlu1 %1516 }
0x154e   :  { %v4316_v52 = vadd.f32 %v1517_v51, %v1509_v50 }
0x1550   :  { %3871 = vtanh.f32 %v4316_v52 }
0x155a   :  { %v3872_v54 = vpop.eup %3871 }
0x155b   :  { %1522 = vrot.lane.b32.xlu0 %v3872_v54, %s3943_s22 }
0x15cd   :  { %v1523_v55 = vpop.permute.xlu0 %1522 }
0x15ce   :  { %v1525_v56 = vmul.f32 %v3870_v47, %v1523_v55 }
0x15d0   :  { %1527 = vrot.lane.b32.xlu1 %v1525_v56, %s3944_s4 }
0x1642   :  { %v1528_v58 = vpop.permute.xlu1 %1527 }
0x1643   :  { %3405 = vmatmul.mubr.msk.f32.vlgmr.msra.gmra.mrb[14].mxu1 %vm207_vm2, %v1528_v58 }
0x1644   :  { %3685 = vmatpush3.bf16.msra.mxu1 %v4010_v7  ;;  %3415 = vmatprep.mubr.msk.f32.mxu1 %vm3941_vm0, %v3942_v12 }
0x1645   :  { %3686 = vmatprep.subr.bf16.mxu1 %v3939_v1 }
0x1648   :  { %3688 = vmatpush3.bf16.msra.mxu1 %v4043_v24 }
0x1649   :  { %3701 = vmatprep.subr.bf16.mxu1 %v3939_v1 }
0x164b   :  { %3416 = vmatmul.mubr.msk.f32.vlgmr.msra.gmra.mrb[16].mxu1 %vm207_vm2, %v1358_v37 }
0x164c   :  { %3703 = vmatpush3.bf16.msra.mxu1 %v4150_v28  ;;  %3448 = vmatprep.mubr.msk.f32.mxu1 %vm3941_vm0, %v3942_v12 }
0x164d   :  { %3704 = vmatprep.subr.bf16.mxu1 %v3939_v1 }
0x1650   :  { %3706 = vmatpush3.bf16.msra.mxu1 %v4156_v30 }
0x1651   :  { %3707 = vmatprep.subr.bf16.mxu1 %v3939_v1 }
0x1716   :  { %v1597_v60 = vpop.f32.mrb[14].mxu1 }
0x1717   :  { %v1598_v61 = vadd.f32 %v4180_v35, %v1597_v60  ;;  %v3406_v62 = vpop.f32.mrb[15].mxu1 }
0x1719   :  { %3031 = vst.msk [vmem:[%s4531_s10 + $0x6] sm:$0x3] %vm554_vm3, %v1598_v61 }
0x171e   :  { %v1669_v63 = vpop.f32.mrb[16].mxu1 }
0x171f   :  { %v1673_v53 = vadd.f32 %v1669_v63, %v4065_v40  ;;  %v3417_v0 = vpop.f32.mrb[17].mxu1 }
0x1721   :  { %3873 = vtanh.f32 %v1673_v53  ;;  %v3033_v4 = vmul.f32 -1.442695, %v1673_v53 }
0x1723   :  { %3875 = vpow2.f32 %v3033_v4 }
0x172b   :  { %v3874_v3 = vpop.eup %3873 }
0x172c   :  { %1686 = vrot.lane.b32.xlu0 %v3874_v3, %s3943_s22 }
0x172d   :  { %v3876_v5 = vpop.eup %3875 }
0x172e   :  { %v1677_v8 = vadd.f32 1.0, %v3876_v5 }
0x1730   :  { %3877 = vrcp.f32 %v1677_v8 }
0x173a   :  { %v3878_v10 = vpop.eup %3877 }
0x173b   :  { %v1684_v15 = vmul.f32 %v3878_v10, %v1682_v14 }
0x179e   :  { %v1687_v11 = vpop.permute.xlu0 %1686 }
0x179f   :  { %v1689_v13 = vmul.f32 %v3878_v10, %v1687_v11 }
0x17a1   :  { %1691 = vrot.lane.b32.xlu1 %v1689_v13, %s3944_s4 }
0x1813   :  { %v1692_v16 = vpop.permute.xlu1 %1691 }
0x1814   :  { %v4344_v17 = vadd.f32 %v1692_v16, %v1684_v15 }
0x1816   :  { %3879 = vtanh.f32 %v4344_v17  ;;  %v2030_v61 = vrot.slane %v4344_v17, 6 }
0x1820   :  { %v3880_v18 = vpop.eup %3879 }
0x1821   :  { %1697 = vrot.lane.b32.xlu0 %v3880_v18, %s3943_s22 }
0x1893   :  { %v1698_v19 = vpop.permute.xlu0 %1697 }
0x1894   :  { %v1700_v20 = vmul.f32 %v3878_v10, %v1698_v19 }
0x1896   :  { %1702 = vrot.lane.b32.xlu1 %v1700_v20, %s3944_s4 }
0x1908   :  { %v1703_v21 = vpop.permute.xlu1 %1702 }
0x1909   :  { %3427 = vmatmul.mubr.msk.f32.vlgmr.msra.gmra.mrb[10].mxu0 %vm207_vm2, %v1703_v21 }
0x190a   :  { %3697 = vmatpush3.bf16.msra.mxu0 %v4103_v2  ;;  %3437 = vmatprep.mubr.msk.f32.mxu0 %vm3941_vm0, %v3942_v12 }
0x190b   :  { %3698 = vmatprep.subr.bf16.mxu0 %v3939_v1 }
0x190e   :  { %3700 = vmatpush3.bf16.msra.mxu0 %v4113_v6 }
0x190f   :  { %3713 = vmatprep.subr.bf16.mxu0 %v3939_v1 }
0x1911   :  { %3438 = vmatmul.mubr.msk.f32.vlgmr.msra.gmra.mrb[10].mxu0 %vm207_vm2, %v1528_v58 }
0x1912   :  { %3715 = vmatpush3.bf16.msra.mxu0 %v4084_v57  ;;  %3470 = vmatprep.mubr.msk.f32.mxu0 %vm3941_vm0, %v3942_v12 }
0x1913   :  { %3716 = vmatprep.subr.bf16.mxu0 %v3939_v1 }
0x1916   :  { %3718 = vmatpush3.bf16.msra.mxu0 %v4090_v59 }
0x1917   :  { %3719 = vmatprep.subr.bf16.mxu0 %v3939_v1 }
0x19e4   :  { %v1842_v22 = vpop.f32.mrb[10].mxu0 }
0x19e5   :  { %v3783_v23 = vadd.f32 %v4133_v9, %v1842_v22  ;;  %v3439_v25 = vpop.f32.mrb[11].mxu0 }
0x19e7   :  { %3881 = vtanh.f32 %v3783_v23  ;;  %v3036_v27 = vmul.f32 -1.442695, %v3783_v23 }
0x19e9   :  { %3883 = vpow2.f32 %v3036_v27 }
0x19f1   :  { %v3882_v26 = vpop.eup %3881 }
0x19f2   :  { %1856 = vrot.lane.b32.xlu0 %v3882_v26, %s3943_s22 }
0x19f3   :  { %v3884_v29 = vpop.eup %3883 }
0x19f4   :  { %v1850_v31 = vadd.f32 1.0, %v3884_v29 }
0x19f6   :  { %3885 = vrcp.f32 %v1850_v31 }
0x1a00   :  { %v3886_v32 = vpop.eup %3885 }
0x1a01   :  { %v1854_v34 = vmul.f32 %v3886_v32, %v4316_v52 }
0x1a64   :  { %v1857_v42 = vpop.permute.xlu0 %1856 }
0x1a65   :  { %v1859_v33 = vmul.f32 %v3886_v32, %v1857_v42 }
0x1a67   :  { %1861 = vrot.lane.b32.xlu1 %v1859_v33, %s3944_s4 }
0x1ad9   :  { %v1862_v36 = vpop.permute.xlu1 %1861 }
0x1ada   :  { %v4367_v37 = vadd.f32 %v1862_v36, %v1854_v34 }
0x1adc   :  { %3887 = vtanh.f32 %v4367_v37 }
0x1ae6   :  { %v3888_v38 = vpop.eup %3887 }
0x1ae7   :  { %1867 = vrot.lane.b32.xlu0 %v3888_v38, %s3943_s22 }
0x1b59   :  { %v1868_v39 = vpop.permute.xlu0 %1867 }
0x1b5a   :  { %v1870_v41 = vmul.f32 %v3886_v32, %v1868_v39 }
0x1b5c   :  { %1872 = vrot.lane.b32.xlu1 %v1870_v41, %s3944_s4 }
0x1bce   :  { %v1873_v43 = vpop.permute.xlu1 %1872 }
0x1bcf   :  { %3449 = vmatmul.mubr.msk.f32.vlgmr.msra.gmra.mrb[18].mxu1 %vm207_vm2, %v1873_v43 }
0x1bd0   :  { %3709 = vmatpush3.bf16.msra.mxu1 %v4010_v7  ;;  %3459 = vmatprep.mubr.msk.f32.mxu1 %vm3941_vm0, %v3942_v12 }
0x1bd1   :  { %3710 = vmatprep.subr.bf16.mxu1 %v3939_v1 }
0x1bd4   :  { %3712 = vmatpush3.bf16.msra.mxu1 %v4043_v24 }
0x1bd5   :  { %3725 = vmatprep.subr.bf16.mxu1 %v3939_v1 }
0x1bd7   :  { %3460 = vmatmul.mubr.msk.f32.vlgmr.msra.gmra.mrb[20].mxu1 %vm207_vm2, %v1703_v21 }
0x1bd8   :  { %3727 = vmatpush3.bf16.msra.mxu1 %v4150_v28  ;;  %3492 = vmatprep.mubr.msk.f32.mxu1 %vm3941_vm0, %v3942_v12 }
0x1bd9   :  { %3728 = vmatprep.subr.bf16.mxu1 %v3939_v1 }
0x1bdc   :  { %3730 = vmatpush3.bf16.msra.mxu1 %v4156_v30 }
0x1bdd   :  { %3731 = vmatprep.subr.bf16.mxu1 %v3939_v1 }
0x1ca2   :  { %v1942_v44 = vpop.f32.mrb[18].mxu1 }
0x1ca3   :  { %v1943_v45 = vadd.f32 %v4180_v35, %v1942_v44  ;;  %v3450_v46 = vpop.f32.mrb[19].mxu1 }
0x1ca5   :  { %3038 = vst.msk [vmem:[%s4531_s10 + $0x8] sm:$0x3] %vm554_vm3, %v1943_v45 }
0x1caa   :  { %v2014_v47 = vpop.f32.mrb[20].mxu1 }
0x1cab   :  { %v2019_v48 = vrot.slane %v2014_v47, 6  ;;  %v3461_v49 = vpop.f32.mrb[21].mxu1 }
0x1cad   :  { %v2021_v50 = vadd.f32 %v2019_v48, %v4065_v40 }
0x1caf   :  { %3889 = vtanh.f32 %v2021_v50  ;;  %v3040_v52 = vmul.f32 -1.442695, %v2021_v50 }
0x1cb1   :  { %3891 = vpow2.f32 %v3040_v52 }
0x1cb9   :  { %v3890_v51 = vpop.eup %3889 }
0x1cba   :  { %2034 = vrot.lane.b32.xlu0 %v3890_v51, %s3943_s22 }
0x1cbb   :  { %v3892_v54 = vpop.eup %3891 }
0x1cbc   :  { %v2025_v55 = vadd.f32 1.0, %v3892_v54 }
0x1cbe   :  { %3893 = vrcp.f32 %v2025_v55 }
0x1cc8   :  { %v3894_v56 = vpop.eup %3893 }
0x1cc9   :  { %v2032_v62 = vmul.f32 %v3894_v56, %v2030_v61 }
0x1d2c   :  { %v2035_v58 = vpop.permute.xlu0 %2034 }
0x1d2d   :  { %v2037_v60 = vmul.f32 %v3894_v56, %v2035_v58 }
0x1d2f   :  { %2039 = vrot.lane.b32.xlu1 %v2037_v60, %s3944_s4 }
0x1da1   :  { %v2040_v63 = vpop.permute.xlu1 %2039 }
0x1da2   :  { %v4395_v53 = vadd.f32 %v2040_v63, %v2032_v62 }
0x1da4   :  { %3895 = vtanh.f32 %v4395_v53  ;;  %v2379_v47 = vrot.slane %v4395_v53, 6 }
0x1dae   :  { %v3896_v0 = vpop.eup %3895 }
0x1daf   :  { %2045 = vrot.lane.b32.xlu0 %v3896_v0, %s3943_s22 }
0x1e21   :  { %v2046_v3 = vpop.permute.xlu0 %2045 }
0x1e22   :  { %v2048_v4 = vmul.f32 %v3894_v56, %v2046_v3 }
0x1e24   :  { %v2050_v5 = vrot.slane %v2048_v4, 2 }
0x1e26   :  { %2051 = vrot.lane.b32.xlu1 %v2050_v5, %s3944_s4 }
0x1e98   :  { %v2052_v8 = vpop.permute.xlu1 %2051 }
0x1e99   :  { %3471 = vmatmul.mubr.msk.f32.vlgmr.msra.gmra.mrb[12].mxu0 %vm207_vm2, %v2052_v8 }
0x1e9a   :  { %3721 = vmatpush3.bf16.msra.mxu0 %v4103_v2  ;;  %3481 = vmatprep.mubr.msk.f32.mxu0 %vm3941_vm0, %v3942_v12 }
0x1e9b   :  { %3722 = vmatprep.subr.bf16.mxu0 %v3939_v1 }
0x1e9e   :  { %3724 = vmatpush3.bf16.msra.mxu0 %v4113_v6 }
0x1e9f   :  { %3737 = vmatprep.subr.bf16.mxu0 %v3939_v1 }
0x1ea1   :  { %3482 = vmatmul.mubr.msk.f32.vlgmr.msra.gmra.mrb[12].mxu0 %vm207_vm2, %v1873_v43 }
0x1ea2   :  { %3739 = vmatpush3.bf16.msra.mxu0 %v4084_v57  ;;  %3514 = vmatprep.mubr.msk.f32.mxu0 %vm3941_vm0, %v3942_v12 }
0x1ea3   :  { %3740 = vmatprep.subr.bf16.mxu0 %v3939_v1 }
0x1ea6   :  { %3742 = vmatpush3.bf16.msra.mxu0 %v4090_v59 }
0x1ea7   :  { %3743 = vmatprep.subr.bf16.mxu0 %v3939_v1 }
0x1f74   :  { %v2191_v10 = vpop.f32.mrb[12].mxu0 }
0x1f75   :  { %v3784_v11 = vadd.f32 %v4133_v9, %v2191_v10  ;;  %v3483_v13 = vpop.f32.mrb[13].mxu0 }
0x1f77   :  { %3897 = vtanh.f32 %v3784_v11  ;;  %v3043_v15 = vmul.f32 -1.442695, %v3784_v11 }
0x1f79   :  { %3899 = vpow2.f32 %v3043_v15 }
0x1f81   :  { %v3898_v14 = vpop.eup %3897 }
0x1f82   :  { %2205 = vrot.lane.b32.xlu0 %v3898_v14, %s3943_s22 }
0x1f83   :  { %v3900_v16 = vpop.eup %3899 }
0x1f84   :  { %v2199_v17 = vadd.f32 1.0, %v3900_v16 }
0x1f86   :  { %3901 = vrcp.f32 %v2199_v17 }
0x1f90   :  { %v3902_v18 = vpop.eup %3901 }
0x1f91   :  { %v2203_v21 = vmul.f32 %v3902_v18, %v4367_v37 }
0x1ff4   :  { %v2206_v19 = vpop.permute.xlu0 %2205 }
0x1ff5   :  { %v2208_v20 = vmul.f32 %v3902_v18, %v2206_v19 }
0x1ff7   :  { %2210 = vrot.lane.b32.xlu1 %v2208_v20, %s3944_s4 }
0x2069   :  { %v2211_v22 = vpop.permute.xlu1 %2210 }
0x206a   :  { %v4418_v23 = vadd.f32 %v2211_v22, %v2203_v21 }
0x206c   :  { %3903 = vtanh.f32 %v4418_v23 }
0x2076   :  { %v3904_v25 = vpop.eup %3903 }
0x2077   :  { %2216 = vrot.lane.b32.xlu0 %v3904_v25, %s3943_s22 }
0x20e9   :  { %v2217_v26 = vpop.permute.xlu0 %2216 }
0x20ea   :  { %v2219_v27 = vmul.f32 %v3902_v18, %v2217_v26 }
0x20ec   :  { %2221 = vrot.lane.b32.xlu1 %v2219_v27, %s3944_s4 }
0x215e   :  { %v2222_v29 = vpop.permute.xlu1 %2221 }
0x215f   :  { %3493 = vmatmul.mubr.msk.f32.vlgmr.msra.gmra.mrb[22].mxu1 %vm207_vm2, %v2222_v29 }
0x2160   :  { %3733 = vmatpush3.bf16.msra.mxu1 %v4010_v7  ;;  %3503 = vmatprep.mubr.msk.f32.mxu1 %vm3941_vm0, %v3942_v12 }
0x2161   :  { %3734 = vmatprep.subr.bf16.mxu1 %v3939_v1 }
0x2164   :  { %3736 = vmatpush3.bf16.msra.mxu1 %v4043_v24 }
0x2165   :  { %3749 = vmatprep.subr.bf16.mxu1 %v3939_v1 }
0x2167   :  { %3504 = vmatmul.mubr.msk.f32.vlgmr.msra.gmra.mrb[24].mxu1 %vm207_vm2, %v2052_v8 }
0x2168   :  { %3751 = vmatpush3.bf16.msra.mxu1 %v4150_v28  ;;  %3536 = vmatprep.mubr.msk.f32.mxu1 %vm3941_vm0, %v3942_v12 }
0x2169   :  { %3752 = vmatprep.subr.bf16.mxu1 %v3939_v1 }
0x216c   :  { %3754 = vmatpush3.bf16.msra.mxu1 %v4156_v30 }
0x216d   :  { %3755 = vmatprep.subr.bf16.mxu1 %v3939_v1 }
0x2232   :  { %v2291_v31 = vpop.f32.mrb[22].mxu1 }
0x2233   :  { %v2292_v32 = vadd.f32 %v4180_v35, %v2291_v31  ;;  %v3494_v42 = vpop.f32.mrb[23].mxu1 }
0x2235   :  { %3045 = vst.msk [vmem:[%s4531_s10 + $0xa] sm:$0x3] %vm554_vm3, %v2292_v32 }
0x223a   :  { %v2363_v33 = vpop.f32.mrb[24].mxu1 }
0x223b   :  { %v2368_v34 = vrot.slane %v2363_v33, 4  ;;  %v3505_v36 = vpop.f32.mrb[25].mxu1 }
0x223d   :  { %v2370_v37 = vadd.f32 %v2368_v34, %v4065_v40  ;;  %v3937_v34 = vld [vmem:[%s4528_s7] ss:$0 sm:$0xff] }
0x223f   :  { %3905 = vtanh.f32 %v2370_v37  ;;  %v3047_v39 = vmul.f32 -1.442695, %v2370_v37 }
0x2241   :  { %3907 = vpow2.f32 %v3047_v39 }
0x2249   :  { %v3906_v38 = vpop.eup %3905 }
0x224a   :  { %2383 = vrot.lane.b32.xlu0 %v3906_v38, %s3943_s22 }
0x224b   :  { %v3908_v41 = vpop.eup %3907 }
0x224c   :  { %v2374_v43 = vadd.f32 1.0, %v3908_v41 }
0x224e   :  { %3909 = vrcp.f32 %v2374_v43 }
0x2258   :  { %v3910_v44 = vpop.eup %3909 }
0x2259   :  { %v2381_v48 = vmul.f32 %v3910_v44, %v2379_v47 }
0x22bc   :  { %v2384_v45 = vpop.permute.xlu0 %2383 }
0x22bd   :  { %v2386_v46 = vmul.f32 %v3910_v44, %v2384_v45 }
0x22bf   :  { %2388 = vrot.lane.b32.xlu1 %v2386_v46, %s3944_s4 }
0x2331   :  { %v2389_v49 = vpop.permute.xlu1 %2388 }
0x2332   :  { %v4446_v50 = vadd.f32 %v2389_v49, %v2381_v48 }
0x2334   :  { %3911 = vtanh.f32 %v4446_v50 }
0x233e   :  { %v3912_v51 = vpop.eup %3911 }
0x233f   :  { %2394 = vrot.lane.b32.xlu0 %v3912_v51, %s3943_s22  ;;  %v3938_v51 = vld [vmem:[%s4530_s9] ss:$0 sm:$0xff] }
0x23b1   :  { %v2395_v52 = vpop.permute.xlu0 %2394 }
0x23b2   :  { %v2397_v54 = vmul.f32 %v3910_v44, %v2395_v52 }
0x23b4   :  { %v2399_v55 = vrot.slane %v2397_v54, 4 }
0x23b6   :  { %2400 = vrot.lane.b32.xlu1 %v2399_v55, %s3944_s4 }
0x2428   :  { %v2401_v56 = vpop.permute.xlu1 %2400 }
0x2429   :  { %3515 = vmatmul.mubr.msk.f32.vlgmr.msra.gmra.mrb[14].mxu0 %vm207_vm2, %v2401_v56 }
0x242a   :  { %3745 = vmatpush3.bf16.msra.mxu0 %v4103_v2  ;;  %3525 = vmatprep.mubr.msk.f32.mxu0 %vm3941_vm0, %v3942_v12 }
0x242b   :  { %3746 = vmatprep.subr.bf16.mxu0 %v3939_v1 }
0x242e   :  { %3748 = vmatpush3.bf16.msra.mxu0 %v4113_v6 }
0x242f   :  { %3761 = vmatprep.subr.bf16.mxu0 %v3939_v1 }
0x2431   :  { %3526 = vmatmul.mubr.msk.f32.vlgmr.msra.gmra.mrb[14].mxu0 %vm207_vm2, %v2222_v29 }
0x2432   :  { %3763 = vmatpush3.bf16.msra.mxu0 %v4084_v57  ;;  %3558 = vmatprep.mubr.msk.f32.mxu0 %vm3941_vm0, %v3942_v12 }
0x2433   :  { %3764 = vmatprep.subr.bf16.mxu0 %v3939_v1 }
0x2436   :  { %3766 = vmatpush3.bf16.msra.mxu0 %v4090_v59 }
0x2437   :  { %3767 = vmatprep.subr.bf16.mxu0 %v3939_v1 }
0x2504   :  { %v2540_v58 = vpop.f32.mrb[14].mxu0 }
0x2505   :  { %v3785_v60 = vadd.f32 %v4133_v9, %v2540_v58  ;;  %v3527_v61 = vpop.f32.mrb[15].mxu0 }
0x2507   :  { %3913 = vtanh.f32 %v3785_v60  ;;  %v3050_v63 = vmul.f32 -1.442695, %v3785_v60 }
0x2509   :  { %3915 = vpow2.f32 %v3050_v63 }
0x2511   :  { %v3914_v62 = vpop.eup %3913 }
0x2512   :  { %2554 = vrot.lane.b32.xlu0 %v3914_v62, %s3943_s22 }
0x2513   :  { %v3916_v57 = vpop.eup %3915 }
0x2514   :  { %v2548_v53 = vadd.f32 1.0, %v3916_v57 }
0x2516   :  { %3917 = vrcp.f32 %v2548_v53 }
0x2520   :  { %v3918_v0 = vpop.eup %3917 }
0x2521   :  { %v2552_v59 = vmul.f32 %v3918_v0, %v4418_v23  ;;  %v2728_v23 = vrot.slane %v4446_v50, 6 }
0x2584   :  { %v2555_v3 = vpop.permute.xlu0 %2554 }
0x2585   :  { %v2557_v4 = vmul.f32 %v3918_v0, %v2555_v3 }
0x2587   :  { %2559 = vrot.lane.b32.xlu1 %v2557_v4, %s3944_s4 }
0x25f9   :  { %v2560_v5 = vpop.permute.xlu1 %2559 }
0x25fa   :  { %v4469_v8 = vadd.f32 %v2560_v5, %v2552_v59 }
0x25fc   :  { %3919 = vtanh.f32 %v4469_v8 }
0x2606   :  { %v3920_v9 = vpop.eup %3919 }
0x2607   :  { %2565 = vrot.lane.b32.xlu0 %v3920_v9, %s3943_s22 }
0x2679   :  { %v2566_v10 = vpop.permute.xlu0 %2565 }
0x267a   :  { %v2568_v11 = vmul.f32 %v3918_v0, %v2566_v10 }
0x267c   :  { %2570 = vrot.lane.b32.xlu1 %v2568_v11, %s3944_s4 }
0x26ee   :  { %v2571_v13 = vpop.permute.xlu1 %2570 }
0x26ef   :  { %3537 = vmatmul.mubr.msk.f32.vlgmr.msra.gmra.mrb[26].mxu1 %vm207_vm2, %v2571_v13 }
0x26f0   :  { %3757 = vmatpush3.bf16.msra.mxu1 %v4010_v7  ;;  %3547 = vmatprep.mubr.msk.f32.mxu1 %vm3941_vm0, %v3942_v12 }
0x26f1   :  { %3758 = vmatprep.subr.bf16.mxu1 %v3939_v1 }
0x26f4   :  { %3760 = vmatpush3.bf16.msra.mxu1 %v4043_v24 }
0x26f5   :  { %3773 = vmatprep.subr.bf16.mxu1 %v3939_v1 }
0x26f7   :  { %3548 = vmatmul.mubr.msk.f32.vlgmr.msra.gmra.mrb[28].mxu1 %vm207_vm2, %v2401_v56 }
0x26f8   :  { %3775 = vmatpush3.bf16.msra.mxu1 %v4150_v28  ;;  %3580 = vmatprep.mubr.msk.f32.mxu1 %vm3941_vm0, %v3942_v12 }
0x26f9   :  { %3776 = vmatprep.subr.bf16.mxu1 %v3939_v1 }
0x26fc   :  { %3778 = vmatpush3.bf16.msra.mxu1 %v4156_v30 }
0x27c2   :  { %v2640_v7 = vpop.f32.mrb[26].mxu1 }
0x27c3   :  { %v2641_v14 = vadd.f32 %v4180_v35, %v2640_v7  ;;  %v3538_v15 = vpop.f32.mrb[27].mxu1 }
0x27c5   :  { %3052 = vst.msk [vmem:[%s4531_s10 + $0xc] sm:$0x3] %vm554_vm3, %v2641_v14 }
0x27ca   :  { %v2712_v24 = vpop.f32.mrb[28].mxu1 }
0x27cb   :  { %v2717_v16 = vrot.slane %v2712_v24, 2  ;;  %v3549_v17 = vpop.f32.mrb[29].mxu1 }
0x27cd   :  { %v2719_v28 = vadd.f32 %v2717_v16, %v4065_v40 }
0x27cf   :  { %3921 = vtanh.f32 %v2719_v28  ;;  %v3054_v19 = vmul.f32 -1.442695, %v2719_v28 }
0x27d1   :  { %3923 = vpow2.f32 %v3054_v19 }
0x27d9   :  { %v3922_v18 = vpop.eup %3921 }
0x27da   :  { %2732 = vrot.lane.b32.xlu0 %v3922_v18, %s3943_s22 }
0x27db   :  { %v3924_v30 = vpop.eup %3923 }
0x27dc   :  { %v2723_v20 = vadd.f32 1.0, %v3924_v30 }
0x27de   :  { %3925 = vrcp.f32 %v2723_v20 }
0x27e8   :  { %v3926_v35 = vpop.eup %3925 }
0x27e9   :  { %v2730_v25 = vmul.f32 %v3926_v35, %v2728_v23 }
0x284c   :  { %v2733_v21 = vpop.permute.xlu0 %2732 }
0x284d   :  { %v2735_v22 = vmul.f32 %v3926_v35, %v2733_v21 }
0x284f   :  { %2737 = vrot.lane.b32.xlu1 %v2735_v22, %s3944_s4 }
0x28c1   :  { %v2738_v26 = vpop.permute.xlu1 %2737 }
0x28c2   :  { %v2740_v27 = vadd.f32 %v2738_v26, %v2730_v25 }
0x28c4   :  { %3927 = vtanh.f32 %v2740_v27 }
0x28ce   :  { %v3928_v40 = vpop.eup %3927 }
0x28cf   :  { %2743 = vrot.lane.b32.xlu0 %v3928_v40, %s3943_s22 }
0x2941   :  { %v2744_v29 = vpop.permute.xlu0 %2743 }
0x2942   :  { %v2746_v31 = vmul.f32 %v3926_v35, %v2744_v29 }
0x2944   :  { %v2748_v32 = vrot.slane %v2746_v31, 6 }
0x2946   :  { %2749 = vrot.lane.b32.xlu1 %v2748_v32, %s3944_s4 }
0x29b8   :  { %v2750_v42 = vpop.permute.xlu1 %2749 }
0x29b9   :  { %3559 = vmatmul.mubr.msk.f32.vlgmr.msra.gmra.mrb[16].mxu0 %vm207_vm2, %v2750_v42 }
0x29ba   :  { %3769 = vmatpush3.bf16.msra.mxu0 %v4103_v2  ;;  %3569 = vmatprep.mubr.msk.f32.mxu0 %vm3941_vm0, %v3942_v12 }
0x29bb   :  { %3770 = vmatprep.subr.bf16.mxu0 %v3939_v1 }
0x29be   :  { %3772 = vmatpush3.bf16.msra.mxu0 %v4113_v6 }
0x29c1   :  { %3570 = vmatmul.mubr.msk.f32.vlgmr.msra.gmra.mrb[16].mxu0 %vm207_vm2, %v2571_v13 }
0x2a94   :  { %v2889_v33 = vpop.f32.mrb[16].mxu0 }
0x2a95   :  { %v3786_v36 = vadd.f32 %v3937_v34, %v2889_v33  ;;  %v3571_v37 = vpop.f32.mrb[17].mxu0 }
0x2a97   :  { %3929 = vtanh.f32 %v3786_v36  ;;  %v3057_v2 = vmul.f32 -1.442695, %v3786_v36 }
0x2a99   :  { %3931 = vpow2.f32 %v3057_v2 }
0x2aa1   :  { %v3930_v38 = vpop.eup %3929 }
0x2aa2   :  { %2903 = vrot.lane.b32.xlu0 %v3930_v38, %s3943_s22 }
0x2aa3   :  { %v3932_v12 = vpop.eup %3931 }
0x2aa4   :  { %v2897_v39 = vadd.f32 1.0, %v3932_v12 }
0x2aa6   :  { %3933 = vrcp.f32 %v2897_v39 }
0x2ab0   :  { %v3934_v1 = vpop.eup %3933 }
0x2ab1   :  { %v2901_v43 = vmul.f32 %v3934_v1, %v4469_v8 }
0x2b14   :  { %v2904_v6 = vpop.permute.xlu0 %2903 }
0x2b15   :  { %v2906_v41 = vmul.f32 %v3934_v1, %v2904_v6 }
0x2b17   :  { %2908 = vrot.lane.b32.xlu1 %v2906_v41, %s3944_s4 }
0x2b89   :  { %v2909_v44 = vpop.permute.xlu1 %2908 }
0x2b8a   :  { %v2911_v45 = vadd.f32 %v2909_v44, %v2901_v43 }
0x2b8c   :  { %3935 = vtanh.f32 %v2911_v45 }
0x2b96   :  { %v3936_v46 = vpop.eup %3935 }
0x2b97   :  { %2914 = vrot.lane.b32.xlu0 %v3936_v46, %s3943_s22 }
0x2c09   :  { %v2915_v47 = vpop.permute.xlu0 %2914 }
0x2c0a   :  { %v2917_v48 = vmul.f32 %v3934_v1, %v2915_v47 }
0x2c0c   :  { %2919 = vrot.lane.b32.xlu1 %v2917_v48, %s3944_s4 }
0x2c7e   :  { %v2920_v49 = vpop.permute.xlu1 %2919 }
0x2c7f   :  { %3581 = vmatmul.mubr.msk.f32.vlgmr.msra.gmra.mrb[30].mxu1 %vm207_vm2, %v2920_v49 }
0x2d52   :  { %v2989_v50 = vpop.f32.mrb[30].mxu1 }
0x2d53   :  { %v2990_v52 = vadd.f32 %v3938_v51, %v2989_v50  ;;  %v3582_v54 = vpop.f32.mrb[31].mxu1 }
0x2d55   :  { %3059 = vst.msk [vmem:[%s4531_s10 + $0xe] sm:$0x3] %vm554_vm3, %v2990_v52 }

</bundles_post_ra>
